<compile_context>
chip_gen: v7x
topology: tpu7x:2x2x1
jax: 0.10.0
libtpu: 0.0.40
codegen_flags: <defaults>
</compile_context>

<pallas_src>
import functools

import jax
import jax.numpy as jnp
from jax.experimental import pallas as pl
from jax.experimental.pallas import tpu as pltpu


LANE = 128             # TPU lane width: head columns padded to this
SUBL = 16              # bf16 sublane packing: GEMM row tiles padded to this
FC_K = 3200            # fc feature dim padded 3136 -> 3200 (25 * 128)
FC_SPLIT = 2           # fc hidden dim (512) split into 2 parallel column tiles
VMEM_LIMIT = 32 << 20  # largest per-call footprint ~10 MiB; safe on v5e/v6e/v7x


def _round_up(x, m):
    return (x + m - 1) // m * m


def _pick_tile(m, tile_max):
    """Row tile: multiple of SUBL, <= tile_max, and >= 2 grid steps whenever
    m allows (so 'parallel' grid axes can shard across v7x's two TensorCores)."""
    if m <= SUBL:
        return SUBL
    if m <= 2 * tile_max:
        return _round_up(pl.cdiv(m, 2), SUBL)
    return tile_max


# ----------------------------------------------------------------------------
# Pallas kernel 1: fused GEMM + per-column affine + ReLU   (conv-as-GEMM)
# ----------------------------------------------------------------------------
def _matmul_affine_kernel(a_ref, w_ref, scale_ref, shift_ref, o_ref, *, apply_relu):
    # a_ref: (tm, K) bf16   w_ref: (K, N) bf16   scale/shift: (1, N) f32
    acc = jnp.dot(a_ref[...], w_ref[...], preferred_element_type=jnp.float32)
    y = acc * scale_ref[...] + shift_ref[...]
    if apply_relu:
        y = jnp.maximum(y, 0.0)
    o_ref[...] = y.astype(o_ref.dtype)


def matmul_affine(a, w, scale, shift, *, tm_max, apply_relu=True,
                  out_dtype=jnp.bfloat16):
    """relu_opt((a @ w) * scale + shift); bf16 MXU inputs, f32 accumulation.

    The row (M) dimension is tiled with a 'parallel' grid; each grid point gets
    the full (K, N) weight block (all conv weights here are <= ~72 KiB bf16)
    and a (tm, K) slab of patch rows.
    """
    M, K = a.shape
    K2, N = w.shape
    assert K == K2
    assert scale.shape == (1, N) and shift.shape == (1, N)

    tm = _pick_tile(M, tm_max)
    Mp = _round_up(M, tm)
    if Mp != M:
        a = jnp.pad(a, ((0, Mp - M), (0, 0)))

    kernel = functools.partial(_matmul_affine_kernel, apply_relu=apply_relu)
    out = pl.pallas_call(
        kernel,
        out_shape=jax.ShapeDtypeStruct((Mp, N), out_dtype),
        grid=(Mp // tm,),
        in_specs=[
            pl.BlockSpec((tm, K), lambda i: (i, 0)),
            pl.BlockSpec((K, N), lambda i: (0, 0)),
            pl.BlockSpec((1, N), lambda i: (0, 0)),
            pl.BlockSpec((1, N), lambda i: (0, 0)),
        ],
        out_specs=pl.BlockSpec((tm, N), lambda i: (i, 0)),
        compiler_params=pltpu.CompilerParams(
            dimension_semantics=("parallel",),
            vmem_limit_bytes=VMEM_LIMIT,
        ),
    )(a.astype(jnp.bfloat16), w, scale, shift)
    return out[:M] if Mp != M else out


# ----------------------------------------------------------------------------
# Pallas kernel 2: fused fc(+relu) + head — one pallas_call, no HBM round trip.
# The fc hidden dim is split into FC_SPLIT column tiles on a second *parallel*
# grid axis; each step produces a partial head contribution, summed outside.
# ----------------------------------------------------------------------------
def _fc_head_kernel(x_ref, fcw_ref, fcb_ref, hw_ref, o_ref):
    h = jnp.dot(x_ref[...], fcw_ref[...], preferred_element_type=jnp.float32)
    h = jnp.maximum(h + fcb_ref[...], 0.0).astype(jnp.bfloat16)
    o_ref[...] = jnp.dot(h, hw_ref[...], preferred_element_type=jnp.float32)


def fc_head(x, fc_w, fc_b, head_w, head_b, *, tb_max=512):
    M, K = x.shape
    K2, N1 = fc_w.shape
    N1b, N2 = head_w.shape
    assert K == K2 and N1 == N1b and N1 % FC_SPLIT == 0
    tn = N1 // FC_SPLIT

    tb = _pick_tile(M, tb_max)
    Mp = _round_up(M, tb)
    if Mp != M:
        x = jnp.pad(x, ((0, Mp - M), (0, 0)))

    partial = pl.pallas_call(
        _fc_head_kernel,
        out_shape=jax.ShapeDtypeStruct((FC_SPLIT, Mp, N2), jnp.float32),
        grid=(Mp // tb, FC_SPLIT),
        in_specs=[
            pl.BlockSpec((tb, K), lambda i, j: (i, 0)),
            pl.BlockSpec((K, tn), lambda i, j: (0, j)),
            pl.BlockSpec((1, tn), lambda i, j: (0, j)),
            pl.BlockSpec((tn, N2), lambda i, j: (j, 0)),
        ],
        out_specs=pl.BlockSpec((None, tb, N2), lambda i, j: (j, i, 0)),
        compiler_params=pltpu.CompilerParams(
            dimension_semantics=("parallel", "parallel"),
            vmem_limit_bytes=VMEM_LIMIT,
        ),
    )(x.astype(jnp.bfloat16), fc_w, fc_b, head_w)

    out = partial.sum(axis=0) + head_b        # (Mp, N2) f32
    return out[:M] if Mp != M else out


# ----------------------------------------------------------------------------
# Glue: im2col patch extraction (NHWC), valid padding, square stride
# ----------------------------------------------------------------------------
def im2col(x_nhwc, kh, kw, stride):
    B, H, W, C = x_nhwc.shape
    oh = (H - kh) // stride + 1
    ow = (W - kw) // stride + 1
    cols = []
    for i in range(kh):
        for j in range(kw):
            cols.append(
                x_nhwc[:, i: i + oh * stride: stride, j: j + ow * stride: stride, :]
            )
    # (B, oh, ow, kh*kw, C) -> (B*oh*ow, kh*kw*C); patch feature order (ki, kj, c)
    p = jnp.stack(cols, axis=3)
    return p.reshape(B * oh * ow, kh * kw * C), oh, ow


# ----------------------------------------------------------------------------
# Parameter construction (deterministic, PyTorch-like shapes)
# ----------------------------------------------------------------------------
def init_params(key, action_size):
    ks = jax.random.split(key, 12)
    p = {}

    def conv_p(kw_, kb_, oc, ic, kh, kwid):
        w = jax.random.normal(kw_, (oc, ic, kh, kwid), jnp.float32) * 0.05
        b = jax.random.normal(kb_, (oc,), jnp.float32) * 0.05
        return w, b

    def bn_p(kg, oc):
        k1, k2, k3 = jax.random.split(kg, 3)
        gamma = 1.0 + 0.1 * jax.random.normal(k1, (oc,), jnp.float32)
        beta = 0.05 * jax.random.normal(k2, (oc,), jnp.float32)
        rmean = 0.05 * jax.random.normal(k3, (oc,), jnp.float32)
        rvar = jnp.ones((oc,), jnp.float32)
        return gamma, beta, rmean, rvar

    p["conv1_w"], p["conv1_b"] = conv_p(ks[0], ks[1], 32, 4, 8, 8)
    p["bn1"] = bn_p(ks[2], 32)
    p["conv2_w"], p["conv2_b"] = conv_p(ks[3], ks[4], 64, 32, 4, 4)
    p["bn2"] = bn_p(ks[5], 64)
    p["conv3_w"], p["conv3_b"] = conv_p(ks[6], ks[7], 64, 64, 3, 3)
    p["bn3"] = bn_p(ks[8], 64)
    p["fc_w"] = jax.random.normal(ks[9], (3136, 512), jnp.float32) * 0.02
    p["fc_b"] = jax.random.normal(ks[10], (512,), jnp.float32) * 0.02
    p["head_w"] = jax.random.normal(ks[11], (512, action_size), jnp.float32) * 0.05
    p["head_b"] = jnp.zeros((action_size,), jnp.float32)
    return p


# ----------------------------------------------------------------------------
# One-time parameter repacking (hoisted out of the per-forward path)
# ----------------------------------------------------------------------------
def prepare_params(params, eps=1e-5):
    """Repack PyTorch-layout params into the kernel layout, ONCE.

    - conv weights -> true-size (KH*KW*IC, OC) GEMM matrices in bf16 (no
      channel padding anywhere: conv GEMMs use K = 256 / 512 / 576 and
      OC = 32 / 64 / 64).
    - conv bias + eval-mode BN folded into per-channel (scale, shift).
    - fc rows permuted from PyTorch NCHW (c,h,w) flatten order to NHWC (h,w,c),
      then zero-padded 3136 -> 3200 rows for a lane-aligned fc input block.
    - head columns padded to 128 (zero weights / zero bias in padded slots).
    """
    def conv_matrix(w_oihw):
        oc, ic, kh, kw = w_oihw.shape
        m = jnp.transpose(w_oihw, (2, 3, 1, 0)).reshape(kh * kw * ic, oc)
        return m.astype(jnp.bfloat16)

    def folded_affine(conv_b, bn):
        gamma, beta, rmean, rvar = bn
        scale = gamma / jnp.sqrt(rvar + eps)
        shift = (conv_b - rmean) * scale + beta
        n = scale.shape[0]
        return (scale.reshape(1, n).astype(jnp.float32),
                shift.reshape(1, n).astype(jnp.float32))

    pk = {}
    pk["w1"] = conv_matrix(params["conv1_w"])                       # (256, 32)
    pk["s1"], pk["t1"] = folded_affine(params["conv1_b"], params["bn1"])
    pk["w2"] = conv_matrix(params["conv2_w"])                       # (512, 64)
    pk["s2"], pk["t2"] = folded_affine(params["conv2_b"], params["bn2"])
    pk["w3"] = conv_matrix(params["conv3_w"])                       # (576, 64)
    pk["s3"], pk["t3"] = folded_affine(params["conv3_b"], params["bn3"])

    # fc rows: (c, h, w) -> (h, w, c) flatten order, then pad to FC_K rows.
    fc_w = params["fc_w"].reshape(64, 7, 7, 512).transpose(1, 2, 0, 3).reshape(3136, 512)
    fc_w = jnp.pad(fc_w, ((0, FC_K - 3136), (0, 0)))
    pk["fc_w"] = fc_w.astype(jnp.bfloat16)
    pk["fc_b"] = params["fc_b"].reshape(1, 512).astype(jnp.float32)

    act = params["head_w"].shape[1]
    assert act <= LANE, f"action_size must be <= {LANE}, got {act}"
    pk["head_w"] = jnp.pad(params["head_w"], ((0, 0), (0, LANE - act))).astype(jnp.bfloat16)
    pk["head_b"] = jnp.pad(params["head_b"], (0, LANE - act)).reshape(1, LANE).astype(jnp.float32)
    return pk


# ----------------------------------------------------------------------------
# Forward pass
# ----------------------------------------------------------------------------
def dqn_forward(packed, x_nchw, *, action_size):
    B = x_nchw.shape[0]
    x = jnp.transpose(x_nchw, (0, 2, 3, 1)).astype(jnp.bfloat16)   # NCHW -> NHWC

    # conv1 (8x8 / s4) + bn1 + relu   -> (B, 20, 20, 32)
    a, oh, ow = im2col(x, 8, 8, 4)                                 # (B*400, 256)
    x = matmul_affine(a, packed["w1"], packed["s1"], packed["t1"],
                      tm_max=4096).reshape(B, oh, ow, 32)

    # conv2 (4x4 / s2) + bn2 + relu   -> (B, 9, 9, 64)
    a, oh, ow = im2col(x, 4, 4, 2)                                 # (B*81, 512)
    x = matmul_affine(a, packed["w2"], packed["s2"], packed["t2"],
                      tm_max=2048).reshape(B, oh, ow, 64)

    # conv3 (3x3 / s1) + bn3 + relu   -> (B*49, 64) in NHWC row order
    a, oh, ow = im2col(x, 3, 3, 1)                                 # (B*49, 576)
    y = matmul_affine(a, packed["w3"], packed["s3"], packed["t3"], tm_max=2048)

    # NHWC flatten is a plain reshape (fc_w rows were pre-permuted to match);
    # zero-pad features 3136 -> 3200 for a lane-aligned fc input block.
    flat = y.reshape(B, oh * ow * 64)                              # (B, 3136)
    flat = jnp.pad(flat, ((0, 0), (0, FC_K - flat.shape[1])))      # (B, 3200)

    # fused fc + relu + head (head columns padded to 128, sliced here once)
    out = fc_head(flat, packed["fc_w"], packed["fc_b"],
                  packed["head_w"], packed["head_b"])              # (B, 128) f32
    return out[:, :action_size]


# ----------------------------------------------------------------------------
# Pure-JAX f32 reference (for a self-contained sanity check)
# ----------------------------------------------------------------------------
def dqn_reference(params, x_nchw, eps=1e-5):
    x = x_nchw.astype(jnp.float32)

    def conv(h, w, stride):
        return jax.lax.conv_general_dilated(
            h, w, window_strides=(stride, stride), padding="VALID",
            dimension_numbers=("NCHW", "OIHW", "NCHW"))

    def bn(y, b, bnp):
        gamma, beta, rmean, rvar = bnp
        y = y + b[None, :, None, None]
        inv = gamma / jnp.sqrt(rvar + eps)
        return (y - rmean[None, :, None, None]) * inv[None, :, None, None] \
            + beta[None, :, None, None]

    x = jax.nn.relu(bn(conv(x, params["conv1_w"], 4), params["conv1_b"], params["bn1"]))
    x = jax.nn.relu(bn(conv(x, params["conv2_w"], 2), params["conv2_b"], params["bn2"]))
    x = jax.nn.relu(bn(conv(x, params["conv3_w"], 1), params["conv3_b"], params["bn3"]))
    x = x.reshape(x.shape[0], -1)
    x = jax.nn.relu(x @ params["fc_w"] + params["fc_b"])
    return x @ params["head_w"] + params["head_b"]


if __name__ == "__main__":
    key = jax.random.PRNGKey(0)
    k_param, k_in = jax.random.split(key)

    action_size = 6
    batch = 2
    # DQN's fc layer requires 3136 = 64*7*7 features -> input spatial must be 84x84.
    x = jax.random.uniform(k_in, (batch, 4, 84, 84), jnp.float32)

    params = init_params(k_param, action_size)
    packed = prepare_params(params)   # one-time repack, outside the jitted forward

    fwd = jax.jit(functools.partial(dqn_forward, action_size=action_size))
    out = fwd(packed, x)
    out = jax.block_until_ready(out)
    assert out.shape == (batch, action_size), out.shape

    ref = dqn_reference(params, x)
    max_err = float(jnp.max(jnp.abs(out - ref)))
    assert jnp.allclose(out, ref, rtol=3e-2, atol=3e-2), max_err

    print("KERNEL_OK")
</pallas_src>

<mosaic_0001>
module attributes {stable_mosaic.version = 11 : i64} {
  func.func @_matmul_affine_kernel(%arg0: i32, %arg1: memref<400x256xbf16, #tpu.memory_space<vmem>>, %arg2: memref<256x32xbf16, #tpu.memory_space<vmem>>, %arg3: memref<1x32xf32, #tpu.memory_space<vmem>>, %arg4: memref<1x32xf32, #tpu.memory_space<vmem>>, %arg5: memref<400x32xbf16, #tpu.memory_space<vmem>>) attributes {dimension_semantics = [#tpu.dimension_semantics<parallel>], iteration_bounds = array<i64: 2>, scalar_prefetch = 0 : i64, scratch_operands = 0 : i64, tpu.core_type = #tpu.core_type<tc>, window_params = [{transform_indices = @transform_0, window_bounds = array<i64: 400, 256>}, {pipeline_mode = #tpu.pipeline_mode<synchronous>, transform_indices = @transform_1, window_bounds = array<i64: 256, 32>}, {pipeline_mode = #tpu.pipeline_mode<synchronous>, transform_indices = @transform_2, window_bounds = array<i64: 1, 32>}, {pipeline_mode = #tpu.pipeline_mode<synchronous>, transform_indices = @transform_3, window_bounds = array<i64: 1, 32>}, {transform_indices = @transform_4, window_bounds = array<i64: 400, 32>}]} {
    %c0 = arith.constant 0 : index
    %c0_0 = arith.constant 0 : index
    %0 = vector.load %arg1[%c0, %c0_0] : memref<400x256xbf16, #tpu.memory_space<vmem>>, vector<400x256xbf16>
    %c0_1 = arith.constant 0 : index
    %c0_2 = arith.constant 0 : index
    %1 = vector.load %arg2[%c0_1, %c0_2] : memref<256x32xbf16, #tpu.memory_space<vmem>>, vector<256x32xbf16>
    %cst = arith.constant dense<0.000000e+00> : vector<400x32xf32>
    %2 = tpu.matmul %0, %1, %cst {dimension_numbers = #tpu.dot_dimension_numbers<[1], [0], [0], [1], [0, 0, 1, 1], [], []>} : vector<400x256xbf16>, vector<256x32xbf16>, vector<400x32xf32> -> vector<400x32xf32>
    %c0_3 = arith.constant 0 : index
    %c0_4 = arith.constant 0 : index
    %3 = vector.load %arg3[%c0_3, %c0_4] : memref<1x32xf32, #tpu.memory_space<vmem>>, vector<1x32xf32>
    %4 = vector.broadcast %3 : vector<1x32xf32> to vector<400x32xf32>
    %5 = arith.mulf %2, %4 : vector<400x32xf32>
    %c0_5 = arith.constant 0 : index
    %c0_6 = arith.constant 0 : index
    %6 = vector.load %arg4[%c0_5, %c0_6] : memref<1x32xf32, #tpu.memory_space<vmem>>, vector<1x32xf32>
    %7 = vector.broadcast %6 : vector<1x32xf32> to vector<400x32xf32>
    %8 = arith.addf %5, %7 : vector<400x32xf32>
    %cst_7 = arith.constant 0.000000e+00 : f32
    %9 = vector.broadcast %cst_7 : f32 to vector<400x32xf32>
    %10 = arith.maximumf %8, %9 : vector<400x32xf32>
    %11 = arith.truncf %10 : vector<400x32xf32> to vector<400x32xbf16>
    %c0_8 = arith.constant 0 : index
    %c0_9 = arith.constant 0 : index
    %12 = vector.load %arg5[%c0_8, %c0_9] : memref<400x32xbf16, #tpu.memory_space<vmem>>, vector<400x32xbf16>
    tpu.vector_store %arg5[%c0_8, %c0_9], %11 {strides = array<i32>} : memref<400x32xbf16, #tpu.memory_space<vmem>>, vector<400x32xbf16>,
    return
  }
  func.func @transform_0(%arg0: i32) -> (i32, i32) {
    %c0_i32 = arith.constant 0 : i32
    %c0_i32_0 = arith.constant 0 : i32
    return %arg0, %c0_i32 : i32, i32
  }
  func.func @transform_1(%arg0: i32) -> (i32, i32) {
    %c0_i32 = arith.constant 0 : i32
    %c0_i32_0 = arith.constant 0 : i32
    %c0_i32_1 = arith.constant 0 : i32
    return %c0_i32, %c0_i32_0 : i32, i32
  }
  func.func @transform_2(%arg0: i32) -> (i32, i32) {
    %c0_i32 = arith.constant 0 : i32
    %c0_i32_0 = arith.constant 0 : i32
    %c0_i32_1 = arith.constant 0 : i32
    return %c0_i32, %c0_i32_0 : i32, i32
  }
  func.func @transform_3(%arg0: i32) -> (i32, i32) {
    %c0_i32 = arith.constant 0 : i32
    %c0_i32_0 = arith.constant 0 : i32
    %c0_i32_1 = arith.constant 0 : i32
    return %c0_i32, %c0_i32_0 : i32, i32
  }
  func.func @transform_4(%arg0: i32) -> (i32, i32) {
    %c0_i32 = arith.constant 0 : i32
    %c0_i32_0 = arith.constant 0 : i32
    return %arg0, %c0_i32 : i32, i32
  }
}

module attributes {stable_mosaic.version = 11 : i64} {
  func.func @_matmul_affine_kernel(%arg0: i32, %arg1: memref<96x512xbf16, #tpu.memory_space<vmem>>, %arg2: memref<512x64xbf16, #tpu.memory_space<vmem>>, %arg3: memref<1x64xf32, #tpu.memory_space<vmem>>, %arg4: memref<1x64xf32, #tpu.memory_space<vmem>>, %arg5: memref<96x64xbf16, #tpu.memory_space<vmem>>) attributes {dimension_semantics = [#tpu.dimension_semantics<parallel>], iteration_bounds = array<i64: 2>, scalar_prefetch = 0 : i64, scratch_operands = 0 : i64, tpu.core_type = #tpu.core_type<tc>, window_params = [{transform_indices = @transform_0, window_bounds = array<i64: 96, 512>}, {pipeline_mode = #tpu.pipeline_mode<synchronous>, transform_indices = @transform_1, window_bounds = array<i64: 512, 64>}, {pipeline_mode = #tpu.pipeline_mode<synchronous>, transform_indices = @transform_2, window_bounds = array<i64: 1, 64>}, {pipeline_mode = #tpu.pipeline_mode<synchronous>, transform_indices = @transform_3, window_bounds = array<i64: 1, 64>}, {transform_indices = @transform_4, window_bounds = array<i64: 96, 64>}]} {
    %c0 = arith.constant 0 : index
    %c0_0 = arith.constant 0 : index
    %0 = vector.load %arg1[%c0, %c0_0] : memref<96x512xbf16, #tpu.memory_space<vmem>>, vector<96x512xbf16>
    %c0_1 = arith.constant 0 : index
    %c0_2 = arith.constant 0 : index
    %1 = vector.load %arg2[%c0_1, %c0_2] : memref<512x64xbf16, #tpu.memory_space<vmem>>, vector<512x64xbf16>
    %cst = arith.constant dense<0.000000e+00> : vector<96x64xf32>
    %2 = tpu.matmul %0, %1, %cst {dimension_numbers = #tpu.dot_dimension_numbers<[1], [0], [0], [1], [0, 0, 1, 1], [], []>} : vector<96x512xbf16>, vector<512x64xbf16>, vector<96x64xf32> -> vector<96x64xf32>
    %c0_3 = arith.constant 0 : index
    %c0_4 = arith.constant 0 : index
    %3 = vector.load %arg3[%c0_3, %c0_4] : memref<1x64xf32, #tpu.memory_space<vmem>>, vector<1x64xf32>
    %4 = vector.broadcast %3 : vector<1x64xf32> to vector<96x64xf32>
    %5 = arith.mulf %2, %4 : vector<96x64xf32>
    %c0_5 = arith.constant 0 : index
    %c0_6 = arith.constant 0 : index
    %6 = vector.load %arg4[%c0_5, %c0_6] : memref<1x64xf32, #tpu.memory_space<vmem>>, vector<1x64xf32>
    %7 = vector.broadcast %6 : vector<1x64xf32> to vector<96x64xf32>
    %8 = arith.addf %5, %7 : vector<96x64xf32>
    %cst_7 = arith.constant 0.000000e+00 : f32
    %9 = vector.broadcast %cst_7 : f32 to vector<96x64xf32>
    %10 = arith.maximumf %8, %9 : vector<96x64xf32>
    %11 = arith.truncf %10 : vector<96x64xf32> to vector<96x64xbf16>
    %c0_8 = arith.constant 0 : index
    %c0_9 = arith.constant 0 : index
    %12 = vector.load %arg5[%c0_8, %c0_9] : memref<96x64xbf16, #tpu.memory_space<vmem>>, vector<96x64xbf16>
    tpu.vector_store %arg5[%c0_8, %c0_9], %11 {strides = array<i32>} : memref<96x64xbf16, #tpu.memory_space<vmem>>, vector<96x64xbf16>,
    return
  }
  func.func @transform_0(%arg0: i32) -> (i32, i32) {
    %c0_i32 = arith.constant 0 : i32
    %c0_i32_0 = arith.constant 0 : i32
    return %arg0, %c0_i32 : i32, i32
  }
  func.func @transform_1(%arg0: i32) -> (i32, i32) {
    %c0_i32 = arith.constant 0 : i32
    %c0_i32_0 = arith.constant 0 : i32
    %c0_i32_1 = arith.constant 0 : i32
    return %c0_i32, %c0_i32_0 : i32, i32
  }
  func.func @transform_2(%arg0: i32) -> (i32, i32) {
    %c0_i32 = arith.constant 0 : i32
    %c0_i32_0 = arith.constant 0 : i32
    %c0_i32_1 = arith.constant 0 : i32
    return %c0_i32, %c0_i32_0 : i32, i32
  }
  func.func @transform_3(%arg0: i32) -> (i32, i32) {
    %c0_i32 = arith.constant 0 : i32
    %c0_i32_0 = arith.constant 0 : i32
    %c0_i32_1 = arith.constant 0 : i32
    return %c0_i32, %c0_i32_0 : i32, i32
  }
  func.func @transform_4(%arg0: i32) -> (i32, i32) {
    %c0_i32 = arith.constant 0 : i32
    %c0_i32_0 = arith.constant 0 : i32
    return %arg0, %c0_i32 : i32, i32
  }
}

module attributes {stable_mosaic.version = 11 : i64} {
  func.func @_matmul_affine_kernel(%arg0: i32, %arg1: memref<64x576xbf16, #tpu.memory_space<vmem>>, %arg2: memref<576x64xbf16, #tpu.memory_space<vmem>>, %arg3: memref<1x64xf32, #tpu.memory_space<vmem>>, %arg4: memref<1x64xf32, #tpu.memory_space<vmem>>, %arg5: memref<64x64xbf16, #tpu.memory_space<vmem>>) attributes {dimension_semantics = [#tpu.dimension_semantics<parallel>], iteration_bounds = array<i64: 2>, scalar_prefetch = 0 : i64, scratch_operands = 0 : i64, tpu.core_type = #tpu.core_type<tc>, window_params = [{transform_indices = @transform_0, window_bounds = array<i64: 64, 576>}, {pipeline_mode = #tpu.pipeline_mode<synchronous>, transform_indices = @transform_1, window_bounds = array<i64: 576, 64>}, {pipeline_mode = #tpu.pipeline_mode<synchronous>, transform_indices = @transform_2, window_bounds = array<i64: 1, 64>}, {pipeline_mode = #tpu.pipeline_mode<synchronous>, transform_indices = @transform_3, window_bounds = array<i64: 1, 64>}, {transform_indices = @transform_4, window_bounds = array<i64: 64, 64>}]} {
    %c0 = arith.constant 0 : index
    %c0_0 = arith.constant 0 : index
    %0 = vector.load %arg1[%c0, %c0_0] : memref<64x576xbf16, #tpu.memory_space<vmem>>, vector<64x576xbf16>
    %c0_1 = arith.constant 0 : index
    %c0_2 = arith.constant 0 : index
    %1 = vector.load %arg2[%c0_1, %c0_2] : memref<576x64xbf16, #tpu.memory_space<vmem>>, vector<576x64xbf16>
    %cst = arith.constant dense<0.000000e+00> : vector<64x64xf32>
    %2 = tpu.matmul %0, %1, %cst {dimension_numbers = #tpu.dot_dimension_numbers<[1], [0], [0], [1], [0, 0, 1, 1], [], []>} : vector<64x576xbf16>, vector<576x64xbf16>, vector<64x64xf32> -> vector<64x64xf32>
    %c0_3 = arith.constant 0 : index
    %c0_4 = arith.constant 0 : index
    %3 = vector.load %arg3[%c0_3, %c0_4] : memref<1x64xf32, #tpu.memory_space<vmem>>, vector<1x64xf32>
    %4 = vector.broadcast %3 : vector<1x64xf32> to vector<64x64xf32>
    %5 = arith.mulf %2, %4 : vector<64x64xf32>
    %c0_5 = arith.constant 0 : index
    %c0_6 = arith.constant 0 : index
    %6 = vector.load %arg4[%c0_5, %c0_6] : memref<1x64xf32, #tpu.memory_space<vmem>>, vector<1x64xf32>
    %7 = vector.broadcast %6 : vector<1x64xf32> to vector<64x64xf32>
    %8 = arith.addf %5, %7 : vector<64x64xf32>
    %cst_7 = arith.constant 0.000000e+00 : f32
    %9 = vector.broadcast %cst_7 : f32 to vector<64x64xf32>
    %10 = arith.maximumf %8, %9 : vector<64x64xf32>
    %11 = arith.truncf %10 : vector<64x64xf32> to vector<64x64xbf16>
    %c0_8 = arith.constant 0 : index
    %c0_9 = arith.constant 0 : index
    %12 = vector.load %arg5[%c0_8, %c0_9] : memref<64x64xbf16, #tpu.memory_space<vmem>>, vector<64x64xbf16>
    tpu.vector_store %arg5[%c0_8, %c0_9], %11 {strides = array<i32>} : memref<64x64xbf16, #tpu.memory_space<vmem>>, vector<64x64xbf16>,
    return
  }
  func.func @transform_0(%arg0: i32) -> (i32, i32) {
    %c0_i32 = arith.constant 0 : i32
    %c0_i32_0 = arith.constant 0 : i32
    return %arg0, %c0_i32 : i32, i32
  }
  func.func @transform_1(%arg0: i32) -> (i32, i32) {
    %c0_i32 = arith.constant 0 : i32
    %c0_i32_0 = arith.constant 0 : i32
    %c0_i32_1 = arith.constant 0 : i32
    return %c0_i32, %c0_i32_0 : i32, i32
  }
  func.func @transform_2(%arg0: i32) -> (i32, i32) {
    %c0_i32 = arith.constant 0 : i32
    %c0_i32_0 = arith.constant 0 : i32
    %c0_i32_1 = arith.constant 0 : i32
    return %c0_i32, %c0_i32_0 : i32, i32
  }
  func.func @transform_3(%arg0: i32) -> (i32, i32) {
    %c0_i32 = arith.constant 0 : i32
    %c0_i32_0 = arith.constant 0 : i32
    %c0_i32_1 = arith.constant 0 : i32
    return %c0_i32, %c0_i32_0 : i32, i32
  }
  func.func @transform_4(%arg0: i32) -> (i32, i32) {
    %c0_i32 = arith.constant 0 : i32
    %c0_i32_0 = arith.constant 0 : i32
    return %arg0, %c0_i32 : i32, i32
  }
}

module attributes {stable_mosaic.version = 11 : i64} {
  func.func @_fc_head_kernel(%arg0: i32, %arg1: i32, %arg2: memref<16x3200xbf16, #tpu.memory_space<vmem>>, %arg3: memref<3200x256xbf16, #tpu.memory_space<vmem>>, %arg4: memref<1x256xf32, #tpu.memory_space<vmem>>, %arg5: memref<256x128xbf16, #tpu.memory_space<vmem>>, %arg6: memref<1x16x128xf32, #tpu.memory_space<vmem>>) attributes {dimension_semantics = [#tpu.dimension_semantics<parallel>, #tpu.dimension_semantics<parallel>], iteration_bounds = array<i64: 1, 2>, scalar_prefetch = 0 : i64, scratch_operands = 0 : i64, tpu.core_type = #tpu.core_type<tc>, window_params = [{transform_indices = @transform_0, window_bounds = array<i64: 16, 3200>}, {transform_indices = @transform_1, window_bounds = array<i64: 3200, 256>}, {transform_indices = @transform_2, window_bounds = array<i64: 1, 256>}, {transform_indices = @transform_3, window_bounds = array<i64: 256, 128>}, {transform_indices = @transform_4, window_bounds = array<i64: 1, 16, 128>}]} {
    %c0 = arith.constant 0 : index
    %c0_0 = arith.constant 0 : index
    %0 = vector.load %arg2[%c0, %c0_0] : memref<16x3200xbf16, #tpu.memory_space<vmem>>, vector<16x3200xbf16>
    %c0_1 = arith.constant 0 : index
    %c0_2 = arith.constant 0 : index
    %1 = vector.load %arg3[%c0_1, %c0_2] : memref<3200x256xbf16, #tpu.memory_space<vmem>>, vector<3200x256xbf16>
    %cst = arith.constant dense<0.000000e+00> : vector<16x256xf32>
    %2 = tpu.matmul %0, %1, %cst {dimension_numbers = #tpu.dot_dimension_numbers<[1], [0], [0], [1], [0, 0, 1, 1], [], []>} : vector<16x3200xbf16>, vector<3200x256xbf16>, vector<16x256xf32> -> vector<16x256xf32>
    %c0_3 = arith.constant 0 : index
    %c0_4 = arith.constant 0 : index
    %3 = vector.load %arg4[%c0_3, %c0_4] : memref<1x256xf32, #tpu.memory_space<vmem>>, vector<1x256xf32>
    %4 = vector.broadcast %3 : vector<1x256xf32> to vector<16x256xf32>
    %5 = arith.addf %2, %4 : vector<16x256xf32>
    %cst_5 = arith.constant 0.000000e+00 : f32
    %6 = vector.broadcast %cst_5 : f32 to vector<16x256xf32>
    %7 = arith.maximumf %5, %6 : vector<16x256xf32>
    %8 = arith.truncf %7 : vector<16x256xf32> to vector<16x256xbf16>
    %c0_6 = arith.constant 0 : index
    %c0_7 = arith.constant 0 : index
    %9 = vector.load %arg5[%c0_6, %c0_7] : memref<256x128xbf16, #tpu.memory_space<vmem>>, vector<256x128xbf16>
    %cst_8 = arith.constant dense<0.000000e+00> : vector<16x128xf32>
    %10 = tpu.matmul %8, %9, %cst_8 {dimension_numbers = #tpu.dot_dimension_numbers<[1], [0], [0], [1], [0, 0, 1, 1], [], []>} : vector<16x256xbf16>, vector<256x128xbf16>, vector<16x128xf32> -> vector<16x128xf32>
    %c0_9 = arith.constant 0 : index
    %c0_10 = arith.constant 0 : index
    %c0_11 = arith.constant 0 : index
    %11 = vector.load %arg6[%c0_9, %c0_10, %c0_11] : memref<1x16x128xf32, #tpu.memory_space<vmem>>, vector<1x16x128xf32>
    %12 = vector.shape_cast %11 : vector<1x16x128xf32> to vector<16x128xf32>
    %13 = vector.shape_cast %10 : vector<16x128xf32> to vector<1x16x128xf32>
    tpu.vector_store %arg6[%c0_9, %c0_10, %c0_11], %13 {strides = array<i32>} : memref<1x16x128xf32, #tpu.memory_space<vmem>>, vector<1x16x128xf32>,
    return
  }
  func.func @transform_0(%arg0: i32, %arg1: i32) -> (i32, i32) {
    %c0_i32 = arith.constant 0 : i32
    %c0_i32_0 = arith.constant 0 : i32
    return %arg0, %c0_i32 : i32, i32
  }
  func.func @transform_1(%arg0: i32, %arg1: i32) -> (i32, i32) {
    %c0_i32 = arith.constant 0 : i32
    %c0_i32_0 = arith.constant 0 : i32
    return %c0_i32, %arg1 : i32, i32
  }
  func.func @transform_2(%arg0: i32, %arg1: i32) -> (i32, i32) {
    %c0_i32 = arith.constant 0 : i32
    %c0_i32_0 = arith.constant 0 : i32
    return %c0_i32, %arg1 : i32, i32
  }
  func.func @transform_3(%arg0: i32, %arg1: i32) -> (i32, i32) {
    %c0_i32 = arith.constant 0 : i32
    %c0_i32_0 = arith.constant 0 : i32
    return %arg1, %c0_i32 : i32, i32
  }
  func.func @transform_4(%arg0: i32, %arg1: i32) -> (i32, i32, i32) {
    %c0_i32 = arith.constant 0 : i32
    %c0_i32_0 = arith.constant 0 : i32
    return %arg1, %arg0, %c0_i32 : i32, i32, i32
  }
}

</mosaic_0001>

<bundles_post_ra>
// kernel: dqn_forward.4
= control target key start
LH: loop header
LB: loop body
LE: loop exit
PB: predicated region body
PF: predicated region fallthrough
CT: control target
= control target key end

     0   :  { %s1682_s15 = smov 0   ;;  %s2047_s0 = inlined_call_operand.vmem [shape: bf16[800,256], index: 0, kind: input, shape index: {}]   ;;  %s2048_s1 = inlined_call_operand.vmem [shape: bf16[256,32], index: 1, kind: input, shape index: {}]   ;;  %s2049_s2 = inlined_call_operand.vmem [shape: f32[1,32], index: 2, kind: input, shape index: {}]   ;;  %s2050_s3 = inlined_call_operand.vmem [shape: f32[1,32], index: 3, kind: input, shape index: {}]   ;;  %s2051_s4 = inlined_call_operand.vmem [shape: bf16[800,32], index: 4, kind: output, shape index: {}]  }
   0x1 LB: > { %s1337_s16 = sadd.s32 4294967295, %s1654_s15   ;;  %p1341_p0 = scmp.ge.s32.totalorder %s1654_s15, 1  ;;  %s1654_s15 = sphi %s1682_s15, %s14_s15  }
   0x2   : > { %p164_p1 = scmp.lt.s32.totalorder %s1654_s15, 3 }
   0x4   : > { %p165_p2 = pnand %p1341_p0, %p164_p1 }
   0x5   : > { %v1557_v0 = vld [vmem:[%s2048_s1] sm:$0xff] (!%p165_p2)   ;;  %v1656_v1 = vmov (!%p165_p2), 0   ;;  %s191_s19 = smul.u32 (!%p165_p2), 50, %s1337_s16  ;;  %v1558_v2 = vld [vmem:[%s2048_s1 + $0x8] sm:$0xff] (!%p165_p2)   ;;  %v1559_v3 = vld [vmem:[%s2048_s1 + $0x10] sm:$0xff] (!%p165_p2)   ;;  %vm1230_vm0 = vcmask (!%p165_p2), 257024  }
   0x6   : > { %168 = sbr.rel (%p165_p2) target bundleno = 389 (0x185), region = 36  ;;  %633 = vmatprep.subr.bf16.mxu0 (!%p165_p2), %v1656_v1  ;;  %1516 = vmatprep.subr.bf16.mxu1 (!%p165_p2), %v1656_v1  ;;  %v1560_v4 = vld [vmem:[%s2048_s1 + $0x18] sm:$0xff] (!%p165_p2)   ;;  %v1561_v5 = vld [vmem:[%s2048_s1 + $0x20] sm:$0xff] (!%p165_p2)   ;;  %v1562_v7 = vld [vmem:[%s2048_s1 + $0x28] sm:$0xff] (!%p165_p2)  }
   0x7   : > { %634 = vmatpush1.bf16.msra.mxu0 (!%p165_p2), %v1557_v0  ;;  %1532 = vmatpush1.bf16.msra.mxu1 (!%p165_p2), %v1557_v0  ;;  %p192_p3 = scmp.lt.s32.totalorder (!%p165_p2), %s191_s19, 99  ;;  %v1563_v9 = vld [vmem:[%s2048_s1 + $0x30] sm:$0xff] (!%p165_p2)   ;;  %v1564_v10 = vld [vmem:[%s2048_s1 + $0x38] sm:$0xff] (!%p165_p2)   ;;  %v1565_v11 = vld [vmem:[%s2048_s1 + $0x40] sm:$0xff] (!%p165_p2)  }
   0x8   : > { %635 = vmatprep.subr.bf16.mxu0 (!%p165_p2), %v1656_v1  ;;  %1517 = vmatprep.subr.bf16.mxu1 (!%p165_p2), %v1656_v1  ;;  %v1566_v12 = vld [vmem:[%s2048_s1 + $0x48] sm:$0xff] (!%p165_p2)   ;;  %v1567_v13 = vld [vmem:[%s2048_s1 + $0x50] sm:$0xff] (!%p165_p2)   ;;  %v1568_v14 = vld [vmem:[%s2048_s1 + $0x58] sm:$0xff] (!%p165_p2)  }
   0x9   : > { %v1569_v15 = vld [vmem:[%s2048_s1 + $0x60] sm:$0xff] (!%p165_p2)   ;;  %v1570_v16 = vld [vmem:[%s2048_s1 + $0x68] sm:$0xff] (!%p165_p2)   ;;  %v1571_v17 = vld [vmem:[%s2048_s1 + $0x70] sm:$0xff] (!%p165_p2)  }
   0xa   : > { %v1572_v18 = vld [vmem:[%s2048_s1 + $0x78] sm:$0xff] (!%p165_p2)  }
   0xb   : > { %636 = vmatpush1.bf16.msra.mxu0 (!%p165_p2), %v1558_v2  ;;  %1533 = vmatpush1.bf16.msra.mxu1 (!%p165_p2), %v1558_v2 }
   0xc   : > { %637 = vmatprep.subr.bf16.mxu0 (!%p165_p2), %v1656_v1  ;;  %1518 = vmatprep.subr.bf16.mxu1 (!%p165_p2), %v1656_v1 }
   0xd   : > { %s2053_s19 = smov (!%p192_p3, %s191_s19), 99 }
   0xe   : > { %s1465_s26 = sshll.u32 %s2053_s19, 3 }
   0xf   : > { %638 = vmatpush1.bf16.msra.mxu0 %v1559_v3  ;;  %1534 = vmatpush1.bf16.msra.mxu1 %v1559_v3  ;;  %s1719_s5 = scalar_lea.vmem %s2047_s0, %s1465_s26  ;;  %v1831_v3 = vld [vmem:[%s2049_s2] ss:$0 sm:$0xff] }
  0x10   : > { %639 = vmatprep.subr.bf16.mxu0 %v1656_v1  ;;  %1519 = vmatprep.subr.bf16.mxu1 %v1656_v1  ;;  %v1575_v6 = vld [vmem:[%s1719_s5 + $0x4] ss:$8 sps:$4 sm:$0xff]   ;;  %v1578_v8 = vld [vmem:[%s1719_s5 + $0xd4] ss:$8 sps:$4 sm:$0xff]   ;;  %v1573_v19 = vld [vmem:[%s1719_s5] ss:$8 sps:$4 sm:$0xff]  }
  0x11   : > { %665 = vmatprep.mubr.bf16.mxu0 %v1575_v6  ;;  %769 = vmatprep.mubr.bf16.mxu1 %v1578_v8  ;;  %v1576_v20 = vld [vmem:[%s1719_s5 + $0xd0] ss:$8 sps:$4 sm:$0xff]   ;;  %v1579_v21 = vld [vmem:[%s1719_s5 + $0x14] ss:$8 sps:$4 sm:$0xff]   ;;  %v1582_v22 = vld [vmem:[%s1719_s5 + $0xe4] ss:$8 sps:$4 sm:$0xff]  }
  0x12   : > { %v1581_v23 = vld [vmem:[%s1719_s5 + $0x10] ss:$8 sps:$4 sm:$0xff]   ;;  %v1584_v24 = vld [vmem:[%s1719_s5 + $0xe0] ss:$8 sps:$4 sm:$0xff]   ;;  %v1585_v25 = vld [vmem:[%s1719_s5 + $0x24] ss:$8 sps:$4 sm:$0xff]  }
  0x13   : > { %640 = vmatpush1.bf16.msra.mxu0 %v1560_v4  ;;  %1535 = vmatpush1.bf16.msra.mxu1 %v1560_v4  ;;  %v1588_v26 = vld [vmem:[%s1719_s5 + $0xf4] ss:$8 sps:$4 sm:$0xff]   ;;  %v1587_v27 = vld [vmem:[%s1719_s5 + $0x20] ss:$8 sps:$4 sm:$0xff]   ;;  %v1590_v28 = vld [vmem:[%s1719_s5 + $0xf0] ss:$8 sps:$4 sm:$0xff]  }
  0x14   : > { %641 = vmatprep.subr.bf16.mxu0 %v1656_v1  ;;  %1520 = vmatprep.subr.bf16.mxu1 %v1656_v1  ;;  %v1591_v29 = vld [vmem:[%s1719_s5 + $0x34] ss:$8 sps:$4 sm:$0xff]   ;;  %v1594_v30 = vld [vmem:[%s1719_s5 + $0x104] ss:$8 sps:$4 sm:$0xff]   ;;  %v1593_v31 = vld [vmem:[%s1719_s5 + $0x30] ss:$8 sps:$4 sm:$0xff]  }
  0x15   : > { %v1596_v32 = vld [vmem:[%s1719_s5 + $0x100] ss:$8 sps:$4 sm:$0xff]   ;;  %v1597_v33 = vld [vmem:[%s1719_s5 + $0x44] ss:$8 sps:$4 sm:$0xff]   ;;  %v1600_v34 = vld [vmem:[%s1719_s5 + $0x114] ss:$8 sps:$4 sm:$0xff]  }
  0x16   : > { %v1599_v35 = vld [vmem:[%s1719_s5 + $0x40] ss:$8 sps:$4 sm:$0xff]   ;;  %v1602_v36 = vld [vmem:[%s1719_s5 + $0x110] ss:$8 sps:$4 sm:$0xff]   ;;  %v1603_v37 = vld [vmem:[%s1719_s5 + $0x54] ss:$8 sps:$4 sm:$0xff]  }
  0x17   : > { %642 = vmatpush1.bf16.msra.mxu0 %v1561_v5  ;;  %1536 = vmatpush1.bf16.msra.mxu1 %v1561_v5  ;;  %v1606_v38 = vld [vmem:[%s1719_s5 + $0x124] ss:$8 sps:$4 sm:$0xff]   ;;  %v1605_v39 = vld [vmem:[%s1719_s5 + $0x50] ss:$8 sps:$4 sm:$0xff]   ;;  %v1608_v40 = vld [vmem:[%s1719_s5 + $0x120] ss:$8 sps:$4 sm:$0xff]  }
  0x18   : > { %643 = vmatprep.subr.bf16.mxu0 %v1656_v1  ;;  %1521 = vmatprep.subr.bf16.mxu1 %v1656_v1  ;;  %v1609_v41 = vld [vmem:[%s1719_s5 + $0x64] ss:$8 sps:$4 sm:$0xff]   ;;  %v1612_v42 = vld [vmem:[%s1719_s5 + $0x134] ss:$8 sps:$4 sm:$0xff]   ;;  %v1611_v43 = vld [vmem:[%s1719_s5 + $0x60] ss:$8 sps:$4 sm:$0xff]  }
  0x19   : > { %v1614_v44 = vld [vmem:[%s1719_s5 + $0x130] ss:$8 sps:$4 sm:$0xff]   ;;  %v1615_v45 = vld [vmem:[%s1719_s5 + $0x74] ss:$8 sps:$4 sm:$0xff]   ;;  %v1618_v46 = vld [vmem:[%s1719_s5 + $0x144] ss:$8 sps:$4 sm:$0xff]  }
  0x1a   : > { %v1617_v47 = vld [vmem:[%s1719_s5 + $0x70] ss:$8 sps:$4 sm:$0xff]   ;;  %v1620_v48 = vld [vmem:[%s1719_s5 + $0x140] ss:$8 sps:$4 sm:$0xff]   ;;  %v1621_v49 = vld [vmem:[%s1719_s5 + $0x84] ss:$8 sps:$4 sm:$0xff]  }
  0x1b   : > { %644 = vmatpush1.bf16.msra.mxu0 %v1562_v7  ;;  %1537 = vmatpush1.bf16.msra.mxu1 %v1562_v7  ;;  %v1624_v50 = vld [vmem:[%s1719_s5 + $0x154] ss:$8 sps:$4 sm:$0xff]   ;;  %v1623_v51 = vld [vmem:[%s1719_s5 + $0x80] ss:$8 sps:$4 sm:$0xff]   ;;  %v1626_v52 = vld [vmem:[%s1719_s5 + $0x150] ss:$8 sps:$4 sm:$0xff]  }
  0x1c   : > { %645 = vmatprep.subr.bf16.mxu0 %v1656_v1  ;;  %1522 = vmatprep.subr.bf16.mxu1 %v1656_v1  ;;  %v1627_v53 = vld [vmem:[%s1719_s5 + $0x94] ss:$8 sps:$4 sm:$0xff]   ;;  %v1630_v54 = vld [vmem:[%s1719_s5 + $0x164] ss:$8 sps:$4 sm:$0xff]   ;;  %v1629_v55 = vld [vmem:[%s1719_s5 + $0x90] ss:$8 sps:$4 sm:$0xff]  }
  0x1d   : > { %v1632_v56 = vld [vmem:[%s1719_s5 + $0x160] ss:$8 sps:$4 sm:$0xff]   ;;  %v1633_v57 = vld [vmem:[%s1719_s5 + $0xa4] ss:$8 sps:$4 sm:$0xff]   ;;  %v1636_v58 = vld [vmem:[%s1719_s5 + $0x174] ss:$8 sps:$4 sm:$0xff]  }
  0x1e   : > { %v1635_v59 = vld [vmem:[%s1719_s5 + $0xa0] ss:$8 sps:$4 sm:$0xff]   ;;  %v1638_v60 = vld [vmem:[%s1719_s5 + $0x170] ss:$8 sps:$4 sm:$0xff]   ;;  %v1639_v61 = vld [vmem:[%s1719_s5 + $0xb4] ss:$8 sps:$4 sm:$0xff]  }
  0x1f   : > { %646 = vmatpush1.bf16.msra.mxu0 %v1563_v9  ;;  %1538 = vmatpush1.bf16.msra.mxu1 %v1563_v9  ;;  %v1642_v62 = vld [vmem:[%s1719_s5 + $0x184] ss:$8 sps:$4 sm:$0xff]   ;;  %v1641_v63 = vld [vmem:[%s1719_s5 + $0xb0] ss:$8 sps:$4 sm:$0xff]   ;;  %v1644_v0 = vld [vmem:[%s1719_s5 + $0x180] ss:$8 sps:$4 sm:$0xff]  }
  0x20   : > { %647 = vmatprep.subr.bf16.mxu0 %v1656_v1  ;;  %1523 = vmatprep.subr.bf16.mxu1 %v1656_v1  ;;  %v1647_v2 = vld [vmem:[%s1719_s5 + $0xc0] ss:$8 sps:$4 sm:$0xff]  }
  0x21   : > { %v1836_v5 = vld [vmem:[%s2050_s3] ss:$0 sm:$0xff] }
  0x23   : > { %648 = vmatpush1.bf16.msra.mxu0 %v1564_v10  ;;  %1539 = vmatpush1.bf16.msra.mxu1 %v1564_v10 }
  0x24   : > { %649 = vmatprep.subr.bf16.mxu0 %v1656_v1  ;;  %1524 = vmatprep.subr.bf16.mxu1 %v1656_v1 }
  0x27   : > { %650 = vmatpush1.bf16.msra.mxu0 %v1565_v11  ;;  %1540 = vmatpush1.bf16.msra.mxu1 %v1565_v11 }
  0x28   : > { %651 = vmatprep.subr.bf16.mxu0 %v1656_v1  ;;  %1525 = vmatprep.subr.bf16.mxu1 %v1656_v1 }
  0x2b   : > { %652 = vmatpush1.bf16.msra.mxu0 %v1566_v12  ;;  %1541 = vmatpush1.bf16.msra.mxu1 %v1566_v12 }
  0x2c   : > { %653 = vmatprep.subr.bf16.mxu0 %v1656_v1  ;;  %1526 = vmatprep.subr.bf16.mxu1 %v1656_v1 }
  0x2f   : > { %654 = vmatpush1.bf16.msra.mxu0 %v1567_v13  ;;  %1542 = vmatpush1.bf16.msra.mxu1 %v1567_v13 }
  0x30   : > { %655 = vmatprep.subr.bf16.mxu0 %v1656_v1  ;;  %1527 = vmatprep.subr.bf16.mxu1 %v1656_v1 }
  0x33   : > { %656 = vmatpush1.bf16.msra.mxu0 %v1568_v14  ;;  %1543 = vmatpush1.bf16.msra.mxu1 %v1568_v14 }
  0x34   : > { %657 = vmatprep.subr.bf16.mxu0 %v1656_v1  ;;  %1528 = vmatprep.subr.bf16.mxu1 %v1656_v1 }
  0x37   : > { %658 = vmatpush1.bf16.msra.mxu0 %v1569_v15  ;;  %1544 = vmatpush1.bf16.msra.mxu1 %v1569_v15 }
  0x38   : > { %659 = vmatprep.subr.bf16.mxu0 %v1656_v1  ;;  %1529 = vmatprep.subr.bf16.mxu1 %v1656_v1 }
  0x3b   : > { %660 = vmatpush1.bf16.msra.mxu0 %v1570_v16  ;;  %1545 = vmatpush1.bf16.msra.mxu1 %v1570_v16 }
  0x3c   : > { %661 = vmatprep.subr.bf16.mxu0 %v1656_v1  ;;  %1530 = vmatprep.subr.bf16.mxu1 %v1656_v1 }
  0x3f   : > { %662 = vmatpush1.bf16.msra.mxu0 %v1571_v17  ;;  %1546 = vmatpush1.bf16.msra.mxu1 %v1571_v17 }
  0x40   : > { %663 = vmatprep.subr.bf16.mxu0 %v1656_v1  ;;  %1531 = vmatprep.subr.bf16.mxu1 %v1656_v1  ;;  %v1645_v1 = vld [vmem:[%s1719_s5 + $0xc4] ss:$8 sps:$4 sm:$0xff]   ;;  %s1344_s5 = sshll.u32 %s2053_s19, 2 }
  0x41   : > { %s1850_s19 = scalar_lea.vmem %s2051_s4, %s1344_s5 }
  0x43   : > { %664 = vmatpush1.bf16.msra.mxu0 %v1572_v18  ;;  %1547 = vmatpush1.bf16.msra.mxu1 %v1572_v18 }
  0x46   : > { %666 = vmatmul.mubr.bf16.vlgmr.msra.gmra.mrb[0].mxu0 %v1573_v19  ;;  %770 = vmatmul.mubr.bf16.vlgmr.msra.gmra.mrb[0].mxu1 %v1576_v20 }
  0x47   : > { %673 = vmatprep.mubr.bf16.mxu0 %v1579_v21  ;;  %777 = vmatprep.mubr.bf16.mxu1 %v1582_v22 }
  0x4e   : > { %674 = vmatmul.mubr.bf16.gmra.mrb[4].mxu0 %v1581_v23  ;;  %778 = vmatmul.mubr.bf16.gmra.mrb[4].mxu1 %v1584_v24 }
  0x4f   : > { %681 = vmatprep.mubr.bf16.mxu0 %v1585_v25  ;;  %785 = vmatprep.mubr.bf16.mxu1 %v1588_v26 }
  0x56   : > { %682 = vmatmul.mubr.bf16.gmra.mrb[8].mxu0 %v1587_v27  ;;  %786 = vmatmul.mubr.bf16.gmra.mrb[8].mxu1 %v1590_v28 }
  0x57   : > { %689 = vmatprep.mubr.bf16.mxu0 %v1591_v29  ;;  %793 = vmatprep.mubr.bf16.mxu1 %v1594_v30 }
  0x5e   : > { %690 = vmatmul.mubr.bf16.gmra.mrb[12].mxu0 %v1593_v31  ;;  %794 = vmatmul.mubr.bf16.gmra.mrb[12].mxu1 %v1596_v32 }
  0x5f   : > { %697 = vmatprep.mubr.bf16.mxu0 %v1597_v33  ;;  %801 = vmatprep.mubr.bf16.mxu1 %v1600_v34 }
  0x66   : > { %698 = vmatmul.mubr.bf16.gmra.mrb[16].mxu0 %v1599_v35  ;;  %802 = vmatmul.mubr.bf16.gmra.mrb[16].mxu1 %v1602_v36 }
  0x67   : > { %705 = vmatprep.mubr.bf16.mxu0 %v1603_v37  ;;  %809 = vmatprep.mubr.bf16.mxu1 %v1606_v38 }
  0x6e   : > { %706 = vmatmul.mubr.bf16.gmra.mrb[20].mxu0 %v1605_v39  ;;  %810 = vmatmul.mubr.bf16.gmra.mrb[20].mxu1 %v1608_v40 }
  0x6f   : > { %713 = vmatprep.mubr.bf16.mxu0 %v1609_v41  ;;  %817 = vmatprep.mubr.bf16.mxu1 %v1612_v42 }
  0x76   : > { %714 = vmatmul.mubr.bf16.gmra.mrb[24].mxu0 %v1611_v43  ;;  %818 = vmatmul.mubr.bf16.gmra.mrb[24].mxu1 %v1614_v44 }
  0x77   : > { %721 = vmatprep.mubr.bf16.mxu0 %v1615_v45  ;;  %825 = vmatprep.mubr.bf16.mxu1 %v1618_v46 }
  0x7e   : > { %722 = vmatmul.mubr.bf16.gmra.mrb[28].mxu0 %v1617_v47  ;;  %826 = vmatmul.mubr.bf16.gmra.mrb[28].mxu1 %v1620_v48 }
  0x7f   : > { %729 = vmatprep.mubr.bf16.mxu0 %v1621_v49  ;;  %833 = vmatprep.mubr.bf16.mxu1 %v1624_v50 }
  0x86   : > { %730 = vmatmul.mubr.bf16.gmra.mrb[32].mxu0 %v1623_v51  ;;  %834 = vmatmul.mubr.bf16.gmra.mrb[32].mxu1 %v1626_v52 }
  0x87   : > { %737 = vmatprep.mubr.bf16.mxu0 %v1627_v53  ;;  %841 = vmatprep.mubr.bf16.mxu1 %v1630_v54 }
  0x8e   : > { %738 = vmatmul.mubr.bf16.gmra.mrb[36].mxu0 %v1629_v55  ;;  %842 = vmatmul.mubr.bf16.gmra.mrb[36].mxu1 %v1632_v56 }
  0x8f   : > { %745 = vmatprep.mubr.bf16.mxu0 %v1633_v57  ;;  %849 = vmatprep.mubr.bf16.mxu1 %v1636_v58 }
  0x96   : > { %746 = vmatmul.mubr.bf16.gmra.mrb[40].mxu0 %v1635_v59  ;;  %850 = vmatmul.mubr.bf16.gmra.mrb[40].mxu1 %v1638_v60 }
  0x97   : > { %753 = vmatprep.mubr.bf16.mxu0 %v1639_v61  ;;  %857 = vmatprep.mubr.bf16.mxu1 %v1642_v62 }
  0x9e   : > { %754 = vmatmul.mubr.bf16.gmra.mrb[44].mxu0 %v1641_v63  ;;  %858 = vmatmul.mubr.bf16.gmra.mrb[44].mxu1 %v1644_v0 }
  0x9f   : > { %761 = vmatprep.mubr.bf16.mxu0 %v1645_v1 }
  0xa6   : > { %762 = vmatmul.mubr.bf16.gmra.mrb[48].mxu0 %v1647_v2 }
 0x119   : > { %v667_v4 = vpop.f32.mrb[0].mxu0  ;;  %v771_v6 = vpop.f32.mrb[0].mxu1 }
 0x11a   : > { %v873_v7 = vmul.f32 %v1831_v3, %v667_v4  ;;  %v669_v8 = vpop.f32.mrb[1].mxu0  ;;  %v899_v9 = vmul.f32 %v1831_v3, %v771_v6  ;;  %v773_v10 = vpop.f32.mrb[1].mxu1 }
 0x11b   : > { %v670_v11 = vpop.f32.mrb[2].mxu0  ;;  %v774_v12 = vpop.f32.mrb[2].mxu1 }
 0x11c   : > { %v930_v13 = vadd.f32 %v1836_v5, %v873_v7  ;;  %v874_v14 = vmul.f32 %v1831_v3, %v670_v11  ;;  %v672_v15 = vpop.f32.mrb[3].mxu0  ;;  %v956_v16 = vadd.f32 %v1836_v5, %v899_v9  ;;  %v900_v17 = vmul.f32 %v1831_v3, %v774_v12  ;;  %v776_v18 = vpop.f32.mrb[3].mxu1 }
 0x11e   : > { %v980_v19 = vmax.f32 %v930_v13, 0.0  ;;  %v931_v20 = vadd.f32 %v1836_v5, %v874_v14  ;;  %v1006_v21 = vmax.f32 %v956_v16, 0.0  ;;  %v957_v22 = vadd.f32 %v1836_v5, %v900_v17 }
 0x120   : > { %v1466_v23 = vpack.c.bf16 %v980_v19, %v980_v19  ;;  %v981_v24 = vmax.f32 %v931_v20, 0.0  ;;  %v1492_v25 = vpack.c.bf16 %v1006_v21, %v1006_v21  ;;  %v1007_v26 = vmax.f32 %v957_v22, 0.0 }
 0x121   : > { %v675_v27 = vpop.f32.mrb[4].mxu0  ;;  %v779_v28 = vpop.f32.mrb[4].mxu1 }
 0x122   : > { %1231 = vst.msk [vmem:[%s1850_s19] sm:$0xf] %vm1230_vm0, %v1466_v23  ;;  %v1467_v29 = vpack.c.bf16 %v981_v24, %v981_v24  ;;  %1257 = vst.msk [vmem:[%s1850_s19 + $0x68] sm:$0xf] %vm1230_vm0, %v1492_v25  ;;  %v1493_v30 = vpack.c.bf16 %v1007_v26, %v1007_v26  ;;  %v875_v31 = vmul.f32 %v1831_v3, %v675_v27  ;;  %v677_v32 = vpop.f32.mrb[5].mxu0  ;;  %v781_v34 = vpop.f32.mrb[5].mxu1 }
 0x123   : > { %v901_v33 = vmul.f32 %v1831_v3, %v779_v28  ;;  %v678_v35 = vpop.f32.mrb[6].mxu0  ;;  %v782_v36 = vpop.f32.mrb[6].mxu1 }
 0x124   : > { %1232 = vst.msk [vmem:[%s1850_s19 + $0x4] sm:$0xf] %vm1230_vm0, %v1467_v29  ;;  %1258 = vst.msk [vmem:[%s1850_s19 + $0x6c] sm:$0xf] %vm1230_vm0, %v1493_v30  ;;  %v932_v37 = vadd.f32 %v1836_v5, %v875_v31  ;;  %v876_v38 = vmul.f32 %v1831_v3, %v678_v35  ;;  %v680_v39 = vpop.f32.mrb[7].mxu0  ;;  %v902_v41 = vmul.f32 %v1831_v3, %v782_v36  ;;  %v784_v42 = vpop.f32.mrb[7].mxu1 }
 0x125   : > { %v958_v40 = vadd.f32 %v1836_v5, %v901_v33 }
 0x126   : > { %v982_v43 = vmax.f32 %v932_v37, 0.0  ;;  %v933_v44 = vadd.f32 %v1836_v5, %v876_v38  ;;  %v959_v46 = vadd.f32 %v1836_v5, %v902_v41 }
 0x127   : > { %v1008_v45 = vmax.f32 %v958_v40, 0.0 }
 0x128   : > { %v1468_v47 = vpack.c.bf16 %v982_v43, %v982_v43  ;;  %v983_v48 = vmax.f32 %v933_v44, 0.0  ;;  %v1009_v50 = vmax.f32 %v959_v46, 0.0 }
 0x129   : > { %v1494_v49 = vpack.c.bf16 %v1008_v45, %v1008_v45  ;;  %v683_v51 = vpop.f32.mrb[8].mxu0  ;;  %v787_v52 = vpop.f32.mrb[8].mxu1 }
 0x12a   : > { %1233 = vst.msk [vmem:[%s1850_s19 + $0x8] sm:$0xf] %vm1230_vm0, %v1468_v47  ;;  %v1469_v53 = vpack.c.bf16 %v983_v48, %v983_v48  ;;  %v1495_v54 = vpack.c.bf16 %v1009_v50, %v1009_v50  ;;  %v877_v55 = vmul.f32 %v1831_v3, %v683_v51  ;;  %v685_v56 = vpop.f32.mrb[9].mxu0  ;;  %v903_v57 = vmul.f32 %v1831_v3, %v787_v52  ;;  %v789_v58 = vpop.f32.mrb[9].mxu1 }
 0x12b   : > { %1259 = vst.msk [vmem:[%s1850_s19 + $0x70] sm:$0xf] %vm1230_vm0, %v1494_v49  ;;  %v686_v59 = vpop.f32.mrb[10].mxu0  ;;  %v790_v60 = vpop.f32.mrb[10].mxu1 }
 0x12c   : > { %1234 = vst.msk [vmem:[%s1850_s19 + $0xc] sm:$0xf] %vm1230_vm0, %v1469_v53  ;;  %1260 = vst.msk [vmem:[%s1850_s19 + $0x74] sm:$0xf] %vm1230_vm0, %v1495_v54  ;;  %v934_v61 = vadd.f32 %v1836_v5, %v877_v55  ;;  %v878_v62 = vmul.f32 %v1831_v3, %v686_v59  ;;  %v688_v63 = vpop.f32.mrb[11].mxu0  ;;  %v960_v0 = vadd.f32 %v1836_v5, %v903_v57  ;;  %v792_v2 = vpop.f32.mrb[11].mxu1 }
 0x12d   : > { %v904_v1 = vmul.f32 %v1831_v3, %v790_v60 }
 0x12e   : > { %v984_v4 = vmax.f32 %v934_v61, 0.0  ;;  %v935_v6 = vadd.f32 %v1836_v5, %v878_v62  ;;  %v1010_v7 = vmax.f32 %v960_v0, 0.0 }
 0x12f   : > { %v961_v8 = vadd.f32 %v1836_v5, %v904_v1 }
 0x130   : > { %v1470_v9 = vpack.c.bf16 %v984_v4, %v984_v4  ;;  %v985_v10 = vmax.f32 %v935_v6, 0.0  ;;  %v1496_v11 = vpack.c.bf16 %v1010_v7, %v1010_v7 }
 0x131   : > { %v1011_v12 = vmax.f32 %v961_v8, 0.0  ;;  %v691_v13 = vpop.f32.mrb[12].mxu0  ;;  %v795_v14 = vpop.f32.mrb[12].mxu1 }
 0x132   : > { %1235 = vst.msk [vmem:[%s1850_s19 + $0x10] sm:$0xf] %vm1230_vm0, %v1470_v9  ;;  %v1471_v15 = vpack.c.bf16 %v985_v10, %v985_v10  ;;  %1261 = vst.msk [vmem:[%s1850_s19 + $0x78] sm:$0xf] %vm1230_vm0, %v1496_v11  ;;  %v879_v17 = vmul.f32 %v1831_v3, %v691_v13  ;;  %v693_v18 = vpop.f32.mrb[13].mxu0  ;;  %v905_v19 = vmul.f32 %v1831_v3, %v795_v14  ;;  %v797_v20 = vpop.f32.mrb[13].mxu1 }
 0x133   : > { %v1497_v16 = vpack.c.bf16 %v1011_v12, %v1011_v12  ;;  %v694_v21 = vpop.f32.mrb[14].mxu0  ;;  %v798_v22 = vpop.f32.mrb[14].mxu1 }
 0x134   : > { %1236 = vst.msk [vmem:[%s1850_s19 + $0x14] sm:$0xf] %vm1230_vm0, %v1471_v15  ;;  %v936_v23 = vadd.f32 %v1836_v5, %v879_v17  ;;  %v880_v24 = vmul.f32 %v1831_v3, %v694_v21  ;;  %v696_v25 = vpop.f32.mrb[15].mxu0  ;;  %v962_v26 = vadd.f32 %v1836_v5, %v905_v19  ;;  %v906_v27 = vmul.f32 %v1831_v3, %v798_v22  ;;  %v800_v28 = vpop.f32.mrb[15].mxu1 }
 0x135   : > { %1262 = vst.msk [vmem:[%s1850_s19 + $0x7c] sm:$0xf] %vm1230_vm0, %v1497_v16 }
 0x136   : > { %v986_v29 = vmax.f32 %v936_v23, 0.0  ;;  %v937_v30 = vadd.f32 %v1836_v5, %v880_v24  ;;  %v1012_v31 = vmax.f32 %v962_v26, 0.0  ;;  %v963_v32 = vadd.f32 %v1836_v5, %v906_v27 }
 0x138   : > { %v1472_v33 = vpack.c.bf16 %v986_v29, %v986_v29  ;;  %v987_v34 = vmax.f32 %v937_v30, 0.0  ;;  %v1498_v35 = vpack.c.bf16 %v1012_v31, %v1012_v31  ;;  %v1013_v36 = vmax.f32 %v963_v32, 0.0 }
 0x139   : > { %v699_v37 = vpop.f32.mrb[16].mxu0  ;;  %v803_v38 = vpop.f32.mrb[16].mxu1 }
 0x13a   : > { %1237 = vst.msk [vmem:[%s1850_s19 + $0x18] sm:$0xf] %vm1230_vm0, %v1472_v33  ;;  %v1473_v39 = vpack.c.bf16 %v987_v34, %v987_v34  ;;  %1263 = vst.msk [vmem:[%s1850_s19 + $0x80] sm:$0xf] %vm1230_vm0, %v1498_v35  ;;  %v1499_v40 = vpack.c.bf16 %v1013_v36, %v1013_v36  ;;  %v881_v41 = vmul.f32 %v1831_v3, %v699_v37  ;;  %v701_v42 = vpop.f32.mrb[17].mxu0  ;;  %v805_v44 = vpop.f32.mrb[17].mxu1 }
 0x13b   : > { %v907_v43 = vmul.f32 %v1831_v3, %v803_v38  ;;  %v702_v45 = vpop.f32.mrb[18].mxu0  ;;  %v806_v46 = vpop.f32.mrb[18].mxu1 }
 0x13c   : > { %1238 = vst.msk [vmem:[%s1850_s19 + $0x1c] sm:$0xf] %vm1230_vm0, %v1473_v39  ;;  %1264 = vst.msk [vmem:[%s1850_s19 + $0x84] sm:$0xf] %vm1230_vm0, %v1499_v40  ;;  %v938_v47 = vadd.f32 %v1836_v5, %v881_v41  ;;  %v882_v48 = vmul.f32 %v1831_v3, %v702_v45  ;;  %v704_v49 = vpop.f32.mrb[19].mxu0  ;;  %v908_v51 = vmul.f32 %v1831_v3, %v806_v46  ;;  %v808_v52 = vpop.f32.mrb[19].mxu1 }
 0x13d   : > { %v964_v50 = vadd.f32 %v1836_v5, %v907_v43 }
 0x13e   : > { %v988_v53 = vmax.f32 %v938_v47, 0.0  ;;  %v939_v54 = vadd.f32 %v1836_v5, %v882_v48  ;;  %v965_v56 = vadd.f32 %v1836_v5, %v908_v51 }
 0x13f   : > { %v1014_v55 = vmax.f32 %v964_v50, 0.0 }
 0x140   : > { %v1474_v57 = vpack.c.bf16 %v988_v53, %v988_v53  ;;  %v989_v58 = vmax.f32 %v939_v54, 0.0  ;;  %v1015_v60 = vmax.f32 %v965_v56, 0.0 }
 0x141   : > { %v1500_v59 = vpack.c.bf16 %v1014_v55, %v1014_v55  ;;  %v707_v61 = vpop.f32.mrb[20].mxu0  ;;  %v811_v62 = vpop.f32.mrb[20].mxu1 }
 0x142   : > { %1239 = vst.msk [vmem:[%s1850_s19 + $0x20] sm:$0xf] %vm1230_vm0, %v1474_v57  ;;  %v1475_v63 = vpack.c.bf16 %v989_v58, %v989_v58  ;;  %v1501_v0 = vpack.c.bf16 %v1015_v60, %v1015_v60  ;;  %v883_v1 = vmul.f32 %v1831_v3, %v707_v61  ;;  %v709_v2 = vpop.f32.mrb[21].mxu0  ;;  %v909_v4 = vmul.f32 %v1831_v3, %v811_v62  ;;  %v813_v6 = vpop.f32.mrb[21].mxu1 }
 0x143   : > { %1265 = vst.msk [vmem:[%s1850_s19 + $0x88] sm:$0xf] %vm1230_vm0, %v1500_v59  ;;  %v710_v7 = vpop.f32.mrb[22].mxu0  ;;  %v814_v8 = vpop.f32.mrb[22].mxu1 }
 0x144   : > { %1240 = vst.msk [vmem:[%s1850_s19 + $0x24] sm:$0xf] %vm1230_vm0, %v1475_v63  ;;  %1266 = vst.msk [vmem:[%s1850_s19 + $0x8c] sm:$0xf] %vm1230_vm0, %v1501_v0  ;;  %v940_v9 = vadd.f32 %v1836_v5, %v883_v1  ;;  %v884_v10 = vmul.f32 %v1831_v3, %v710_v7  ;;  %v712_v11 = vpop.f32.mrb[23].mxu0  ;;  %v966_v12 = vadd.f32 %v1836_v5, %v909_v4  ;;  %v816_v14 = vpop.f32.mrb[23].mxu1 }
 0x145   : > { %v910_v13 = vmul.f32 %v1831_v3, %v814_v8 }
 0x146   : > { %v990_v15 = vmax.f32 %v940_v9, 0.0  ;;  %v941_v16 = vadd.f32 %v1836_v5, %v884_v10  ;;  %v1016_v17 = vmax.f32 %v966_v12, 0.0 }
 0x147   : > { %v967_v18 = vadd.f32 %v1836_v5, %v910_v13 }
 0x148   : > { %v1476_v19 = vpack.c.bf16 %v990_v15, %v990_v15  ;;  %v991_v20 = vmax.f32 %v941_v16, 0.0  ;;  %v1502_v21 = vpack.c.bf16 %v1016_v17, %v1016_v17 }
 0x149   : > { %v1017_v22 = vmax.f32 %v967_v18, 0.0  ;;  %v715_v23 = vpop.f32.mrb[24].mxu0  ;;  %v819_v24 = vpop.f32.mrb[24].mxu1 }
 0x14a   : > { %1241 = vst.msk [vmem:[%s1850_s19 + $0x28] sm:$0xf] %vm1230_vm0, %v1476_v19  ;;  %v1477_v25 = vpack.c.bf16 %v991_v20, %v991_v20  ;;  %1267 = vst.msk [vmem:[%s1850_s19 + $0x90] sm:$0xf] %vm1230_vm0, %v1502_v21  ;;  %v885_v27 = vmul.f32 %v1831_v3, %v715_v23  ;;  %v717_v28 = vpop.f32.mrb[25].mxu0  ;;  %v911_v29 = vmul.f32 %v1831_v3, %v819_v24  ;;  %v821_v30 = vpop.f32.mrb[25].mxu1 }
 0x14b   : > { %v1503_v26 = vpack.c.bf16 %v1017_v22, %v1017_v22  ;;  %v718_v31 = vpop.f32.mrb[26].mxu0  ;;  %v822_v32 = vpop.f32.mrb[26].mxu1 }
 0x14c   : > { %1242 = vst.msk [vmem:[%s1850_s19 + $0x2c] sm:$0xf] %vm1230_vm0, %v1477_v25  ;;  %v942_v33 = vadd.f32 %v1836_v5, %v885_v27  ;;  %v886_v34 = vmul.f32 %v1831_v3, %v718_v31  ;;  %v720_v35 = vpop.f32.mrb[27].mxu0  ;;  %v968_v36 = vadd.f32 %v1836_v5, %v911_v29  ;;  %v912_v37 = vmul.f32 %v1831_v3, %v822_v32  ;;  %v824_v38 = vpop.f32.mrb[27].mxu1 }
 0x14d   : > { %1268 = vst.msk [vmem:[%s1850_s19 + $0x94] sm:$0xf] %vm1230_vm0, %v1503_v26 }
 0x14e   : > { %v992_v39 = vmax.f32 %v942_v33, 0.0  ;;  %v943_v40 = vadd.f32 %v1836_v5, %v886_v34  ;;  %v1018_v41 = vmax.f32 %v968_v36, 0.0  ;;  %v969_v42 = vadd.f32 %v1836_v5, %v912_v37 }
 0x150   : > { %v1478_v43 = vpack.c.bf16 %v992_v39, %v992_v39  ;;  %v993_v44 = vmax.f32 %v943_v40, 0.0  ;;  %v1504_v45 = vpack.c.bf16 %v1018_v41, %v1018_v41  ;;  %v1019_v46 = vmax.f32 %v969_v42, 0.0 }
 0x151   : > { %v723_v47 = vpop.f32.mrb[28].mxu0  ;;  %v827_v48 = vpop.f32.mrb[28].mxu1 }
 0x152   : > { %1243 = vst.msk [vmem:[%s1850_s19 + $0x30] sm:$0xf] %vm1230_vm0, %v1478_v43  ;;  %v1479_v49 = vpack.c.bf16 %v993_v44, %v993_v44  ;;  %1269 = vst.msk [vmem:[%s1850_s19 + $0x98] sm:$0xf] %vm1230_vm0, %v1504_v45  ;;  %v1505_v50 = vpack.c.bf16 %v1019_v46, %v1019_v46  ;;  %v887_v51 = vmul.f32 %v1831_v3, %v723_v47  ;;  %v725_v52 = vpop.f32.mrb[29].mxu0  ;;  %v829_v54 = vpop.f32.mrb[29].mxu1 }
 0x153   : > { %v913_v53 = vmul.f32 %v1831_v3, %v827_v48  ;;  %v726_v55 = vpop.f32.mrb[30].mxu0  ;;  %v830_v56 = vpop.f32.mrb[30].mxu1 }
 0x154   : > { %1244 = vst.msk [vmem:[%s1850_s19 + $0x34] sm:$0xf] %vm1230_vm0, %v1479_v49  ;;  %1270 = vst.msk [vmem:[%s1850_s19 + $0x9c] sm:$0xf] %vm1230_vm0, %v1505_v50  ;;  %v944_v57 = vadd.f32 %v1836_v5, %v887_v51  ;;  %v888_v58 = vmul.f32 %v1831_v3, %v726_v55  ;;  %v728_v59 = vpop.f32.mrb[31].mxu0  ;;  %v914_v61 = vmul.f32 %v1831_v3, %v830_v56  ;;  %v832_v62 = vpop.f32.mrb[31].mxu1 }
 0x155   : > { %v970_v60 = vadd.f32 %v1836_v5, %v913_v53 }
 0x156   : > { %v994_v63 = vmax.f32 %v944_v57, 0.0  ;;  %v945_v0 = vadd.f32 %v1836_v5, %v888_v58  ;;  %v971_v2 = vadd.f32 %v1836_v5, %v914_v61 }
 0x157   : > { %v1020_v1 = vmax.f32 %v970_v60, 0.0 }
 0x158   : > { %v1480_v4 = vpack.c.bf16 %v994_v63, %v994_v63  ;;  %v995_v6 = vmax.f32 %v945_v0, 0.0  ;;  %v1021_v8 = vmax.f32 %v971_v2, 0.0 }
 0x159   : > { %v1506_v7 = vpack.c.bf16 %v1020_v1, %v1020_v1  ;;  %v731_v9 = vpop.f32.mrb[32].mxu0  ;;  %v835_v10 = vpop.f32.mrb[32].mxu1 }
 0x15a   : > { %1245 = vst.msk [vmem:[%s1850_s19 + $0x38] sm:$0xf] %vm1230_vm0, %v1480_v4  ;;  %v1481_v11 = vpack.c.bf16 %v995_v6, %v995_v6  ;;  %v1507_v12 = vpack.c.bf16 %v1021_v8, %v1021_v8  ;;  %v889_v13 = vmul.f32 %v1831_v3, %v731_v9  ;;  %v733_v14 = vpop.f32.mrb[33].mxu0  ;;  %v915_v15 = vmul.f32 %v1831_v3, %v835_v10  ;;  %v837_v16 = vpop.f32.mrb[33].mxu1 }
 0x15b   : > { %1271 = vst.msk [vmem:[%s1850_s19 + $0xa0] sm:$0xf] %vm1230_vm0, %v1506_v7  ;;  %v734_v17 = vpop.f32.mrb[34].mxu0  ;;  %v838_v18 = vpop.f32.mrb[34].mxu1 }
 0x15c   : > { %1246 = vst.msk [vmem:[%s1850_s19 + $0x3c] sm:$0xf] %vm1230_vm0, %v1481_v11  ;;  %1272 = vst.msk [vmem:[%s1850_s19 + $0xa4] sm:$0xf] %vm1230_vm0, %v1507_v12  ;;  %v946_v19 = vadd.f32 %v1836_v5, %v889_v13  ;;  %v890_v20 = vmul.f32 %v1831_v3, %v734_v17  ;;  %v736_v21 = vpop.f32.mrb[35].mxu0  ;;  %v972_v22 = vadd.f32 %v1836_v5, %v915_v15  ;;  %v840_v24 = vpop.f32.mrb[35].mxu1 }
 0x15d   : > { %v916_v23 = vmul.f32 %v1831_v3, %v838_v18 }
 0x15e   : > { %v996_v25 = vmax.f32 %v946_v19, 0.0  ;;  %v947_v26 = vadd.f32 %v1836_v5, %v890_v20  ;;  %v1022_v27 = vmax.f32 %v972_v22, 0.0 }
 0x15f   : > { %v973_v28 = vadd.f32 %v1836_v5, %v916_v23 }
 0x160   : > { %v1482_v29 = vpack.c.bf16 %v996_v25, %v996_v25  ;;  %v997_v30 = vmax.f32 %v947_v26, 0.0  ;;  %v1508_v31 = vpack.c.bf16 %v1022_v27, %v1022_v27 }
 0x161   : > { %v1023_v32 = vmax.f32 %v973_v28, 0.0  ;;  %v739_v33 = vpop.f32.mrb[36].mxu0  ;;  %v843_v34 = vpop.f32.mrb[36].mxu1 }
 0x162   : > { %1247 = vst.msk [vmem:[%s1850_s19 + $0x40] sm:$0xf] %vm1230_vm0, %v1482_v29  ;;  %v1483_v35 = vpack.c.bf16 %v997_v30, %v997_v30  ;;  %1273 = vst.msk [vmem:[%s1850_s19 + $0xa8] sm:$0xf] %vm1230_vm0, %v1508_v31  ;;  %v891_v37 = vmul.f32 %v1831_v3, %v739_v33  ;;  %v741_v38 = vpop.f32.mrb[37].mxu0  ;;  %v917_v39 = vmul.f32 %v1831_v3, %v843_v34  ;;  %v845_v40 = vpop.f32.mrb[37].mxu1 }
 0x163   : > { %v1509_v36 = vpack.c.bf16 %v1023_v32, %v1023_v32  ;;  %v742_v41 = vpop.f32.mrb[38].mxu0  ;;  %v846_v42 = vpop.f32.mrb[38].mxu1 }
 0x164   : > { %1248 = vst.msk [vmem:[%s1850_s19 + $0x44] sm:$0xf] %vm1230_vm0, %v1483_v35  ;;  %v948_v43 = vadd.f32 %v1836_v5, %v891_v37  ;;  %v892_v44 = vmul.f32 %v1831_v3, %v742_v41  ;;  %v744_v45 = vpop.f32.mrb[39].mxu0  ;;  %v974_v46 = vadd.f32 %v1836_v5, %v917_v39  ;;  %v918_v47 = vmul.f32 %v1831_v3, %v846_v42  ;;  %v848_v48 = vpop.f32.mrb[39].mxu1 }
 0x165   : > { %1274 = vst.msk [vmem:[%s1850_s19 + $0xac] sm:$0xf] %vm1230_vm0, %v1509_v36 }
 0x166   : > { %v998_v49 = vmax.f32 %v948_v43, 0.0  ;;  %v949_v50 = vadd.f32 %v1836_v5, %v892_v44  ;;  %v1024_v51 = vmax.f32 %v974_v46, 0.0  ;;  %v975_v52 = vadd.f32 %v1836_v5, %v918_v47 }
 0x168   : > { %v1484_v53 = vpack.c.bf16 %v998_v49, %v998_v49  ;;  %v999_v54 = vmax.f32 %v949_v50, 0.0  ;;  %v1510_v55 = vpack.c.bf16 %v1024_v51, %v1024_v51  ;;  %v1025_v56 = vmax.f32 %v975_v52, 0.0 }
 0x169   : > { %v747_v57 = vpop.f32.mrb[40].mxu0  ;;  %v851_v58 = vpop.f32.mrb[40].mxu1 }
 0x16a   : > { %1249 = vst.msk [vmem:[%s1850_s19 + $0x48] sm:$0xf] %vm1230_vm0, %v1484_v53  ;;  %v1485_v59 = vpack.c.bf16 %v999_v54, %v999_v54  ;;  %1275 = vst.msk [vmem:[%s1850_s19 + $0xb0] sm:$0xf] %vm1230_vm0, %v1510_v55  ;;  %v1511_v60 = vpack.c.bf16 %v1025_v56, %v1025_v56  ;;  %v893_v61 = vmul.f32 %v1831_v3, %v747_v57  ;;  %v749_v62 = vpop.f32.mrb[41].mxu0  ;;  %v853_v0 = vpop.f32.mrb[41].mxu1 }
 0x16b   : > { %v919_v63 = vmul.f32 %v1831_v3, %v851_v58  ;;  %v750_v1 = vpop.f32.mrb[42].mxu0  ;;  %v854_v2 = vpop.f32.mrb[42].mxu1 }
 0x16c   : > { %1250 = vst.msk [vmem:[%s1850_s19 + $0x4c] sm:$0xf] %vm1230_vm0, %v1485_v59  ;;  %1276 = vst.msk [vmem:[%s1850_s19 + $0xb4] sm:$0xf] %vm1230_vm0, %v1511_v60  ;;  %v950_v4 = vadd.f32 %v1836_v5, %v893_v61  ;;  %v894_v6 = vmul.f32 %v1831_v3, %v750_v1  ;;  %v752_v7 = vpop.f32.mrb[43].mxu0  ;;  %v920_v9 = vmul.f32 %v1831_v3, %v854_v2  ;;  %v856_v10 = vpop.f32.mrb[43].mxu1 }
 0x16d   : > { %v976_v8 = vadd.f32 %v1836_v5, %v919_v63 }
 0x16e   : > { %v1000_v11 = vmax.f32 %v950_v4, 0.0  ;;  %v951_v12 = vadd.f32 %v1836_v5, %v894_v6  ;;  %v977_v14 = vadd.f32 %v1836_v5, %v920_v9 }
 0x16f   : > { %v1026_v13 = vmax.f32 %v976_v8, 0.0 }
 0x170   : > { %v1486_v15 = vpack.c.bf16 %v1000_v11, %v1000_v11  ;;  %v1001_v16 = vmax.f32 %v951_v12, 0.0  ;;  %v1027_v18 = vmax.f32 %v977_v14, 0.0 }
 0x171   : > { %v1512_v17 = vpack.c.bf16 %v1026_v13, %v1026_v13  ;;  %v755_v19 = vpop.f32.mrb[44].mxu0  ;;  %v859_v20 = vpop.f32.mrb[44].mxu1 }
 0x172   : > { %1251 = vst.msk [vmem:[%s1850_s19 + $0x50] sm:$0xf] %vm1230_vm0, %v1486_v15  ;;  %v1487_v21 = vpack.c.bf16 %v1001_v16, %v1001_v16  ;;  %v1513_v22 = vpack.c.bf16 %v1027_v18, %v1027_v18  ;;  %v895_v23 = vmul.f32 %v1831_v3, %v755_v19  ;;  %v757_v24 = vpop.f32.mrb[45].mxu0  ;;  %v921_v25 = vmul.f32 %v1831_v3, %v859_v20  ;;  %v861_v26 = vpop.f32.mrb[45].mxu1 }
 0x173   : > { %1277 = vst.msk [vmem:[%s1850_s19 + $0xb8] sm:$0xf] %vm1230_vm0, %v1512_v17  ;;  %v758_v27 = vpop.f32.mrb[46].mxu0  ;;  %v862_v28 = vpop.f32.mrb[46].mxu1 }
 0x174   : > { %1252 = vst.msk [vmem:[%s1850_s19 + $0x54] sm:$0xf] %vm1230_vm0, %v1487_v21  ;;  %1278 = vst.msk [vmem:[%s1850_s19 + $0xbc] sm:$0xf] %vm1230_vm0, %v1513_v22  ;;  %v952_v29 = vadd.f32 %v1836_v5, %v895_v23  ;;  %v896_v30 = vmul.f32 %v1831_v3, %v758_v27  ;;  %v760_v31 = vpop.f32.mrb[47].mxu0  ;;  %v978_v32 = vadd.f32 %v1836_v5, %v921_v25  ;;  %v864_v34 = vpop.f32.mrb[47].mxu1 }
 0x175   : > { %v922_v33 = vmul.f32 %v1831_v3, %v862_v28 }
 0x176   : > { %v1002_v35 = vmax.f32 %v952_v29, 0.0  ;;  %v953_v36 = vadd.f32 %v1836_v5, %v896_v30  ;;  %v1028_v37 = vmax.f32 %v978_v32, 0.0 }
 0x177   : > { %v979_v38 = vadd.f32 %v1836_v5, %v922_v33 }
 0x178   : > { %v1488_v39 = vpack.c.bf16 %v1002_v35, %v1002_v35  ;;  %v1003_v40 = vmax.f32 %v953_v36, 0.0  ;;  %v1514_v41 = vpack.c.bf16 %v1028_v37, %v1028_v37 }
 0x179   : > { %v1029_v42 = vmax.f32 %v979_v38, 0.0  ;;  %v763_v43 = vpop.f32.mrb[48].mxu0 }
 0x17a   : > { %1253 = vst.msk [vmem:[%s1850_s19 + $0x58] sm:$0xf] %vm1230_vm0, %v1488_v39  ;;  %v1489_v44 = vpack.c.bf16 %v1003_v40, %v1003_v40  ;;  %1279 = vst.msk [vmem:[%s1850_s19 + $0xc0] sm:$0xf] %vm1230_vm0, %v1514_v41  ;;  %v897_v46 = vmul.f32 %v1831_v3, %v763_v43  ;;  %v765_v47 = vpop.f32.mrb[49].mxu0 }
 0x17b   : > { %v1515_v45 = vpack.c.bf16 %v1029_v42, %v1029_v42  ;;  %v766_v48 = vpop.f32.mrb[50].mxu0 }
 0x17c   : > { %1254 = vst.msk [vmem:[%s1850_s19 + $0x5c] sm:$0xf] %vm1230_vm0, %v1489_v44  ;;  %v954_v49 = vadd.f32 %v1836_v5, %v897_v46  ;;  %v898_v50 = vmul.f32 %v1831_v3, %v766_v48  ;;  %v768_v51 = vpop.f32.mrb[51].mxu0 }
 0x17d   : > { %1280 = vst.msk [vmem:[%s1850_s19 + $0xc4] sm:$0xf] %vm1230_vm0, %v1515_v45 }
 0x17e   : > { %v1004_v52 = vmax.f32 %v954_v49, 0.0  ;;  %v955_v53 = vadd.f32 %v1836_v5, %v898_v50 }
 0x180   : > { %v1490_v54 = vpack.c.bf16 %v1004_v52, %v1004_v52  ;;  %v1005_v55 = vmax.f32 %v955_v53, 0.0 }
 0x182   : > { %1255 = vst.msk [vmem:[%s1850_s19 + $0x60] sm:$0xf] %vm1230_vm0, %v1490_v54  ;;  %v1491_v56 = vpack.c.bf16 %v1005_v55, %v1005_v55 }
 0x184   : > { %1256 = vst.msk [vmem:[%s1850_s19 + $0x64] sm:$0xf] %vm1230_vm0, %v1491_v56 }
 0x185 PF: > { %s14_s15 = sadd.s32 1, %s1654_s15  }
 0x186   : > { %p11_p4 = scmp.ge.s32.totalorder %s14_s15, 4  }
 0x188   :  { %13 = sbr.rel (!%p11_p4) target bundleno = 1 (0x1), region = 66 }

// kernel: dqn_forward.5
= control target key start
LH: loop header
LB: loop body
LE: loop exit
PB: predicated region body
PF: predicated region fallthrough
CT: control target
= control target key end

     0   :  { %s1240_s15 = smov 0   ;;  %s1445_s0 = inlined_call_operand.vmem [shape: bf16[192,512], index: 0, kind: input, shape index: {}]   ;;  %s1446_s1 = inlined_call_operand.vmem [shape: bf16[512,64], index: 1, kind: input, shape index: {}]   ;;  %s1447_s2 = inlined_call_operand.vmem [shape: f32[1,64], index: 2, kind: input, shape index: {}]   ;;  %s1448_s3 = inlined_call_operand.vmem [shape: f32[1,64], index: 3, kind: input, shape index: {}]   ;;  %s1449_s4 = inlined_call_operand.vmem [shape: bf16[192,64], index: 4, kind: output, shape index: {}]  }
   0x1 LB: > { %s934_s16 = sadd.s32 4294967295, %s1213_s15   ;;  %p938_p0 = scmp.ge.s32.totalorder %s1213_s15, 1  ;;  %s1213_s15 = sphi %s1240_s15, %s14_s15  }
   0x2   : > { %p164_p1 = scmp.lt.s32.totalorder %s1213_s15, 3 }
   0x4   : > { %p165_p2 = pnand %p938_p0, %p164_p1 }
   0x5   : > { %v1139_v0 = vld [vmem:[%s1446_s1 + $0x40] sm:$0xff] (!%p165_p2)   ;;  %v1143_v4 = vld [vmem:[%s1446_s1 + $0x48] sm:$0xff] (!%p165_p2)   ;;  %v1147_v8 = vld [vmem:[%s1446_s1 + $0x50] sm:$0xff] (!%p165_p2)   ;;  %s191_s23 = smul.u32 (!%p165_p2), 12, %s934_s16  ;;  %vm865_vm0 = vcmask (!%p165_p2), 519168  }
   0x6   : > { %168 = sbr.rel (%p165_p2) target bundleno = 308 (0x134), region = 36  ;;  %v1140_v1 = vld [vmem:[%s1446_s1 + $0xc0] sm:$0xff] (!%p165_p2)   ;;  %1027 = vmatprep.subr.bf16.mxu0 (!%p165_p2), %v1139_v0  ;;  %v1144_v5 = vld [vmem:[%s1446_s1 + $0xc8] sm:$0xff] (!%p165_p2)   ;;  %v1148_v9 = vld [vmem:[%s1446_s1 + $0xd0] sm:$0xff] (!%p165_p2)  }
   0x7   : > { %v1141_v2 = vld [vmem:[%s1446_s1] sm:$0xff] (!%p165_p2)   ;;  %1079 = vmatprep.subr.bf16.mxu1 (!%p165_p2), %v1140_v1  ;;  %v1145_v6 = vld [vmem:[%s1446_s1 + $0x8] sm:$0xff] (!%p165_p2)   ;;  %v1149_v10 = vld [vmem:[%s1446_s1 + $0x10] sm:$0xff] (!%p165_p2)   ;;  %p192_p3 = scmp.lt.s32.totalorder (!%p165_p2), %s191_s23, 23 }
   0x8   : > { %v1142_v3 = vld [vmem:[%s1446_s1 + $0x80] sm:$0xff] (!%p165_p2)   ;;  %1028 = vmatpush3.bf16.msra.mxu0 (!%p165_p2), %v1141_v2  ;;  %v1146_v7 = vld [vmem:[%s1446_s1 + $0x88] sm:$0xff] (!%p165_p2)   ;;  %v1150_v11 = vld [vmem:[%s1446_s1 + $0x90] sm:$0xff] (!%p165_p2)  }
   0x9   : > { %1080 = vmatpush3.bf16.msra.mxu1 (!%p165_p2), %v1142_v3  ;;  %1029 = vmatprep.subr.bf16.mxu0 (!%p165_p2), %v1143_v4  ;;  %v1151_v12 = vld [vmem:[%s1446_s1 + $0x58] sm:$0xff] (!%p165_p2)   ;;  %v1155_v16 = vld [vmem:[%s1446_s1 + $0x60] sm:$0xff] (!%p165_p2)   ;;  %v1159_v20 = vld [vmem:[%s1446_s1 + $0x68] sm:$0xff] (!%p165_p2)  }
   0xa   : > { %1081 = vmatprep.subr.bf16.mxu1 (!%p165_p2), %v1144_v5  ;;  %v1152_v13 = vld [vmem:[%s1446_s1 + $0xd8] sm:$0xff] (!%p165_p2)   ;;  %v1156_v17 = vld [vmem:[%s1446_s1 + $0xe0] sm:$0xff] (!%p165_p2)   ;;  %v1160_v21 = vld [vmem:[%s1446_s1 + $0xe8] sm:$0xff] (!%p165_p2)  }
   0xb   : > { %v1153_v14 = vld [vmem:[%s1446_s1 + $0x18] sm:$0xff] (!%p165_p2)   ;;  %v1157_v18 = vld [vmem:[%s1446_s1 + $0x20] sm:$0xff] (!%p165_p2)   ;;  %v1161_v22 = vld [vmem:[%s1446_s1 + $0x28] sm:$0xff] (!%p165_p2)  }
   0xc   : > { %1030 = vmatpush3.bf16.msra.mxu0 (!%p165_p2), %v1145_v6  ;;  %v1154_v15 = vld [vmem:[%s1446_s1 + $0x98] sm:$0xff] (!%p165_p2)   ;;  %v1158_v19 = vld [vmem:[%s1446_s1 + $0xa0] sm:$0xff] (!%p165_p2)   ;;  %v1162_v23 = vld [vmem:[%s1446_s1 + $0xa8] sm:$0xff] (!%p165_p2)  }
   0xd   : > { %1082 = vmatpush3.bf16.msra.mxu1 %v1146_v7  ;;  %1031 = vmatprep.subr.bf16.mxu0 %v1147_v8  ;;  %s1451_s23 = smov (!%p192_p3, %s191_s23), 23  ;;  %v1163_v24 = vld [vmem:[%s1446_s1 + $0x70] sm:$0xff]   ;;  %v1167_v28 = vld [vmem:[%s1446_s1 + $0x78] sm:$0xff]   ;;  %v1381_v1 = vld [vmem:[%s1447_s2] ss:$0 sm:$0xff] }
   0xe   : > { %1083 = vmatprep.subr.bf16.mxu1 %v1148_v9  ;;  %v1164_v25 = vld [vmem:[%s1446_s1 + $0xf0] sm:$0xff]   ;;  %s1014_s24 = sshll.u32 %s1451_s23, 4  ;;  %v1168_v29 = vld [vmem:[%s1446_s1 + $0xf8] sm:$0xff]   ;;  %v1386_v6 = vld [vmem:[%s1448_s3] ss:$0 sm:$0xff]  ;;  %s941_s17 = sshll.u32 %s1451_s23, 2 }
   0xf   : > { %v1165_v26 = vld [vmem:[%s1446_s1 + $0x30] sm:$0xff]   ;;  %s1346_s6 = scalar_lea.vmem %s1445_s0, %s1014_s24  ;;  %v1169_v30 = vld [vmem:[%s1446_s1 + $0x38] sm:$0xff]   ;;  %s1396_s20 = scalar_lea.vmem %s1449_s4, %s941_s17 }
  0x10   : > { %1032 = vmatpush3.bf16.msra.mxu0 %v1149_v10  ;;  %v1166_v27 = vld [vmem:[%s1446_s1 + $0xb0] sm:$0xff]   ;;  %v1170_v31 = vld [vmem:[%s1446_s1 + $0xb8] sm:$0xff]  }
  0x11   : > { %1084 = vmatpush3.bf16.msra.mxu1 %v1150_v11  ;;  %1033 = vmatprep.subr.bf16.mxu0 %v1151_v12  ;;  %v1171_v32 = vld [vmem:[%s1346_s6] ss:$16 sps:$4 sm:$0xff]   ;;  %v1173_v33 = vld [vmem:[%s1346_s6 + $0x4] ss:$16 sps:$4 sm:$0xff]   ;;  %v1174_v34 = vld [vmem:[%s1346_s6 + $0x8] ss:$16 sps:$4 sm:$0xff]  }
  0x12   : > { %1085 = vmatprep.subr.bf16.mxu1 %v1152_v13  ;;  %v1176_v35 = vld [vmem:[%s1346_s6 + $0xc] ss:$16 sps:$4 sm:$0xff]   ;;  %637 = vmatprep.mubr.bf16.mxu0 %v1173_v33  ;;  %v1177_v36 = vld [vmem:[%s1346_s6 + $0x24] ss:$16 sps:$4 sm:$0xff]   ;;  %v1181_v38 = vld [vmem:[%s1346_s6 + $0x20] ss:$16 sps:$4 sm:$0xff]  }
  0x13   : > { %718 = vmatprep.mubr.bf16.mxu1 %v1176_v35  ;;  %v1179_v37 = vld [vmem:[%s1346_s6 + $0x2c] ss:$16 sps:$4 sm:$0xff]   ;;  %v1182_v39 = vld [vmem:[%s1346_s6 + $0x28] ss:$16 sps:$4 sm:$0xff]   ;;  %v1183_v40 = vld [vmem:[%s1346_s6 + $0x44] ss:$16 sps:$4 sm:$0xff]  }
  0x14   : > { %1034 = vmatpush3.bf16.msra.mxu0 %v1153_v14  ;;  %v1185_v41 = vld [vmem:[%s1346_s6 + $0x4c] ss:$16 sps:$4 sm:$0xff]   ;;  %v1187_v42 = vld [vmem:[%s1346_s6 + $0x40] ss:$16 sps:$4 sm:$0xff]   ;;  %v1188_v43 = vld [vmem:[%s1346_s6 + $0x48] ss:$16 sps:$4 sm:$0xff]  }
  0x15   : > { %1086 = vmatpush3.bf16.msra.mxu1 %v1154_v15  ;;  %1035 = vmatprep.subr.bf16.mxu0 %v1155_v16  ;;  %v1189_v44 = vld [vmem:[%s1346_s6 + $0x64] ss:$16 sps:$4 sm:$0xff]   ;;  %v1191_v45 = vld [vmem:[%s1346_s6 + $0x6c] ss:$16 sps:$4 sm:$0xff]   ;;  %v1193_v46 = vld [vmem:[%s1346_s6 + $0x60] ss:$16 sps:$4 sm:$0xff]  }
  0x16   : > { %1087 = vmatprep.subr.bf16.mxu1 %v1156_v17  ;;  %v1194_v47 = vld [vmem:[%s1346_s6 + $0x68] ss:$16 sps:$4 sm:$0xff]   ;;  %v1195_v48 = vld [vmem:[%s1346_s6 + $0x84] ss:$16 sps:$4 sm:$0xff]   ;;  %v1197_v49 = vld [vmem:[%s1346_s6 + $0x8c] ss:$16 sps:$4 sm:$0xff]  }
  0x17   : > { %v1199_v50 = vld [vmem:[%s1346_s6 + $0x80] ss:$16 sps:$4 sm:$0xff]   ;;  %v1200_v51 = vld [vmem:[%s1346_s6 + $0x88] ss:$16 sps:$4 sm:$0xff]   ;;  %v1201_v52 = vld [vmem:[%s1346_s6 + $0xa4] ss:$16 sps:$4 sm:$0xff]  }
  0x18   : > { %1036 = vmatpush3.bf16.msra.mxu0 %v1157_v18  ;;  %v1203_v53 = vld [vmem:[%s1346_s6 + $0xac] ss:$16 sps:$4 sm:$0xff]   ;;  %v1205_v54 = vld [vmem:[%s1346_s6 + $0xa0] ss:$16 sps:$4 sm:$0xff]   ;;  %v1206_v55 = vld [vmem:[%s1346_s6 + $0xa8] ss:$16 sps:$4 sm:$0xff]  }
  0x19   : > { %1088 = vmatpush3.bf16.msra.mxu1 %v1158_v19  ;;  %1037 = vmatprep.subr.bf16.mxu0 %v1159_v20 }
  0x1a   : > { %1089 = vmatprep.subr.bf16.mxu1 %v1160_v21 }
  0x1c   : > { %1038 = vmatpush3.bf16.msra.mxu0 %v1161_v22 }
  0x1d   : > { %1090 = vmatpush3.bf16.msra.mxu1 %v1162_v23  ;;  %1039 = vmatprep.subr.bf16.mxu0 %v1163_v24 }
  0x1e   : > { %1091 = vmatprep.subr.bf16.mxu1 %v1164_v25 }
  0x20   : > { %1040 = vmatpush3.bf16.msra.mxu0 %v1165_v26 }
  0x21   : > { %1092 = vmatpush3.bf16.msra.mxu1 %v1166_v27  ;;  %1041 = vmatprep.subr.bf16.mxu0 %v1167_v28 }
  0x22   : > { %1093 = vmatprep.subr.bf16.mxu1 %v1168_v29 }
  0x24   : > { %1042 = vmatpush3.bf16.msra.mxu0 %v1169_v30 }
  0x25   : > { %1094 = vmatpush3.bf16.msra.mxu1 %v1170_v31 }
  0x27   : > { %638 = vmatmul.mubr.bf16.vlgmr.msra.gmra.mrb[0].mxu0 %v1171_v32 }
  0x28   : > { %719 = vmatmul.mubr.bf16.vlgmr.msra.gmra.mrb[0].mxu1 %v1174_v34  ;;  %645 = vmatprep.mubr.bf16.mxu0 %v1177_v36 }
  0x29   : > { %726 = vmatprep.mubr.bf16.mxu1 %v1179_v37 }
  0x2f   : > { %646 = vmatmul.mubr.bf16.gmra.mrb[4].mxu0 %v1181_v38 }
  0x30   : > { %727 = vmatmul.mubr.bf16.gmra.mrb[4].mxu1 %v1182_v39  ;;  %653 = vmatprep.mubr.bf16.mxu0 %v1183_v40 }
  0x31   : > { %734 = vmatprep.mubr.bf16.mxu1 %v1185_v41 }
  0x37   : > { %654 = vmatmul.mubr.bf16.gmra.mrb[8].mxu0 %v1187_v42 }
  0x38   : > { %735 = vmatmul.mubr.bf16.gmra.mrb[8].mxu1 %v1188_v43  ;;  %661 = vmatprep.mubr.bf16.mxu0 %v1189_v44 }
  0x39   : > { %742 = vmatprep.mubr.bf16.mxu1 %v1191_v45 }
  0x3f   : > { %662 = vmatmul.mubr.bf16.gmra.mrb[12].mxu0 %v1193_v46 }
  0x40   : > { %743 = vmatmul.mubr.bf16.gmra.mrb[12].mxu1 %v1194_v47  ;;  %669 = vmatprep.mubr.bf16.mxu0 %v1195_v48 }
  0x41   : > { %750 = vmatprep.mubr.bf16.mxu1 %v1197_v49 }
  0x47   : > { %670 = vmatmul.mubr.bf16.gmra.mrb[16].mxu0 %v1199_v50 }
  0x48   : > { %751 = vmatmul.mubr.bf16.gmra.mrb[16].mxu1 %v1200_v51  ;;  %677 = vmatprep.mubr.bf16.mxu0 %v1201_v52 }
  0x49   : > { %758 = vmatprep.mubr.bf16.mxu1 %v1203_v53 }
  0x4f   : > { %678 = vmatmul.mubr.bf16.gmra.mrb[20].mxu0 %v1205_v54 }
  0x50   : > { %759 = vmatmul.mubr.bf16.gmra.mrb[20].mxu1 %v1206_v55 }
  0xfa   : > { %v1043_v56 = vpop.f32.mrb[0].mxu0 }
  0xfb   : > { %v1095_v57 = vpop.f32.mrb[0].mxu1  ;;  %v1044_v58 = vpop.f32.mrb[1].mxu0 }
  0xfc   : > { %v1045_v59 = vadd.f32 %v1044_v58, %v1043_v56  ;;  %v1096_v60 = vpop.f32.mrb[1].mxu1  ;;  %v1046_v61 = vpop.f32.mrb[2].mxu0 }
  0xfd   : > { %v1097_v62 = vadd.f32 %v1096_v60, %v1095_v57  ;;  %v1098_v63 = vpop.f32.mrb[2].mxu1  ;;  %v1047_v0 = vpop.f32.mrb[3].mxu0 }
  0xfe   : > { %v1048_v2 = vadd.f32 %v1047_v0, %v1046_v61  ;;  %v1099_v3 = vpop.f32.mrb[3].mxu1 }
  0xff   : > { %v721_v4 = vadd.f32 %v1097_v62, %v1045_v59  ;;  %v1100_v5 = vadd.f32 %v1099_v3, %v1098_v63 }
 0x101   : > { %v774_v7 = vmul.f32 %v1381_v1, %v721_v4  ;;  %v724_v8 = vadd.f32 %v1100_v5, %v1048_v2 }
 0x102   : > { %v1049_v9 = vpop.f32.mrb[4].mxu0 }
 0x103   : > { %v793_v10 = vadd.f32 %v1386_v6, %v774_v7  ;;  %v775_v11 = vmul.f32 %v1381_v1, %v724_v8  ;;  %v1101_v12 = vpop.f32.mrb[4].mxu1  ;;  %v1050_v13 = vpop.f32.mrb[5].mxu0 }
 0x104   : > { %v1051_v14 = vadd.f32 %v1050_v13, %v1049_v9  ;;  %v1102_v15 = vpop.f32.mrb[5].mxu1  ;;  %v1052_v16 = vpop.f32.mrb[6].mxu0 }
 0x105   : > { %v805_v17 = vmax.f32 %v793_v10, 0.0  ;;  %v794_v18 = vadd.f32 %v1386_v6, %v775_v11  ;;  %v1103_v19 = vadd.f32 %v1102_v15, %v1101_v12  ;;  %v1104_v20 = vpop.f32.mrb[6].mxu1  ;;  %v1053_v21 = vpop.f32.mrb[7].mxu0 }
 0x106   : > { %v1054_v22 = vadd.f32 %v1053_v21, %v1052_v16  ;;  %v1105_v23 = vpop.f32.mrb[7].mxu1 }
 0x107   : > { %v1015_v24 = vpack.c.bf16 %v805_v17, %v805_v17  ;;  %v806_v25 = vmax.f32 %v794_v18, 0.0  ;;  %v729_v26 = vadd.f32 %v1103_v19, %v1051_v14  ;;  %v1106_v27 = vadd.f32 %v1105_v23, %v1104_v20 }
 0x109   : > { %866 = vst.msk [vmem:[%s1396_s20] sm:$0xf] %vm865_vm0, %v1015_v24  ;;  %v1016_v28 = vpack.c.bf16 %v806_v25, %v806_v25  ;;  %v776_v29 = vmul.f32 %v1381_v1, %v729_v26  ;;  %v732_v30 = vadd.f32 %v1106_v27, %v1054_v22 }
 0x10a   : > { %v1055_v31 = vpop.f32.mrb[8].mxu0 }
 0x10b   : > { %867 = vst.msk [vmem:[%s1396_s20 + $0x4] sm:$0xf] %vm865_vm0, %v1016_v28  ;;  %v795_v32 = vadd.f32 %v1386_v6, %v776_v29  ;;  %v777_v33 = vmul.f32 %v1381_v1, %v732_v30  ;;  %v1107_v34 = vpop.f32.mrb[8].mxu1  ;;  %v1056_v35 = vpop.f32.mrb[9].mxu0 }
 0x10c   : > { %v1057_v36 = vadd.f32 %v1056_v35, %v1055_v31  ;;  %v1108_v37 = vpop.f32.mrb[9].mxu1  ;;  %v1058_v38 = vpop.f32.mrb[10].mxu0 }
 0x10d   : > { %v807_v39 = vmax.f32 %v795_v32, 0.0  ;;  %v796_v40 = vadd.f32 %v1386_v6, %v777_v33  ;;  %v1109_v41 = vadd.f32 %v1108_v37, %v1107_v34  ;;  %v1110_v42 = vpop.f32.mrb[10].mxu1  ;;  %v1059_v43 = vpop.f32.mrb[11].mxu0 }
 0x10e   : > { %v1060_v44 = vadd.f32 %v1059_v43, %v1058_v38  ;;  %v1111_v45 = vpop.f32.mrb[11].mxu1 }
 0x10f   : > { %v1017_v46 = vpack.c.bf16 %v807_v39, %v807_v39  ;;  %v808_v47 = vmax.f32 %v796_v40, 0.0  ;;  %v737_v48 = vadd.f32 %v1109_v41, %v1057_v36  ;;  %v1112_v49 = vadd.f32 %v1111_v45, %v1110_v42 }
 0x111   : > { %868 = vst.msk [vmem:[%s1396_s20 + $0x8] sm:$0xf] %vm865_vm0, %v1017_v46  ;;  %v1018_v50 = vpack.c.bf16 %v808_v47, %v808_v47  ;;  %v778_v51 = vmul.f32 %v1381_v1, %v737_v48  ;;  %v740_v52 = vadd.f32 %v1112_v49, %v1060_v44 }
 0x112   : > { %v1061_v53 = vpop.f32.mrb[12].mxu0 }
 0x113   : > { %869 = vst.msk [vmem:[%s1396_s20 + $0xc] sm:$0xf] %vm865_vm0, %v1018_v50  ;;  %v797_v54 = vadd.f32 %v1386_v6, %v778_v51  ;;  %v779_v55 = vmul.f32 %v1381_v1, %v740_v52  ;;  %v1113_v56 = vpop.f32.mrb[12].mxu1  ;;  %v1062_v57 = vpop.f32.mrb[13].mxu0 }
 0x114   : > { %v1063_v58 = vadd.f32 %v1062_v57, %v1061_v53  ;;  %v1114_v59 = vpop.f32.mrb[13].mxu1  ;;  %v1064_v60 = vpop.f32.mrb[14].mxu0 }
 0x115   : > { %v809_v61 = vmax.f32 %v797_v54, 0.0  ;;  %v798_v62 = vadd.f32 %v1386_v6, %v779_v55  ;;  %v1115_v63 = vadd.f32 %v1114_v59, %v1113_v56  ;;  %v1116_v0 = vpop.f32.mrb[14].mxu1  ;;  %v1065_v2 = vpop.f32.mrb[15].mxu0 }
 0x116   : > { %v1066_v3 = vadd.f32 %v1065_v2, %v1064_v60  ;;  %v1117_v4 = vpop.f32.mrb[15].mxu1 }
 0x117   : > { %v1019_v5 = vpack.c.bf16 %v809_v61, %v809_v61  ;;  %v810_v7 = vmax.f32 %v798_v62, 0.0  ;;  %v745_v8 = vadd.f32 %v1115_v63, %v1063_v58  ;;  %v1118_v9 = vadd.f32 %v1117_v4, %v1116_v0 }
 0x119   : > { %870 = vst.msk [vmem:[%s1396_s20 + $0x10] sm:$0xf] %vm865_vm0, %v1019_v5  ;;  %v1020_v10 = vpack.c.bf16 %v810_v7, %v810_v7  ;;  %v780_v11 = vmul.f32 %v1381_v1, %v745_v8  ;;  %v748_v12 = vadd.f32 %v1118_v9, %v1066_v3 }
 0x11a   : > { %v1067_v13 = vpop.f32.mrb[16].mxu0 }
 0x11b   : > { %871 = vst.msk [vmem:[%s1396_s20 + $0x14] sm:$0xf] %vm865_vm0, %v1020_v10  ;;  %v799_v14 = vadd.f32 %v1386_v6, %v780_v11  ;;  %v781_v15 = vmul.f32 %v1381_v1, %v748_v12  ;;  %v1119_v16 = vpop.f32.mrb[16].mxu1  ;;  %v1068_v17 = vpop.f32.mrb[17].mxu0 }
 0x11c   : > { %v1069_v18 = vadd.f32 %v1068_v17, %v1067_v13  ;;  %v1120_v19 = vpop.f32.mrb[17].mxu1  ;;  %v1070_v20 = vpop.f32.mrb[18].mxu0 }
 0x11d   : > { %v811_v21 = vmax.f32 %v799_v14, 0.0  ;;  %v800_v22 = vadd.f32 %v1386_v6, %v781_v15  ;;  %v1121_v23 = vadd.f32 %v1120_v19, %v1119_v16  ;;  %v1122_v24 = vpop.f32.mrb[18].mxu1  ;;  %v1071_v25 = vpop.f32.mrb[19].mxu0 }
 0x11e   : > { %v1072_v26 = vadd.f32 %v1071_v25, %v1070_v20  ;;  %v1123_v27 = vpop.f32.mrb[19].mxu1 }
 0x11f   : > { %v1021_v28 = vpack.c.bf16 %v811_v21, %v811_v21  ;;  %v812_v29 = vmax.f32 %v800_v22, 0.0  ;;  %v753_v30 = vadd.f32 %v1121_v23, %v1069_v18  ;;  %v1124_v31 = vadd.f32 %v1123_v27, %v1122_v24 }
 0x121   : > { %872 = vst.msk [vmem:[%s1396_s20 + $0x18] sm:$0xf] %vm865_vm0, %v1021_v28  ;;  %v1022_v32 = vpack.c.bf16 %v812_v29, %v812_v29  ;;  %v782_v33 = vmul.f32 %v1381_v1, %v753_v30  ;;  %v756_v34 = vadd.f32 %v1124_v31, %v1072_v26 }
 0x122   : > { %v1073_v35 = vpop.f32.mrb[20].mxu0 }
 0x123   : > { %873 = vst.msk [vmem:[%s1396_s20 + $0x1c] sm:$0xf] %vm865_vm0, %v1022_v32  ;;  %v801_v36 = vadd.f32 %v1386_v6, %v782_v33  ;;  %v783_v37 = vmul.f32 %v1381_v1, %v756_v34  ;;  %v1125_v38 = vpop.f32.mrb[20].mxu1  ;;  %v1074_v39 = vpop.f32.mrb[21].mxu0 }
 0x124   : > { %v1075_v40 = vadd.f32 %v1074_v39, %v1073_v35  ;;  %v1126_v41 = vpop.f32.mrb[21].mxu1  ;;  %v1076_v42 = vpop.f32.mrb[22].mxu0 }
 0x125   : > { %v813_v43 = vmax.f32 %v801_v36, 0.0  ;;  %v802_v44 = vadd.f32 %v1386_v6, %v783_v37  ;;  %v1127_v45 = vadd.f32 %v1126_v41, %v1125_v38  ;;  %v1128_v46 = vpop.f32.mrb[22].mxu1  ;;  %v1077_v47 = vpop.f32.mrb[23].mxu0 }
 0x126   : > { %v1078_v48 = vadd.f32 %v1077_v47, %v1076_v42  ;;  %v1129_v49 = vpop.f32.mrb[23].mxu1 }
 0x127   : > { %v1023_v50 = vpack.c.bf16 %v813_v43, %v813_v43  ;;  %v814_v51 = vmax.f32 %v802_v44, 0.0  ;;  %v761_v52 = vadd.f32 %v1127_v45, %v1075_v40  ;;  %v1130_v53 = vadd.f32 %v1129_v49, %v1128_v46 }
 0x129   : > { %874 = vst.msk [vmem:[%s1396_s20 + $0x20] sm:$0xf] %vm865_vm0, %v1023_v50  ;;  %v1024_v54 = vpack.c.bf16 %v814_v51, %v814_v51  ;;  %v784_v55 = vmul.f32 %v1381_v1, %v761_v52  ;;  %v764_v56 = vadd.f32 %v1130_v53, %v1078_v48 }
 0x12b   : > { %875 = vst.msk [vmem:[%s1396_s20 + $0x24] sm:$0xf] %vm865_vm0, %v1024_v54  ;;  %v803_v57 = vadd.f32 %v1386_v6, %v784_v55  ;;  %v785_v58 = vmul.f32 %v1381_v1, %v764_v56 }
 0x12d   : > { %v815_v59 = vmax.f32 %v803_v57, 0.0  ;;  %v804_v60 = vadd.f32 %v1386_v6, %v785_v58 }
 0x12f   : > { %v1025_v61 = vpack.c.bf16 %v815_v59, %v815_v59  ;;  %v816_v62 = vmax.f32 %v804_v60, 0.0 }
 0x131   : > { %876 = vst.msk [vmem:[%s1396_s20 + $0x28] sm:$0xf] %vm865_vm0, %v1025_v61  ;;  %v1026_v63 = vpack.c.bf16 %v816_v62, %v816_v62 }
 0x133   : > { %877 = vst.msk [vmem:[%s1396_s20 + $0x2c] sm:$0xf] %vm865_vm0, %v1026_v63 }
 0x134 PF: > { %s14_s15 = sadd.s32 1, %s1213_s15  }
 0x135   : > { %p11_p4 = scmp.ge.s32.totalorder %s14_s15, 4  }
 0x137   :  { %13 = sbr.rel (!%p11_p4) target bundleno = 1 (0x1), region = 66 }

// kernel: dqn_forward.6
= control target key start
LH: loop header
LB: loop body
LE: loop exit
PB: predicated region body
PF: predicated region fallthrough
CT: control target
= control target key end

     0   :  { %s1267_s15 = smov 0   ;;  %s1434_s0 = inlined_call_operand.vmem [shape: bf16[128,576], index: 0, kind: input, shape index: {}]   ;;  %s1435_s1 = inlined_call_operand.vmem [shape: bf16[576,64], index: 1, kind: input, shape index: {}]   ;;  %s1436_s2 = inlined_call_operand.vmem [shape: f32[1,64], index: 2, kind: input, shape index: {}]   ;;  %s1437_s3 = inlined_call_operand.vmem [shape: f32[1,64], index: 3, kind: input, shape index: {}]   ;;  %s1438_s4 = inlined_call_operand.vmem [shape: bf16[128,64], index: 4, kind: output, shape index: {}]  }
   0x1 LB: > { %s960_s16 = sadd.s32 4294967295, %s1240_s15   ;;  %p964_p0 = scmp.ge.s32.totalorder %s1240_s15, 1  ;;  %s1240_s15 = sphi %s1267_s15, %s14_s15  }
   0x2   : > { %p164_p1 = scmp.lt.s32.totalorder %s1240_s15, 3 }
   0x4   : > { %p165_p2 = pnand %p964_p0, %p164_p1 }
   0x5   : > { %v1170_v0 = vld [vmem:[%s1435_s1 + $0x40] sm:$0xff] (!%p165_p2)   ;;  %v1174_v4 = vld [vmem:[%s1435_s1 + $0x48] sm:$0xff] (!%p165_p2)   ;;  %v1178_v8 = vld [vmem:[%s1435_s1 + $0x50] sm:$0xff] (!%p165_p2)   ;;  %s965_s23 = sshll.u32 (!%p165_p2), %s960_s16, 3  ;;  %vm617_vm0 = vcmask (!%p165_p2), 523264   ;;  %vm895_vm1 = vcmask (!%p165_p2), 519168  }
   0x6   : > { %168 = sbr.rel (%p165_p2) target bundleno = 298 (0x12a), region = 36  ;;  %v1171_v1 = vld [vmem:[%s1435_s1 + $0xc0] sm:$0xff] (!%p165_p2)   ;;  %1049 = vmatprep.subr.bf16.mxu0 (!%p165_p2), %v1170_v0  ;;  %v1175_v5 = vld [vmem:[%s1435_s1 + $0xc8] sm:$0xff] (!%p165_p2)   ;;  %v1179_v9 = vld [vmem:[%s1435_s1 + $0xd0] sm:$0xff] (!%p165_p2)   ;;  %p192_p3 = scmp.lt.s32.totalorder (!%p165_p2), %s965_s23, 15 }
   0x7   : > { %v1172_v2 = vld [vmem:[%s1435_s1] sm:$0xff] (!%p165_p2)   ;;  %1089 = vmatprep.subr.bf16.mxu1 (!%p165_p2), %v1171_v1  ;;  %v1176_v6 = vld [vmem:[%s1435_s1 + $0x8] sm:$0xff] (!%p165_p2)   ;;  %v1180_v10 = vld [vmem:[%s1435_s1 + $0x10] sm:$0xff] (!%p165_p2)  }
   0x8   : > { %v1173_v3 = vld [vmem:[%s1435_s1 + $0x80] sm:$0xff] (!%p165_p2)   ;;  %1050 = vmatpush3.bf16.msra.mxu0 (!%p165_p2), %v1172_v2  ;;  %v1177_v7 = vld [vmem:[%s1435_s1 + $0x88] sm:$0xff] (!%p165_p2)   ;;  %v1181_v11 = vld [vmem:[%s1435_s1 + $0x90] sm:$0xff] (!%p165_p2)  }
   0x9   : > { %1090 = vmatpush3.bf16.msra.mxu1 (!%p165_p2), %v1173_v3  ;;  %1051 = vmatprep.subr.bf16.mxu0 (!%p165_p2), %v1174_v4  ;;  %v1182_v12 = vld [vmem:[%s1435_s1 + $0x58] sm:$0xff] (!%p165_p2)   ;;  %v1186_v16 = vld [vmem:[%s1435_s1 + $0x60] sm:$0xff] (!%p165_p2)   ;;  %v1190_v20 = vld [vmem:[%s1435_s1 + $0x68] sm:$0xff] (!%p165_p2)  }
   0xa   : > { %1091 = vmatprep.subr.bf16.mxu1 (!%p165_p2), %v1175_v5  ;;  %v1183_v13 = vld [vmem:[%s1435_s1 + $0xd8] sm:$0xff] (!%p165_p2)   ;;  %v1187_v17 = vld [vmem:[%s1435_s1 + $0xe0] sm:$0xff] (!%p165_p2)   ;;  %v1191_v21 = vld [vmem:[%s1435_s1 + $0xe8] sm:$0xff] (!%p165_p2)  }
   0xb   : > { %v1184_v14 = vld [vmem:[%s1435_s1 + $0x18] sm:$0xff] (!%p165_p2)   ;;  %v1188_v18 = vld [vmem:[%s1435_s1 + $0x20] sm:$0xff] (!%p165_p2)   ;;  %v1192_v22 = vld [vmem:[%s1435_s1 + $0x28] sm:$0xff] (!%p165_p2)  }
   0xc   : > { %1052 = vmatpush3.bf16.msra.mxu0 (!%p165_p2), %v1176_v6  ;;  %v1185_v15 = vld [vmem:[%s1435_s1 + $0x98] sm:$0xff] (!%p165_p2)   ;;  %v1189_v19 = vld [vmem:[%s1435_s1 + $0xa0] sm:$0xff] (!%p165_p2)   ;;  %v1193_v23 = vld [vmem:[%s1435_s1 + $0xa8] sm:$0xff] (!%p165_p2)  }
   0xd   : > { %1092 = vmatpush3.bf16.msra.mxu1 %v1177_v7  ;;  %1053 = vmatprep.subr.bf16.mxu0 %v1178_v8  ;;  %s1440_s23 = smov (!%p192_p3, %s965_s23), 15  ;;  %v1194_v24 = vld [vmem:[%s1435_s1 + $0x70] sm:$0xff]   ;;  %v1198_v28 = vld [vmem:[%s1435_s1 + $0x78] sm:$0xff]   ;;  %v1208_v36 = vld [vmem:[%s1435_s1 + $0x100] sm:$0xff]  }
   0xe   : > { %1093 = vmatprep.subr.bf16.mxu1 %v1179_v9  ;;  %v1195_v25 = vld [vmem:[%s1435_s1 + $0xf0] sm:$0xff]   ;;  %s1161_s21 = smul.u32 20, %s1440_s23  ;;  %v1199_v29 = vld [vmem:[%s1435_s1 + $0xf8] sm:$0xff]   ;;  %v1215_v39 = vld [vmem:[%s1435_s1 + $0x108] sm:$0xff]   ;;  %s968_s26 = sshll.u32 %s1440_s23, 2 }
   0xf   : > { %v1196_v26 = vld [vmem:[%s1435_s1 + $0x30] sm:$0xff]   ;;  %v1200_v30 = vld [vmem:[%s1435_s1 + $0x38] sm:$0xff]   ;;  %s202_s29 = scalar_lea.vmem %s1438_s4, %s968_s26 }
  0x10   : > { %1054 = vmatpush3.bf16.msra.mxu0 %v1180_v10  ;;  %v1197_v27 = vld [vmem:[%s1435_s1 + $0xb0] sm:$0xff]   ;;  %s1373_s6 = scalar_lea.vmem %s1434_s0, %s1161_s21  ;;  %v1201_v31 = vld [vmem:[%s1435_s1 + $0xb8] sm:$0xff]  }
  0x11   : > { %1094 = vmatpush3.bf16.msra.mxu1 %v1181_v11  ;;  %1055 = vmatprep.subr.bf16.mxu0 %v1182_v12  ;;  %v1202_v32 = vld [vmem:[%s1373_s6] ss:$20 sps:$4 sm:$0xff]   ;;  %v1204_v33 = vld [vmem:[%s1373_s6 + $0x4] ss:$20 sps:$4 sm:$0xff]   ;;  %v1205_v34 = vld [vmem:[%s1373_s6 + $0x8] ss:$20 sps:$4 sm:$0xff]  }
  0x12   : > { %1095 = vmatprep.subr.bf16.mxu1 %v1183_v13  ;;  %v1207_v35 = vld [vmem:[%s1373_s6 + $0xc] ss:$20 sps:$4 sm:$0xff]   ;;  %662 = vmatprep.mubr.bf16.mxu0 %v1204_v33  ;;  %v1211_v38 = vld [vmem:[%s1373_s6 + $0x34] ss:$20 sps:$4 sm:$0xff]   ;;  %v1214_v41 = vld [vmem:[%s1373_s6 + $0x30] ss:$20 sps:$4 sm:$0xff]  }
  0x13   : > { %727 = vmatprep.mubr.bf16.mxu1 %v1207_v35  ;;  %v1209_v37 = vld [vmem:[%s1373_s6 + $0x2c] ss:$20 sps:$4 sm:$0xff]   ;;  %v1213_v40 = vld [vmem:[%s1373_s6 + $0x28] ss:$20 sps:$4 sm:$0xff]   ;;  %v1222_v44 = vld [vmem:[%s1435_s1 + $0x110] sm:$0xff]  }
  0x14   : > { %1056 = vmatpush3.bf16.msra.mxu0 %v1184_v14  ;;  %v1216_v42 = vld [vmem:[%s1373_s6 + $0x54] ss:$20 sps:$4 sm:$0xff]   ;;  %v1218_v43 = vld [vmem:[%s1373_s6 + $0x5c] ss:$20 sps:$4 sm:$0xff]   ;;  %v1221_v47 = vld [vmem:[%s1373_s6 + $0x58] ss:$20 sps:$4 sm:$0xff]  }
  0x15   : > { %1096 = vmatpush3.bf16.msra.mxu1 %v1185_v15  ;;  %1057 = vmatprep.subr.bf16.mxu0 %v1186_v16  ;;  %v1229_v45 = vld [vmem:[%s1435_s1 + $0x118] sm:$0xff]   ;;  %v1220_v46 = vld [vmem:[%s1373_s6 + $0x50] ss:$20 sps:$4 sm:$0xff]   ;;  %v1228_v51 = vld [vmem:[%s1373_s6 + $0x80] ss:$20 sps:$4 sm:$0xff]  }
  0x16   : > { %1097 = vmatprep.subr.bf16.mxu1 %v1187_v17  ;;  %v1223_v48 = vld [vmem:[%s1373_s6 + $0x7c] ss:$20 sps:$4 sm:$0xff]   ;;  %v1225_v49 = vld [vmem:[%s1373_s6 + $0x84] ss:$20 sps:$4 sm:$0xff]   ;;  %v1231_v53 = vld [vmem:[%s1373_s6 + $0x60] ss:$20 sps:$4 sm:$0xff]  }
  0x17   : > { %v1227_v50 = vld [vmem:[%s1373_s6 + $0x78] ss:$20 sps:$4 sm:$0xff]   ;;  %v1230_v52 = vld [vmem:[%s1373_s6 + $0x10] ss:$20 sps:$4 sm:$0xff]   ;;  %v1233_v55 = vld [vmem:[%s1373_s6 + $0x88] ss:$20 sps:$4 sm:$0xff]  }
  0x18   : > { %1058 = vmatpush3.bf16.msra.mxu0 %v1188_v18  ;;  %v1232_v54 = vld [vmem:[%s1373_s6 + $0x38] ss:$20 sps:$4 sm:$0xff]  }
  0x19   : > { %1098 = vmatpush3.bf16.msra.mxu1 %v1189_v19  ;;  %1059 = vmatprep.subr.bf16.mxu0 %v1190_v20 }
  0x1a   : > { %1099 = vmatprep.subr.bf16.mxu1 %v1191_v21 }
  0x1c   : > { %1060 = vmatpush3.bf16.msra.mxu0 %v1192_v22 }
  0x1d   : > { %1100 = vmatpush3.bf16.msra.mxu1 %v1193_v23  ;;  %1061 = vmatprep.subr.bf16.mxu0 %v1194_v24 }
  0x1e   : > { %1101 = vmatprep.subr.bf16.mxu1 %v1195_v25 }
  0x20   : > { %1062 = vmatpush3.bf16.msra.mxu0 %v1196_v26 }
  0x21   : > { %1102 = vmatpush3.bf16.msra.mxu1 %v1197_v27  ;;  %1063 = vmatprep.subr.bf16.mxu0 %v1198_v28 }
  0x22   : > { %1103 = vmatprep.subr.bf16.mxu1 %v1199_v29 }
  0x24   : > { %1064 = vmatpush3.bf16.msra.mxu0 %v1200_v30 }
  0x25   : > { %1104 = vmatpush3.bf16.msra.mxu1 %v1201_v31  ;;  %1137 = vmatprep.subr.bf16.mxu0 %v1208_v36 }
  0x26   : > { %1153 = vmatprep.subr.bf16.mxu1 %v1208_v36 }
  0x27   : > { %663 = vmatmul.mubr.bf16.vlgmr.msra.gmra.mrb[0].mxu0 %v1202_v32 }
  0x28   : > { %728 = vmatmul.mubr.bf16.vlgmr.msra.gmra.mrb[0].mxu1 %v1205_v34  ;;  %1138 = vmatpush3.bf16.msra.mxu0 %v1208_v36 }
  0x29   : > { %1157 = vmatpush3.bf16.msra.mxu1 %v1208_v36  ;;  %670 = vmatprep.mubr.bf16.mxu0 %v1209_v37 }
  0x2a   : > { %735 = vmatprep.mubr.bf16.mxu1 %v1211_v38  ;;  %1139 = vmatprep.subr.bf16.mxu0 %v1215_v39 }
  0x2b   : > { %1154 = vmatprep.subr.bf16.mxu1 %v1215_v39 }
  0x2c   : > { %1140 = vmatpush3.bf16.msra.mxu0 %v1215_v39 }
  0x2d   : > { %1158 = vmatpush3.bf16.msra.mxu1 %v1215_v39  ;;  %1141 = vmatprep.subr.bf16.mxu0 %v1222_v44 }
  0x2e   : > { %1155 = vmatprep.subr.bf16.mxu1 %v1222_v44 }
  0x2f   : > { %671 = vmatmul.mubr.bf16.gmra.mrb[4].mxu0 %v1213_v40 }
  0x30   : > { %736 = vmatmul.mubr.bf16.gmra.mrb[4].mxu1 %v1214_v41  ;;  %678 = vmatprep.mubr.bf16.mxu0 %v1216_v42 }
  0x31   : > { %743 = vmatprep.mubr.bf16.mxu1 %v1218_v43  ;;  %1142 = vmatpush3.bf16.msra.mxu0 %v1222_v44 }
  0x32   : > { %1159 = vmatpush3.bf16.msra.mxu1 %v1222_v44  ;;  %1143 = vmatprep.subr.bf16.mxu0 %v1229_v45 }
  0x33   : > { %1156 = vmatprep.subr.bf16.mxu1 %v1229_v45 }
  0x35   : > { %1144 = vmatpush3.bf16.msra.mxu0 %v1229_v45 }
  0x36   : > { %1160 = vmatpush3.bf16.msra.mxu1 %v1229_v45 }
  0x37   : > { %679 = vmatmul.mubr.bf16.gmra.mrb[8].mxu0 %v1220_v46 }
  0x38   : > { %744 = vmatmul.mubr.bf16.gmra.mrb[8].mxu1 %v1221_v47  ;;  %686 = vmatprep.mubr.bf16.mxu0 %v1223_v48 }
  0x39   : > { %751 = vmatprep.mubr.bf16.mxu1 %v1225_v49  ;;  %v1029_v49 = vld [vmem:[%s1436_s2] ss:$0 sm:$0xff] }
  0x3f   : > { %687 = vmatmul.mubr.bf16.gmra.mrb[12].mxu0 %v1227_v50 }
  0x40   : > { %752 = vmatmul.mubr.bf16.gmra.mrb[12].mxu1 %v1228_v51  ;;  %1145 = vmatprep.mubr.msk.bf16.mxu0 %vm617_vm0, %v1230_v52 }
  0x41   : > { %1149 = vmatprep.mubr.msk.bf16.mxu1 %vm617_vm0, %v1231_v53  ;;  %v1030_v53 = vld [vmem:[%s1437_s3] ss:$0 sm:$0xff] }
  0x47   : > { %1146 = vmatmul.mubr.msk.bf16.vlgmr.msra.gmra.mrb[16].mxu0 %vm617_vm0, %v1232_v54 }
  0x48   : > { %1150 = vmatmul.mubr.msk.bf16.vlgmr.msra.gmra.mrb[16].mxu1 %vm617_vm0, %v1233_v55 }
  0xfa   : > { %v1065_v56 = vpop.f32.mrb[0].mxu0 }
  0xfb   : > { %v1105_v57 = vpop.f32.mrb[0].mxu1  ;;  %v1066_v58 = vpop.f32.mrb[1].mxu0 }
  0xfc   : > { %v1067_v59 = vadd.f32 %v1066_v58, %v1065_v56  ;;  %v1106_v60 = vpop.f32.mrb[1].mxu1  ;;  %v1068_v61 = vpop.f32.mrb[2].mxu0 }
  0xfd   : > { %v1107_v62 = vadd.f32 %v1106_v60, %v1105_v57  ;;  %v1108_v63 = vpop.f32.mrb[2].mxu1  ;;  %v1069_v0 = vpop.f32.mrb[3].mxu0 }
  0xfe   : > { %v1070_v1 = vadd.f32 %v1069_v0, %v1068_v61  ;;  %v1109_v2 = vpop.f32.mrb[3].mxu1 }
  0xff   : > { %v1110_v3 = vadd.f32 %v1109_v2, %v1108_v63  ;;  %v730_v4 = vadd.f32 %v1107_v62, %v1067_v59 }
 0x101   : > { %v733_v5 = vadd.f32 %v1110_v3, %v1070_v1 }
 0x102   : > { %v1071_v6 = vpop.f32.mrb[4].mxu0 }
 0x103   : > { %v1111_v7 = vpop.f32.mrb[4].mxu1  ;;  %v1072_v8 = vpop.f32.mrb[5].mxu0 }
 0x104   : > { %v1073_v9 = vadd.f32 %v1072_v8, %v1071_v6  ;;  %v1112_v10 = vpop.f32.mrb[5].mxu1  ;;  %v1074_v11 = vpop.f32.mrb[6].mxu0 }
 0x105   : > { %v1113_v12 = vadd.f32 %v1112_v10, %v1111_v7  ;;  %v1114_v13 = vpop.f32.mrb[6].mxu1  ;;  %v1075_v14 = vpop.f32.mrb[7].mxu0 }
 0x106   : > { %v1076_v15 = vadd.f32 %v1075_v14, %v1074_v11  ;;  %v1115_v16 = vpop.f32.mrb[7].mxu1 }
 0x107   : > { %v1116_v17 = vadd.f32 %v1115_v16, %v1114_v13  ;;  %v738_v18 = vadd.f32 %v1113_v12, %v1073_v9 }
 0x109   : > { %v741_v19 = vadd.f32 %v1116_v17, %v1076_v15 }
 0x10a   : > { %v1077_v20 = vpop.f32.mrb[8].mxu0 }
 0x10b   : > { %v1117_v21 = vpop.f32.mrb[8].mxu1  ;;  %v1078_v22 = vpop.f32.mrb[9].mxu0 }
 0x10c   : > { %v1079_v23 = vadd.f32 %v1078_v22, %v1077_v20  ;;  %v1118_v24 = vpop.f32.mrb[9].mxu1  ;;  %v1080_v25 = vpop.f32.mrb[10].mxu0 }
 0x10d   : > { %v1119_v26 = vadd.f32 %v1118_v24, %v1117_v21  ;;  %v1120_v27 = vpop.f32.mrb[10].mxu1  ;;  %v1081_v28 = vpop.f32.mrb[11].mxu0 }
 0x10e   : > { %v1082_v29 = vadd.f32 %v1081_v28, %v1080_v25  ;;  %v1121_v30 = vpop.f32.mrb[11].mxu1 }
 0x10f   : > { %v1122_v31 = vadd.f32 %v1121_v30, %v1120_v27  ;;  %v746_v32 = vadd.f32 %v1119_v26, %v1079_v23 }
 0x111   : > { %v749_v33 = vadd.f32 %v1122_v31, %v1082_v29 }
 0x112   : > { %v1083_v34 = vpop.f32.mrb[12].mxu0 }
 0x113   : > { %v1123_v35 = vpop.f32.mrb[12].mxu1  ;;  %v1084_v36 = vpop.f32.mrb[13].mxu0 }
 0x114   : > { %v1085_v37 = vadd.f32 %v1084_v36, %v1083_v34  ;;  %v1124_v38 = vpop.f32.mrb[13].mxu1  ;;  %v1086_v39 = vpop.f32.mrb[14].mxu0 }
 0x115   : > { %v1125_v40 = vadd.f32 %v1124_v38, %v1123_v35  ;;  %v1126_v41 = vpop.f32.mrb[14].mxu1  ;;  %v1087_v42 = vpop.f32.mrb[15].mxu0 }
 0x116   : > { %v1088_v43 = vadd.f32 %v1087_v42, %v1086_v39  ;;  %v1127_v44 = vpop.f32.mrb[15].mxu1 }
 0x117   : > { %v1128_v45 = vadd.f32 %v1127_v44, %v1126_v41  ;;  %v754_v46 = vadd.f32 %v1125_v40, %v1085_v37 }
 0x119   : > { %v757_v47 = vadd.f32 %v1128_v45, %v1088_v43 }
 0x11a   : > { %v1147_v48 = vpop.f32.mrb[16].mxu0 }
 0x11b   : > { %v803_v50 = vadd.f32 %v1147_v48, %v738_v18  ;;  %v1151_v51 = vpop.f32.mrb[16].mxu1  ;;  %v794_v52 = vpop.f32.mrb[17].mxu0 }
 0x11c   : > { %v819_v54 = vadd.f32 %v1151_v51, %v754_v46  ;;  %v795_v55 = vadd.f32 %v794_v52, %v730_v4  ;;  %v810_v56 = vpop.f32.mrb[17].mxu1  ;;  %v1148_v57 = vpop.f32.mrb[18].mxu0 }
 0x11d   : > { %v834_v58 = vmul.f32 %v1029_v49, %v803_v50  ;;  %v811_v59 = vadd.f32 %v810_v56, %v746_v32  ;;  %v806_v60 = vadd.f32 %v1148_v57, %v741_v19  ;;  %v1152_v61 = vpop.f32.mrb[18].mxu1  ;;  %v797_v62 = vpop.f32.mrb[19].mxu0 }
 0x11e   : > { %v838_v63 = vmul.f32 %v1029_v49, %v819_v54  ;;  %v832_v0 = vmul.f32 %v1029_v49, %v795_v55  ;;  %v822_v1 = vadd.f32 %v1152_v61, %v757_v47  ;;  %v798_v2 = vadd.f32 %v797_v62, %v733_v5  ;;  %v813_v3 = vpop.f32.mrb[19].mxu1 }
 0x11f   : > { %v849_v6 = vadd.f32 %v1030_v53, %v834_v58  ;;  %v836_v7 = vmul.f32 %v1029_v49, %v811_v59  ;;  %v835_v8 = vmul.f32 %v1029_v49, %v806_v60  ;;  %v814_v9 = vadd.f32 %v813_v3, %v749_v33 }
 0x120   : > { %v853_v10 = vadd.f32 %v1030_v53, %v838_v63  ;;  %v847_v4 = vadd.f32 %v1030_v53, %v832_v0  ;;  %v839_v11 = vmul.f32 %v1029_v49, %v822_v1  ;;  %v833_v12 = vmul.f32 %v1029_v49, %v798_v2 }
 0x121   : > { %v857_v13 = vmax.f32 %v849_v6, 0.0  ;;  %v851_v14 = vadd.f32 %v1030_v53, %v836_v7  ;;  %v850_v15 = vadd.f32 %v1030_v53, %v835_v8  ;;  %v837_v16 = vmul.f32 %v1029_v49, %v814_v9 }
 0x122   : > { %v861_v17 = vmax.f32 %v853_v10, 0.0  ;;  %v855_v5 = vmax.f32 %v847_v4, 0.0  ;;  %v854_v18 = vadd.f32 %v1030_v53, %v839_v11  ;;  %v848_v19 = vadd.f32 %v1030_v53, %v833_v12 }
 0x123   : > { %v1043_v20 = vpack.c.bf16 %v857_v13, %v857_v13  ;;  %v859_v21 = vmax.f32 %v851_v14, 0.0  ;;  %v858_v22 = vmax.f32 %v850_v15, 0.0  ;;  %v852_v23 = vadd.f32 %v1030_v53, %v837_v16 }
 0x124   : > { %v1047_v24 = vpack.c.bf16 %v861_v17, %v861_v17  ;;  %v1041_v25 = vpack.c.bf16 %v855_v5, %v855_v5  ;;  %v862_v26 = vmax.f32 %v854_v18, 0.0  ;;  %v856_v27 = vmax.f32 %v848_v19, 0.0 }
 0x125   : > { %898 = vst.msk [vmem:[%s202_s29 + $0x8] sm:$0xf] %vm895_vm1, %v1043_v20  ;;  %v1045_v28 = vpack.c.bf16 %v859_v21, %v859_v21  ;;  %v1044_v29 = vpack.c.bf16 %v858_v22, %v858_v22  ;;  %v860_v30 = vmax.f32 %v852_v23, 0.0 }
 0x126   : > { %902 = vst.msk [vmem:[%s202_s29 + $0x18] sm:$0xf] %vm895_vm1, %v1047_v24  ;;  %896 = vst.msk [vmem:[%s202_s29] sm:$0xf] %vm895_vm1, %v1041_v25  ;;  %v1048_v31 = vpack.c.bf16 %v862_v26, %v862_v26  ;;  %v1042_v32 = vpack.c.bf16 %v856_v27, %v856_v27 }
 0x127   : > { %900 = vst.msk [vmem:[%s202_s29 + $0x10] sm:$0xf] %vm895_vm1, %v1045_v28  ;;  %899 = vst.msk [vmem:[%s202_s29 + $0xc] sm:$0xf] %vm895_vm1, %v1044_v29  ;;  %v1046_v33 = vpack.c.bf16 %v860_v30, %v860_v30 }
 0x128   : > { %903 = vst.msk [vmem:[%s202_s29 + $0x1c] sm:$0xf] %vm895_vm1, %v1048_v31  ;;  %897 = vst.msk [vmem:[%s202_s29 + $0x4] sm:$0xf] %vm895_vm1, %v1042_v32 }
 0x129   : > { %901 = vst.msk [vmem:[%s202_s29 + $0x14] sm:$0xf] %vm895_vm1, %v1046_v33 }
 0x12a PF: > { %s14_s15 = sadd.s32 1, %s1240_s15  }
 0x12b   : > { %p11_p4 = scmp.ge.s32.totalorder %s14_s15, 4  }
 0x12d   :  { %13 = sbr.rel (!%p11_p4) target bundleno = 1 (0x1), region = 66 }

// kernel: dqn_forward.7
= control target key start
LH: loop header
LB: loop body
LE: loop exit
PB: predicated region body
PF: predicated region fallthrough
CT: control target
= control target key end

     0   :  { %s6637_s15 = smov 0   ;;  %s6639_s16 = smov 0   ;;  %s7992_s0 = inlined_call_operand.vmem [shape: bf16[16,3200], index: 0, kind: input, shape index: {}]   ;;  %s7993_s1 = inlined_call_operand.vmem [shape: bf16[3200,512], index: 1, kind: input, shape index: {}]   ;;  %s7994_s2 = inlined_call_operand.vmem [shape: f32[1,512], index: 2, kind: input, shape index: {}]   ;;  %s7995_s3 = inlined_call_operand.vmem [shape: bf16[512,128], index: 3, kind: input, shape index: {}]   ;;  %s7996_s4 = inlined_call_operand.vmem [shape: f32[2,16,128], index: 4, kind: output, shape index: {}]  }
   0x1   :  { %s6641_s17 = smov 0   ;;  %s6643_s18 = smov 0  }
   0x2   :  { %s6645_s19 = smov 0  }
   0x3 LB: > { %s23_s20 = sadd.s32 1, %s6605_s18  ;;  %p66_p1 = scmp.ne.s32.totalorder %s6597_s16, %s6593_s15  ;;  %s6609_s19 = sphi %s6645_s19, %s14_s19   ;;  %s6605_s18 = sphi %s6643_s18, %s8000_s18   ;;  %s6601_s17 = sphi %s6641_s17, %s7999_s17   ;;  %s6597_s16 = sphi %s6639_s16, %s7998_s16   ;;  %s6593_s15 = sphi %s6637_s15, %s7997_s15  }
   0x4   : > { %p24_p0 = scmp.ge.s32.totalorder %s23_s20, 2  ;;  %p67_p2 = scmp.eq.s32.totalorder %s6609_s19, 0 }
   0x5   : > { %s59_s22 = sadd.s32 1, %s6597_s16  ;;  %p5347_p5 = scmp.ge.s32.totalorder %s6609_s19, 2 }
   0x6   : > { %s8002_s20 = smov (%p24_p0, %s23_s20), 0  ;;  %p68_p3 = por %p67_p2, %p66_p1 }
   0x7   : > { %s56_s21 = ssub.s32 %s6605_s18, %s8002_s20  ;;  %182 = sbr.rel (%p5347_p5) target bundleno = 218 (0xda), region = 20 }
   0x8   : > { %p57_p4 = scmp.eq.s32.totalorder %s56_s21, 0 }
   0xa   : > { %s6672_s23 = scalar_select %p57_p4, %s6597_s16, %s59_s22  }
   0xe   : > { %185 = sbr.rel (!%p68_p3) target bundleno = 218 (0xda), region = 24  ;;  %s187_s24 = sand.u32 (%p68_p3), 1, %s6597_s16  }
   0xf   : > { %s5799_s25 = sshll.u32 (%p68_p3), %s6605_s18, 3  ;;  %s5875_s26 = smul.u32 (%p68_p3), 3200, %s187_s24 }
  0x10   : > { %s6680_s29 = scalar_lea.vmem (%p68_p3), %s7993_s1, %s5799_s25 }
  0x11   : > { %v1018_v0 = vld [vmem:[%s6680_s29] sm:$0xff] (%p68_p3)  ;;  %v1020_v1 = vld [vmem:[%s6680_s29 + $0x10] sm:$0xff] (%p68_p3)  ;;  %s6688_s30 = scalar_lea.vmem (%p68_p3), [#allocation2], %s5875_s26 }
  0x12   : > { %v1022_v2 = vld [vmem:[%s6680_s29 + $0x20] sm:$0xff] (%p68_p3)  ;;  %v1024_v3 = vld [vmem:[%s6680_s29 + $0x30] sm:$0xff] (%p68_p3)  ;;  %1019 = vst [vmem:[%s6688_s30] sm:$0xff] (%p68_p3), %v1018_v0  ;;  %1021 = vst [vmem:[%s6688_s30 + $0x8] sm:$0xff] (%p68_p3), %v1020_v1 }
  0x13   : > { %v1026_v4 = vld [vmem:[%s6680_s29 + $0x40] sm:$0xff] (%p68_p3)  ;;  %v1028_v5 = vld [vmem:[%s6680_s29 + $0x50] sm:$0xff] (%p68_p3)  ;;  %1023 = vst [vmem:[%s6688_s30 + $0x10] sm:$0xff] (%p68_p3), %v1022_v2  ;;  %1025 = vst [vmem:[%s6688_s30 + $0x18] sm:$0xff] (%p68_p3), %v1024_v3 }
  0x14   : > { %1027 = vst [vmem:[%s6688_s30 + $0x20] sm:$0xff] (%p68_p3), %v1026_v4  ;;  %1029 = vst [vmem:[%s6688_s30 + $0x28] sm:$0xff] (%p68_p3), %v1028_v5  ;;  %v1030_v6 = vld [vmem:[%s6680_s29 + $0x60] sm:$0xff] (%p68_p3)  ;;  %v1032_v7 = vld [vmem:[%s6680_s29 + $0x70] sm:$0xff] (%p68_p3) }
  0x15   : > { %v1034_v8 = vld [vmem:[%s6680_s29 + $0x80] sm:$0xff]  ;;  %1031 = vst [vmem:[%s6688_s30 + $0x30] sm:$0xff] %v1030_v6  ;;  %1033 = vst [vmem:[%s6688_s30 + $0x38] sm:$0xff] %v1032_v7  ;;  %v1036_v9 = vld [vmem:[%s6680_s29 + $0x90] sm:$0xff] }
  0x16   : > { %1035 = vst [vmem:[%s6688_s30 + $0x40] sm:$0xff] %v1034_v8  ;;  %v1038_v10 = vld [vmem:[%s6680_s29 + $0xa0] sm:$0xff]  ;;  %v1040_v11 = vld [vmem:[%s6680_s29 + $0xb0] sm:$0xff]  ;;  %1037 = vst [vmem:[%s6688_s30 + $0x48] sm:$0xff] %v1036_v9 }
  0x17   : > { %1039 = vst [vmem:[%s6688_s30 + $0x50] sm:$0xff] %v1038_v10  ;;  %1041 = vst [vmem:[%s6688_s30 + $0x58] sm:$0xff] %v1040_v11  ;;  %v1042_v12 = vld [vmem:[%s6680_s29 + $0xc0] sm:$0xff]  ;;  %v1044_v13 = vld [vmem:[%s6680_s29 + $0xd0] sm:$0xff] }
  0x18   : > { %v1046_v14 = vld [vmem:[%s6680_s29 + $0xe0] sm:$0xff]  ;;  %1043 = vst [vmem:[%s6688_s30 + $0x60] sm:$0xff] %v1042_v12  ;;  %1045 = vst [vmem:[%s6688_s30 + $0x68] sm:$0xff] %v1044_v13  ;;  %v1048_v15 = vld [vmem:[%s6680_s29 + $0xf0] sm:$0xff] }
  0x19   : > { %1047 = vst [vmem:[%s6688_s30 + $0x70] sm:$0xff] %v1046_v14  ;;  %v1050_v16 = vld [vmem:[%s6680_s29 + $0x100] sm:$0xff]  ;;  %v1052_v17 = vld [vmem:[%s6680_s29 + $0x110] sm:$0xff]  ;;  %1049 = vst [vmem:[%s6688_s30 + $0x78] sm:$0xff] %v1048_v15 }
  0x1a   : > { %1051 = vst [vmem:[%s6688_s30 + $0x80] sm:$0xff] %v1050_v16  ;;  %1053 = vst [vmem:[%s6688_s30 + $0x88] sm:$0xff] %v1052_v17  ;;  %v1054_v18 = vld [vmem:[%s6680_s29 + $0x120] sm:$0xff]  ;;  %v1056_v19 = vld [vmem:[%s6680_s29 + $0x130] sm:$0xff] }
  0x1b   : > { %v1058_v20 = vld [vmem:[%s6680_s29 + $0x140] sm:$0xff]  ;;  %1055 = vst [vmem:[%s6688_s30 + $0x90] sm:$0xff] %v1054_v18  ;;  %1057 = vst [vmem:[%s6688_s30 + $0x98] sm:$0xff] %v1056_v19  ;;  %v1060_v21 = vld [vmem:[%s6680_s29 + $0x150] sm:$0xff] }
  0x1c   : > { %1059 = vst [vmem:[%s6688_s30 + $0xa0] sm:$0xff] %v1058_v20  ;;  %v1062_v22 = vld [vmem:[%s6680_s29 + $0x160] sm:$0xff]  ;;  %v1064_v23 = vld [vmem:[%s6680_s29 + $0x170] sm:$0xff]  ;;  %1061 = vst [vmem:[%s6688_s30 + $0xa8] sm:$0xff] %v1060_v21 }
  0x1d   : > { %1063 = vst [vmem:[%s6688_s30 + $0xb0] sm:$0xff] %v1062_v22  ;;  %1065 = vst [vmem:[%s6688_s30 + $0xb8] sm:$0xff] %v1064_v23  ;;  %v1066_v24 = vld [vmem:[%s6680_s29 + $0x180] sm:$0xff]  ;;  %v1068_v25 = vld [vmem:[%s6680_s29 + $0x190] sm:$0xff] }
  0x1e   : > { %v1070_v26 = vld [vmem:[%s6680_s29 + $0x1a0] sm:$0xff]  ;;  %1067 = vst [vmem:[%s6688_s30 + $0xc0] sm:$0xff] %v1066_v24  ;;  %1069 = vst [vmem:[%s6688_s30 + $0xc8] sm:$0xff] %v1068_v25  ;;  %v1072_v27 = vld [vmem:[%s6680_s29 + $0x1b0] sm:$0xff] }
  0x1f   : > { %1071 = vst [vmem:[%s6688_s30 + $0xd0] sm:$0xff] %v1070_v26  ;;  %v1074_v28 = vld [vmem:[%s6680_s29 + $0x1c0] sm:$0xff]  ;;  %v1076_v29 = vld [vmem:[%s6680_s29 + $0x1d0] sm:$0xff]  ;;  %1073 = vst [vmem:[%s6688_s30 + $0xd8] sm:$0xff] %v1072_v27 }
  0x20   : > { %1075 = vst [vmem:[%s6688_s30 + $0xe0] sm:$0xff] %v1074_v28  ;;  %1077 = vst [vmem:[%s6688_s30 + $0xe8] sm:$0xff] %v1076_v29  ;;  %v1078_v30 = vld [vmem:[%s6680_s29 + $0x1e0] sm:$0xff]  ;;  %v1080_v31 = vld [vmem:[%s6680_s29 + $0x1f0] sm:$0xff] }
  0x21   : > { %v1082_v32 = vld [vmem:[%s6680_s29 + $0x200] sm:$0xff]  ;;  %1079 = vst [vmem:[%s6688_s30 + $0xf0] sm:$0xff] %v1078_v30  ;;  %1081 = vst [vmem:[%s6688_s30 + $0xf8] sm:$0xff] %v1080_v31  ;;  %v1084_v33 = vld [vmem:[%s6680_s29 + $0x210] sm:$0xff] }
  0x22   : > { %1083 = vst [vmem:[%s6688_s30 + $0x100] sm:$0xff] %v1082_v32  ;;  %v1086_v34 = vld [vmem:[%s6680_s29 + $0x220] sm:$0xff]  ;;  %v1088_v35 = vld [vmem:[%s6680_s29 + $0x230] sm:$0xff]  ;;  %1085 = vst [vmem:[%s6688_s30 + $0x108] sm:$0xff] %v1084_v33 }
  0x23   : > { %1087 = vst [vmem:[%s6688_s30 + $0x110] sm:$0xff] %v1086_v34  ;;  %1089 = vst [vmem:[%s6688_s30 + $0x118] sm:$0xff] %v1088_v35  ;;  %v1090_v36 = vld [vmem:[%s6680_s29 + $0x240] sm:$0xff]  ;;  %v1092_v37 = vld [vmem:[%s6680_s29 + $0x250] sm:$0xff] }
  0x24   : > { %v1094_v38 = vld [vmem:[%s6680_s29 + $0x260] sm:$0xff]  ;;  %1091 = vst [vmem:[%s6688_s30 + $0x120] sm:$0xff] %v1090_v36  ;;  %1093 = vst [vmem:[%s6688_s30 + $0x128] sm:$0xff] %v1092_v37  ;;  %v1096_v39 = vld [vmem:[%s6680_s29 + $0x270] sm:$0xff] }
  0x25   : > { %1095 = vst [vmem:[%s6688_s30 + $0x130] sm:$0xff] %v1094_v38  ;;  %v1098_v40 = vld [vmem:[%s6680_s29 + $0x280] sm:$0xff]  ;;  %v1100_v41 = vld [vmem:[%s6680_s29 + $0x290] sm:$0xff]  ;;  %1097 = vst [vmem:[%s6688_s30 + $0x138] sm:$0xff] %v1096_v39 }
  0x26   : > { %1099 = vst [vmem:[%s6688_s30 + $0x140] sm:$0xff] %v1098_v40  ;;  %1101 = vst [vmem:[%s6688_s30 + $0x148] sm:$0xff] %v1100_v41  ;;  %v1102_v42 = vld [vmem:[%s6680_s29 + $0x2a0] sm:$0xff]  ;;  %v1104_v43 = vld [vmem:[%s6680_s29 + $0x2b0] sm:$0xff] }
  0x27   : > { %v1106_v44 = vld [vmem:[%s6680_s29 + $0x2c0] sm:$0xff]  ;;  %1103 = vst [vmem:[%s6688_s30 + $0x150] sm:$0xff] %v1102_v42  ;;  %1105 = vst [vmem:[%s6688_s30 + $0x158] sm:$0xff] %v1104_v43  ;;  %v1108_v45 = vld [vmem:[%s6680_s29 + $0x2d0] sm:$0xff] }
  0x28   : > { %1107 = vst [vmem:[%s6688_s30 + $0x160] sm:$0xff] %v1106_v44  ;;  %v1110_v46 = vld [vmem:[%s6680_s29 + $0x2e0] sm:$0xff]  ;;  %v1112_v47 = vld [vmem:[%s6680_s29 + $0x2f0] sm:$0xff]  ;;  %1109 = vst [vmem:[%s6688_s30 + $0x168] sm:$0xff] %v1108_v45 }
  0x29   : > { %1111 = vst [vmem:[%s6688_s30 + $0x170] sm:$0xff] %v1110_v46  ;;  %1113 = vst [vmem:[%s6688_s30 + $0x178] sm:$0xff] %v1112_v47  ;;  %v1114_v48 = vld [vmem:[%s6680_s29 + $0x300] sm:$0xff]  ;;  %v1116_v49 = vld [vmem:[%s6680_s29 + $0x310] sm:$0xff] }
  0x2a   : > { %v1118_v50 = vld [vmem:[%s6680_s29 + $0x320] sm:$0xff]  ;;  %1115 = vst [vmem:[%s6688_s30 + $0x180] sm:$0xff] %v1114_v48  ;;  %1117 = vst [vmem:[%s6688_s30 + $0x188] sm:$0xff] %v1116_v49  ;;  %v1120_v51 = vld [vmem:[%s6680_s29 + $0x330] sm:$0xff] }
  0x2b   : > { %1119 = vst [vmem:[%s6688_s30 + $0x190] sm:$0xff] %v1118_v50  ;;  %v1122_v52 = vld [vmem:[%s6680_s29 + $0x340] sm:$0xff]  ;;  %v1124_v53 = vld [vmem:[%s6680_s29 + $0x350] sm:$0xff]  ;;  %1121 = vst [vmem:[%s6688_s30 + $0x198] sm:$0xff] %v1120_v51 }
  0x2c   : > { %1123 = vst [vmem:[%s6688_s30 + $0x1a0] sm:$0xff] %v1122_v52  ;;  %1125 = vst [vmem:[%s6688_s30 + $0x1a8] sm:$0xff] %v1124_v53  ;;  %v1126_v54 = vld [vmem:[%s6680_s29 + $0x360] sm:$0xff]  ;;  %v1128_v55 = vld [vmem:[%s6680_s29 + $0x370] sm:$0xff] }
  0x2d   : > { %v1130_v56 = vld [vmem:[%s6680_s29 + $0x380] sm:$0xff]  ;;  %1127 = vst [vmem:[%s6688_s30 + $0x1b0] sm:$0xff] %v1126_v54  ;;  %1129 = vst [vmem:[%s6688_s30 + $0x1b8] sm:$0xff] %v1128_v55  ;;  %v1132_v57 = vld [vmem:[%s6680_s29 + $0x390] sm:$0xff] }
  0x2e   : > { %1131 = vst [vmem:[%s6688_s30 + $0x1c0] sm:$0xff] %v1130_v56  ;;  %v1134_v58 = vld [vmem:[%s6680_s29 + $0x3a0] sm:$0xff]  ;;  %v1136_v59 = vld [vmem:[%s6680_s29 + $0x3b0] sm:$0xff]  ;;  %1133 = vst [vmem:[%s6688_s30 + $0x1c8] sm:$0xff] %v1132_v57 }
  0x2f   : > { %1135 = vst [vmem:[%s6688_s30 + $0x1d0] sm:$0xff] %v1134_v58  ;;  %1137 = vst [vmem:[%s6688_s30 + $0x1d8] sm:$0xff] %v1136_v59  ;;  %v1138_v60 = vld [vmem:[%s6680_s29 + $0x3c0] sm:$0xff]  ;;  %v1140_v61 = vld [vmem:[%s6680_s29 + $0x3d0] sm:$0xff] }
  0x30   : > { %v1142_v62 = vld [vmem:[%s6680_s29 + $0x3e0] sm:$0xff]  ;;  %1139 = vst [vmem:[%s6688_s30 + $0x1e0] sm:$0xff] %v1138_v60  ;;  %1141 = vst [vmem:[%s6688_s30 + $0x1e8] sm:$0xff] %v1140_v61  ;;  %v1144_v63 = vld [vmem:[%s6680_s29 + $0x3f0] sm:$0xff] }
  0x31   : > { %1143 = vst [vmem:[%s6688_s30 + $0x1f0] sm:$0xff] %v1142_v62  ;;  %v1146_v0 = vld [vmem:[%s6680_s29 + $0x400] sm:$0xff]  ;;  %v1148_v1 = vld [vmem:[%s6680_s29 + $0x410] sm:$0xff]  ;;  %1145 = vst [vmem:[%s6688_s30 + $0x1f8] sm:$0xff] %v1144_v63 }
  0x32   : > { %1147 = vst [vmem:[%s6688_s30 + $0x200] sm:$0xff] %v1146_v0  ;;  %1149 = vst [vmem:[%s6688_s30 + $0x208] sm:$0xff] %v1148_v1  ;;  %v1150_v2 = vld [vmem:[%s6680_s29 + $0x420] sm:$0xff]  ;;  %v1152_v3 = vld [vmem:[%s6680_s29 + $0x430] sm:$0xff] }
  0x33   : > { %v1154_v4 = vld [vmem:[%s6680_s29 + $0x440] sm:$0xff]  ;;  %1151 = vst [vmem:[%s6688_s30 + $0x210] sm:$0xff] %v1150_v2  ;;  %1153 = vst [vmem:[%s6688_s30 + $0x218] sm:$0xff] %v1152_v3  ;;  %v1156_v5 = vld [vmem:[%s6680_s29 + $0x450] sm:$0xff] }
  0x34   : > { %1155 = vst [vmem:[%s6688_s30 + $0x220] sm:$0xff] %v1154_v4  ;;  %v1158_v6 = vld [vmem:[%s6680_s29 + $0x460] sm:$0xff]  ;;  %v1160_v7 = vld [vmem:[%s6680_s29 + $0x470] sm:$0xff]  ;;  %1157 = vst [vmem:[%s6688_s30 + $0x228] sm:$0xff] %v1156_v5 }
  0x35   : > { %1159 = vst [vmem:[%s6688_s30 + $0x230] sm:$0xff] %v1158_v6  ;;  %1161 = vst [vmem:[%s6688_s30 + $0x238] sm:$0xff] %v1160_v7  ;;  %v1162_v8 = vld [vmem:[%s6680_s29 + $0x480] sm:$0xff]  ;;  %v1164_v9 = vld [vmem:[%s6680_s29 + $0x490] sm:$0xff] }
  0x36   : > { %v1166_v10 = vld [vmem:[%s6680_s29 + $0x4a0] sm:$0xff]  ;;  %1163 = vst [vmem:[%s6688_s30 + $0x240] sm:$0xff] %v1162_v8  ;;  %1165 = vst [vmem:[%s6688_s30 + $0x248] sm:$0xff] %v1164_v9  ;;  %v1168_v11 = vld [vmem:[%s6680_s29 + $0x4b0] sm:$0xff] }
  0x37   : > { %1167 = vst [vmem:[%s6688_s30 + $0x250] sm:$0xff] %v1166_v10  ;;  %v1170_v12 = vld [vmem:[%s6680_s29 + $0x4c0] sm:$0xff]  ;;  %v1172_v13 = vld [vmem:[%s6680_s29 + $0x4d0] sm:$0xff]  ;;  %1169 = vst [vmem:[%s6688_s30 + $0x258] sm:$0xff] %v1168_v11 }
  0x38   : > { %1171 = vst [vmem:[%s6688_s30 + $0x260] sm:$0xff] %v1170_v12  ;;  %1173 = vst [vmem:[%s6688_s30 + $0x268] sm:$0xff] %v1172_v13  ;;  %v1174_v14 = vld [vmem:[%s6680_s29 + $0x4e0] sm:$0xff]  ;;  %v1176_v15 = vld [vmem:[%s6680_s29 + $0x4f0] sm:$0xff] }
  0x39   : > { %v1178_v16 = vld [vmem:[%s6680_s29 + $0x500] sm:$0xff]  ;;  %1175 = vst [vmem:[%s6688_s30 + $0x270] sm:$0xff] %v1174_v14  ;;  %1177 = vst [vmem:[%s6688_s30 + $0x278] sm:$0xff] %v1176_v15  ;;  %v1180_v17 = vld [vmem:[%s6680_s29 + $0x510] sm:$0xff] }
  0x3a   : > { %1179 = vst [vmem:[%s6688_s30 + $0x280] sm:$0xff] %v1178_v16  ;;  %v1182_v18 = vld [vmem:[%s6680_s29 + $0x520] sm:$0xff]  ;;  %v1184_v19 = vld [vmem:[%s6680_s29 + $0x530] sm:$0xff]  ;;  %1181 = vst [vmem:[%s6688_s30 + $0x288] sm:$0xff] %v1180_v17 }
  0x3b   : > { %1183 = vst [vmem:[%s6688_s30 + $0x290] sm:$0xff] %v1182_v18  ;;  %1185 = vst [vmem:[%s6688_s30 + $0x298] sm:$0xff] %v1184_v19  ;;  %v1186_v20 = vld [vmem:[%s6680_s29 + $0x540] sm:$0xff]  ;;  %v1188_v21 = vld [vmem:[%s6680_s29 + $0x550] sm:$0xff] }
  0x3c   : > { %v1190_v22 = vld [vmem:[%s6680_s29 + $0x560] sm:$0xff]  ;;  %1187 = vst [vmem:[%s6688_s30 + $0x2a0] sm:$0xff] %v1186_v20  ;;  %1189 = vst [vmem:[%s6688_s30 + $0x2a8] sm:$0xff] %v1188_v21  ;;  %v1192_v23 = vld [vmem:[%s6680_s29 + $0x570] sm:$0xff] }
  0x3d   : > { %1191 = vst [vmem:[%s6688_s30 + $0x2b0] sm:$0xff] %v1190_v22  ;;  %v1194_v24 = vld [vmem:[%s6680_s29 + $0x580] sm:$0xff]  ;;  %v1196_v25 = vld [vmem:[%s6680_s29 + $0x590] sm:$0xff]  ;;  %1193 = vst [vmem:[%s6688_s30 + $0x2b8] sm:$0xff] %v1192_v23 }
  0x3e   : > { %1195 = vst [vmem:[%s6688_s30 + $0x2c0] sm:$0xff] %v1194_v24  ;;  %1197 = vst [vmem:[%s6688_s30 + $0x2c8] sm:$0xff] %v1196_v25  ;;  %v1198_v26 = vld [vmem:[%s6680_s29 + $0x5a0] sm:$0xff]  ;;  %v1200_v27 = vld [vmem:[%s6680_s29 + $0x5b0] sm:$0xff] }
  0x3f   : > { %v1202_v28 = vld [vmem:[%s6680_s29 + $0x5c0] sm:$0xff]  ;;  %1199 = vst [vmem:[%s6688_s30 + $0x2d0] sm:$0xff] %v1198_v26  ;;  %1201 = vst [vmem:[%s6688_s30 + $0x2d8] sm:$0xff] %v1200_v27  ;;  %v1204_v29 = vld [vmem:[%s6680_s29 + $0x5d0] sm:$0xff] }
  0x40   : > { %1203 = vst [vmem:[%s6688_s30 + $0x2e0] sm:$0xff] %v1202_v28  ;;  %v1206_v30 = vld [vmem:[%s6680_s29 + $0x5e0] sm:$0xff]  ;;  %v1208_v31 = vld [vmem:[%s6680_s29 + $0x5f0] sm:$0xff]  ;;  %1205 = vst [vmem:[%s6688_s30 + $0x2e8] sm:$0xff] %v1204_v29 }
  0x41   : > { %1207 = vst [vmem:[%s6688_s30 + $0x2f0] sm:$0xff] %v1206_v30  ;;  %1209 = vst [vmem:[%s6688_s30 + $0x2f8] sm:$0xff] %v1208_v31  ;;  %v1210_v32 = vld [vmem:[%s6680_s29 + $0x600] sm:$0xff]  ;;  %v1212_v33 = vld [vmem:[%s6680_s29 + $0x610] sm:$0xff] }
  0x42   : > { %v1214_v34 = vld [vmem:[%s6680_s29 + $0x620] sm:$0xff]  ;;  %1211 = vst [vmem:[%s6688_s30 + $0x300] sm:$0xff] %v1210_v32  ;;  %1213 = vst [vmem:[%s6688_s30 + $0x308] sm:$0xff] %v1212_v33  ;;  %v1216_v35 = vld [vmem:[%s6680_s29 + $0x630] sm:$0xff] }
  0x43   : > { %1215 = vst [vmem:[%s6688_s30 + $0x310] sm:$0xff] %v1214_v34  ;;  %v1218_v36 = vld [vmem:[%s6680_s29 + $0x640] sm:$0xff]  ;;  %v1220_v37 = vld [vmem:[%s6680_s29 + $0x650] sm:$0xff]  ;;  %1217 = vst [vmem:[%s6688_s30 + $0x318] sm:$0xff] %v1216_v35 }
  0x44   : > { %1219 = vst [vmem:[%s6688_s30 + $0x320] sm:$0xff] %v1218_v36  ;;  %1221 = vst [vmem:[%s6688_s30 + $0x328] sm:$0xff] %v1220_v37  ;;  %v1222_v38 = vld [vmem:[%s6680_s29 + $0x660] sm:$0xff]  ;;  %v1224_v39 = vld [vmem:[%s6680_s29 + $0x670] sm:$0xff] }
  0x45   : > { %v1226_v40 = vld [vmem:[%s6680_s29 + $0x680] sm:$0xff]  ;;  %1223 = vst [vmem:[%s6688_s30 + $0x330] sm:$0xff] %v1222_v38  ;;  %1225 = vst [vmem:[%s6688_s30 + $0x338] sm:$0xff] %v1224_v39  ;;  %v1228_v41 = vld [vmem:[%s6680_s29 + $0x690] sm:$0xff] }
  0x46   : > { %1227 = vst [vmem:[%s6688_s30 + $0x340] sm:$0xff] %v1226_v40  ;;  %v1230_v42 = vld [vmem:[%s6680_s29 + $0x6a0] sm:$0xff]  ;;  %v1232_v43 = vld [vmem:[%s6680_s29 + $0x6b0] sm:$0xff]  ;;  %1229 = vst [vmem:[%s6688_s30 + $0x348] sm:$0xff] %v1228_v41 }
  0x47   : > { %1231 = vst [vmem:[%s6688_s30 + $0x350] sm:$0xff] %v1230_v42  ;;  %1233 = vst [vmem:[%s6688_s30 + $0x358] sm:$0xff] %v1232_v43  ;;  %v1234_v44 = vld [vmem:[%s6680_s29 + $0x6c0] sm:$0xff]  ;;  %v1236_v45 = vld [vmem:[%s6680_s29 + $0x6d0] sm:$0xff] }
  0x48   : > { %v1238_v46 = vld [vmem:[%s6680_s29 + $0x6e0] sm:$0xff]  ;;  %1235 = vst [vmem:[%s6688_s30 + $0x360] sm:$0xff] %v1234_v44  ;;  %1237 = vst [vmem:[%s6688_s30 + $0x368] sm:$0xff] %v1236_v45  ;;  %v1240_v47 = vld [vmem:[%s6680_s29 + $0x6f0] sm:$0xff] }
  0x49   : > { %1239 = vst [vmem:[%s6688_s30 + $0x370] sm:$0xff] %v1238_v46  ;;  %v1242_v48 = vld [vmem:[%s6680_s29 + $0x700] sm:$0xff]  ;;  %v1244_v49 = vld [vmem:[%s6680_s29 + $0x710] sm:$0xff]  ;;  %1241 = vst [vmem:[%s6688_s30 + $0x378] sm:$0xff] %v1240_v47 }
  0x4a   : > { %1243 = vst [vmem:[%s6688_s30 + $0x380] sm:$0xff] %v1242_v48  ;;  %1245 = vst [vmem:[%s6688_s30 + $0x388] sm:$0xff] %v1244_v49  ;;  %v1246_v50 = vld [vmem:[%s6680_s29 + $0x720] sm:$0xff]  ;;  %v1248_v51 = vld [vmem:[%s6680_s29 + $0x730] sm:$0xff] }
  0x4b   : > { %v1250_v52 = vld [vmem:[%s6680_s29 + $0x740] sm:$0xff]  ;;  %1247 = vst [vmem:[%s6688_s30 + $0x390] sm:$0xff] %v1246_v50  ;;  %1249 = vst [vmem:[%s6688_s30 + $0x398] sm:$0xff] %v1248_v51  ;;  %v1252_v53 = vld [vmem:[%s6680_s29 + $0x750] sm:$0xff] }
  0x4c   : > { %1251 = vst [vmem:[%s6688_s30 + $0x3a0] sm:$0xff] %v1250_v52  ;;  %v1254_v54 = vld [vmem:[%s6680_s29 + $0x760] sm:$0xff]  ;;  %v1256_v55 = vld [vmem:[%s6680_s29 + $0x770] sm:$0xff]  ;;  %1253 = vst [vmem:[%s6688_s30 + $0x3a8] sm:$0xff] %v1252_v53 }
  0x4d   : > { %1255 = vst [vmem:[%s6688_s30 + $0x3b0] sm:$0xff] %v1254_v54  ;;  %1257 = vst [vmem:[%s6688_s30 + $0x3b8] sm:$0xff] %v1256_v55  ;;  %v1258_v56 = vld [vmem:[%s6680_s29 + $0x780] sm:$0xff]  ;;  %v1260_v57 = vld [vmem:[%s6680_s29 + $0x790] sm:$0xff] }
  0x4e   : > { %v1262_v58 = vld [vmem:[%s6680_s29 + $0x7a0] sm:$0xff]  ;;  %1259 = vst [vmem:[%s6688_s30 + $0x3c0] sm:$0xff] %v1258_v56  ;;  %1261 = vst [vmem:[%s6688_s30 + $0x3c8] sm:$0xff] %v1260_v57  ;;  %v1264_v59 = vld [vmem:[%s6680_s29 + $0x7b0] sm:$0xff] }
  0x4f   : > { %1263 = vst [vmem:[%s6688_s30 + $0x3d0] sm:$0xff] %v1262_v58  ;;  %v1266_v60 = vld [vmem:[%s6680_s29 + $0x7c0] sm:$0xff]  ;;  %v1268_v61 = vld [vmem:[%s6680_s29 + $0x7d0] sm:$0xff]  ;;  %1265 = vst [vmem:[%s6688_s30 + $0x3d8] sm:$0xff] %v1264_v59 }
  0x50   : > { %1267 = vst [vmem:[%s6688_s30 + $0x3e0] sm:$0xff] %v1266_v60  ;;  %1269 = vst [vmem:[%s6688_s30 + $0x3e8] sm:$0xff] %v1268_v61  ;;  %v1270_v62 = vld [vmem:[%s6680_s29 + $0x7e0] sm:$0xff]  ;;  %v1272_v63 = vld [vmem:[%s6680_s29 + $0x7f0] sm:$0xff] }
  0x51   : > { %v1274_v0 = vld [vmem:[%s6680_s29 + $0x800] sm:$0xff]  ;;  %1271 = vst [vmem:[%s6688_s30 + $0x3f0] sm:$0xff] %v1270_v62  ;;  %1273 = vst [vmem:[%s6688_s30 + $0x3f8] sm:$0xff] %v1272_v63  ;;  %v1276_v1 = vld [vmem:[%s6680_s29 + $0x810] sm:$0xff] }
  0x52   : > { %1275 = vst [vmem:[%s6688_s30 + $0x400] sm:$0xff] %v1274_v0  ;;  %v1278_v2 = vld [vmem:[%s6680_s29 + $0x820] sm:$0xff]  ;;  %v1280_v3 = vld [vmem:[%s6680_s29 + $0x830] sm:$0xff]  ;;  %1277 = vst [vmem:[%s6688_s30 + $0x408] sm:$0xff] %v1276_v1 }
  0x53   : > { %1279 = vst [vmem:[%s6688_s30 + $0x410] sm:$0xff] %v1278_v2  ;;  %1281 = vst [vmem:[%s6688_s30 + $0x418] sm:$0xff] %v1280_v3  ;;  %v1282_v4 = vld [vmem:[%s6680_s29 + $0x840] sm:$0xff]  ;;  %v1284_v5 = vld [vmem:[%s6680_s29 + $0x850] sm:$0xff] }
  0x54   : > { %v1286_v6 = vld [vmem:[%s6680_s29 + $0x860] sm:$0xff]  ;;  %1283 = vst [vmem:[%s6688_s30 + $0x420] sm:$0xff] %v1282_v4  ;;  %1285 = vst [vmem:[%s6688_s30 + $0x428] sm:$0xff] %v1284_v5  ;;  %v1288_v7 = vld [vmem:[%s6680_s29 + $0x870] sm:$0xff] }
  0x55   : > { %1287 = vst [vmem:[%s6688_s30 + $0x430] sm:$0xff] %v1286_v6  ;;  %v1290_v8 = vld [vmem:[%s6680_s29 + $0x880] sm:$0xff]  ;;  %v1292_v9 = vld [vmem:[%s6680_s29 + $0x890] sm:$0xff]  ;;  %1289 = vst [vmem:[%s6688_s30 + $0x438] sm:$0xff] %v1288_v7 }
  0x56   : > { %1291 = vst [vmem:[%s6688_s30 + $0x440] sm:$0xff] %v1290_v8  ;;  %1293 = vst [vmem:[%s6688_s30 + $0x448] sm:$0xff] %v1292_v9  ;;  %v1294_v10 = vld [vmem:[%s6680_s29 + $0x8a0] sm:$0xff]  ;;  %v1296_v11 = vld [vmem:[%s6680_s29 + $0x8b0] sm:$0xff] }
  0x57   : > { %v1298_v12 = vld [vmem:[%s6680_s29 + $0x8c0] sm:$0xff]  ;;  %1295 = vst [vmem:[%s6688_s30 + $0x450] sm:$0xff] %v1294_v10  ;;  %1297 = vst [vmem:[%s6688_s30 + $0x458] sm:$0xff] %v1296_v11  ;;  %v1300_v13 = vld [vmem:[%s6680_s29 + $0x8d0] sm:$0xff] }
  0x58   : > { %1299 = vst [vmem:[%s6688_s30 + $0x460] sm:$0xff] %v1298_v12  ;;  %v1302_v14 = vld [vmem:[%s6680_s29 + $0x8e0] sm:$0xff]  ;;  %v1304_v15 = vld [vmem:[%s6680_s29 + $0x8f0] sm:$0xff]  ;;  %1301 = vst [vmem:[%s6688_s30 + $0x468] sm:$0xff] %v1300_v13 }
  0x59   : > { %1303 = vst [vmem:[%s6688_s30 + $0x470] sm:$0xff] %v1302_v14  ;;  %1305 = vst [vmem:[%s6688_s30 + $0x478] sm:$0xff] %v1304_v15  ;;  %v1306_v16 = vld [vmem:[%s6680_s29 + $0x900] sm:$0xff]  ;;  %v1308_v17 = vld [vmem:[%s6680_s29 + $0x910] sm:$0xff] }
  0x5a   : > { %v1310_v18 = vld [vmem:[%s6680_s29 + $0x920] sm:$0xff]  ;;  %1307 = vst [vmem:[%s6688_s30 + $0x480] sm:$0xff] %v1306_v16  ;;  %1309 = vst [vmem:[%s6688_s30 + $0x488] sm:$0xff] %v1308_v17  ;;  %v1312_v19 = vld [vmem:[%s6680_s29 + $0x930] sm:$0xff] }
  0x5b   : > { %1311 = vst [vmem:[%s6688_s30 + $0x490] sm:$0xff] %v1310_v18  ;;  %v1314_v20 = vld [vmem:[%s6680_s29 + $0x940] sm:$0xff]  ;;  %v1316_v21 = vld [vmem:[%s6680_s29 + $0x950] sm:$0xff]  ;;  %1313 = vst [vmem:[%s6688_s30 + $0x498] sm:$0xff] %v1312_v19 }
  0x5c   : > { %1315 = vst [vmem:[%s6688_s30 + $0x4a0] sm:$0xff] %v1314_v20  ;;  %1317 = vst [vmem:[%s6688_s30 + $0x4a8] sm:$0xff] %v1316_v21  ;;  %v1318_v22 = vld [vmem:[%s6680_s29 + $0x960] sm:$0xff]  ;;  %v1320_v23 = vld [vmem:[%s6680_s29 + $0x970] sm:$0xff] }
  0x5d   : > { %v1322_v24 = vld [vmem:[%s6680_s29 + $0x980] sm:$0xff]  ;;  %1319 = vst [vmem:[%s6688_s30 + $0x4b0] sm:$0xff] %v1318_v22  ;;  %1321 = vst [vmem:[%s6688_s30 + $0x4b8] sm:$0xff] %v1320_v23  ;;  %v1324_v25 = vld [vmem:[%s6680_s29 + $0x990] sm:$0xff] }
  0x5e   : > { %1323 = vst [vmem:[%s6688_s30 + $0x4c0] sm:$0xff] %v1322_v24  ;;  %v1326_v26 = vld [vmem:[%s6680_s29 + $0x9a0] sm:$0xff]  ;;  %v1328_v27 = vld [vmem:[%s6680_s29 + $0x9b0] sm:$0xff]  ;;  %1325 = vst [vmem:[%s6688_s30 + $0x4c8] sm:$0xff] %v1324_v25 }
  0x5f   : > { %1327 = vst [vmem:[%s6688_s30 + $0x4d0] sm:$0xff] %v1326_v26  ;;  %1329 = vst [vmem:[%s6688_s30 + $0x4d8] sm:$0xff] %v1328_v27  ;;  %v1330_v28 = vld [vmem:[%s6680_s29 + $0x9c0] sm:$0xff]  ;;  %v1332_v29 = vld [vmem:[%s6680_s29 + $0x9d0] sm:$0xff] }
  0x60   : > { %v1334_v30 = vld [vmem:[%s6680_s29 + $0x9e0] sm:$0xff]  ;;  %1331 = vst [vmem:[%s6688_s30 + $0x4e0] sm:$0xff] %v1330_v28  ;;  %1333 = vst [vmem:[%s6688_s30 + $0x4e8] sm:$0xff] %v1332_v29  ;;  %v1336_v31 = vld [vmem:[%s6680_s29 + $0x9f0] sm:$0xff] }
  0x61   : > { %1335 = vst [vmem:[%s6688_s30 + $0x4f0] sm:$0xff] %v1334_v30  ;;  %v1338_v32 = vld [vmem:[%s6680_s29 + $0xa00] sm:$0xff]  ;;  %v1340_v33 = vld [vmem:[%s6680_s29 + $0xa10] sm:$0xff]  ;;  %1337 = vst [vmem:[%s6688_s30 + $0x4f8] sm:$0xff] %v1336_v31 }
  0x62   : > { %1339 = vst [vmem:[%s6688_s30 + $0x500] sm:$0xff] %v1338_v32  ;;  %1341 = vst [vmem:[%s6688_s30 + $0x508] sm:$0xff] %v1340_v33  ;;  %v1342_v34 = vld [vmem:[%s6680_s29 + $0xa20] sm:$0xff]  ;;  %v1344_v35 = vld [vmem:[%s6680_s29 + $0xa30] sm:$0xff] }
  0x63   : > { %v1346_v36 = vld [vmem:[%s6680_s29 + $0xa40] sm:$0xff]  ;;  %1343 = vst [vmem:[%s6688_s30 + $0x510] sm:$0xff] %v1342_v34  ;;  %1345 = vst [vmem:[%s6688_s30 + $0x518] sm:$0xff] %v1344_v35  ;;  %v1348_v37 = vld [vmem:[%s6680_s29 + $0xa50] sm:$0xff] }
  0x64   : > { %1347 = vst [vmem:[%s6688_s30 + $0x520] sm:$0xff] %v1346_v36  ;;  %v1350_v38 = vld [vmem:[%s6680_s29 + $0xa60] sm:$0xff]  ;;  %v1352_v39 = vld [vmem:[%s6680_s29 + $0xa70] sm:$0xff]  ;;  %1349 = vst [vmem:[%s6688_s30 + $0x528] sm:$0xff] %v1348_v37 }
  0x65   : > { %1351 = vst [vmem:[%s6688_s30 + $0x530] sm:$0xff] %v1350_v38  ;;  %1353 = vst [vmem:[%s6688_s30 + $0x538] sm:$0xff] %v1352_v39  ;;  %v1354_v40 = vld [vmem:[%s6680_s29 + $0xa80] sm:$0xff]  ;;  %v1356_v41 = vld [vmem:[%s6680_s29 + $0xa90] sm:$0xff] }
  0x66   : > { %v1358_v42 = vld [vmem:[%s6680_s29 + $0xaa0] sm:$0xff]  ;;  %1355 = vst [vmem:[%s6688_s30 + $0x540] sm:$0xff] %v1354_v40  ;;  %1357 = vst [vmem:[%s6688_s30 + $0x548] sm:$0xff] %v1356_v41  ;;  %v1360_v43 = vld [vmem:[%s6680_s29 + $0xab0] sm:$0xff] }
  0x67   : > { %1359 = vst [vmem:[%s6688_s30 + $0x550] sm:$0xff] %v1358_v42  ;;  %v1362_v44 = vld [vmem:[%s6680_s29 + $0xac0] sm:$0xff]  ;;  %v1364_v45 = vld [vmem:[%s6680_s29 + $0xad0] sm:$0xff]  ;;  %1361 = vst [vmem:[%s6688_s30 + $0x558] sm:$0xff] %v1360_v43 }
  0x68   : > { %1363 = vst [vmem:[%s6688_s30 + $0x560] sm:$0xff] %v1362_v44  ;;  %1365 = vst [vmem:[%s6688_s30 + $0x568] sm:$0xff] %v1364_v45  ;;  %v1366_v46 = vld [vmem:[%s6680_s29 + $0xae0] sm:$0xff]  ;;  %v1368_v47 = vld [vmem:[%s6680_s29 + $0xaf0] sm:$0xff] }
  0x69   : > { %v1370_v48 = vld [vmem:[%s6680_s29 + $0xb00] sm:$0xff]  ;;  %1367 = vst [vmem:[%s6688_s30 + $0x570] sm:$0xff] %v1366_v46  ;;  %1369 = vst [vmem:[%s6688_s30 + $0x578] sm:$0xff] %v1368_v47  ;;  %v1372_v49 = vld [vmem:[%s6680_s29 + $0xb10] sm:$0xff] }
  0x6a   : > { %1371 = vst [vmem:[%s6688_s30 + $0x580] sm:$0xff] %v1370_v48  ;;  %v1374_v50 = vld [vmem:[%s6680_s29 + $0xb20] sm:$0xff]  ;;  %v1376_v51 = vld [vmem:[%s6680_s29 + $0xb30] sm:$0xff]  ;;  %1373 = vst [vmem:[%s6688_s30 + $0x588] sm:$0xff] %v1372_v49 }
  0x6b   : > { %1375 = vst [vmem:[%s6688_s30 + $0x590] sm:$0xff] %v1374_v50  ;;  %1377 = vst [vmem:[%s6688_s30 + $0x598] sm:$0xff] %v1376_v51  ;;  %v1378_v52 = vld [vmem:[%s6680_s29 + $0xb40] sm:$0xff]  ;;  %v1380_v53 = vld [vmem:[%s6680_s29 + $0xb50] sm:$0xff] }
  0x6c   : > { %v1382_v54 = vld [vmem:[%s6680_s29 + $0xb60] sm:$0xff]  ;;  %1379 = vst [vmem:[%s6688_s30 + $0x5a0] sm:$0xff] %v1378_v52  ;;  %1381 = vst [vmem:[%s6688_s30 + $0x5a8] sm:$0xff] %v1380_v53  ;;  %v1384_v55 = vld [vmem:[%s6680_s29 + $0xb70] sm:$0xff] }
  0x6d   : > { %1383 = vst [vmem:[%s6688_s30 + $0x5b0] sm:$0xff] %v1382_v54  ;;  %v1386_v56 = vld [vmem:[%s6680_s29 + $0xb80] sm:$0xff]  ;;  %v1388_v57 = vld [vmem:[%s6680_s29 + $0xb90] sm:$0xff]  ;;  %1385 = vst [vmem:[%s6688_s30 + $0x5b8] sm:$0xff] %v1384_v55 }
  0x6e   : > { %1387 = vst [vmem:[%s6688_s30 + $0x5c0] sm:$0xff] %v1386_v56  ;;  %1389 = vst [vmem:[%s6688_s30 + $0x5c8] sm:$0xff] %v1388_v57  ;;  %v1390_v58 = vld [vmem:[%s6680_s29 + $0xba0] sm:$0xff]  ;;  %v1392_v59 = vld [vmem:[%s6680_s29 + $0xbb0] sm:$0xff] }
  0x6f   : > { %v1394_v60 = vld [vmem:[%s6680_s29 + $0xbc0] sm:$0xff]  ;;  %1391 = vst [vmem:[%s6688_s30 + $0x5d0] sm:$0xff] %v1390_v58  ;;  %1393 = vst [vmem:[%s6688_s30 + $0x5d8] sm:$0xff] %v1392_v59  ;;  %v1396_v61 = vld [vmem:[%s6680_s29 + $0xbd0] sm:$0xff] }
  0x70   : > { %1395 = vst [vmem:[%s6688_s30 + $0x5e0] sm:$0xff] %v1394_v60  ;;  %v1398_v62 = vld [vmem:[%s6680_s29 + $0xbe0] sm:$0xff]  ;;  %v1400_v63 = vld [vmem:[%s6680_s29 + $0xbf0] sm:$0xff]  ;;  %1397 = vst [vmem:[%s6688_s30 + $0x5e8] sm:$0xff] %v1396_v61 }
  0x71   : > { %1399 = vst [vmem:[%s6688_s30 + $0x5f0] sm:$0xff] %v1398_v62  ;;  %1401 = vst [vmem:[%s6688_s30 + $0x5f8] sm:$0xff] %v1400_v63  ;;  %v1402_v0 = vld [vmem:[%s6680_s29 + $0xc00] sm:$0xff]  ;;  %v1404_v1 = vld [vmem:[%s6680_s29 + $0xc10] sm:$0xff] }
  0x72   : > { %v1406_v2 = vld [vmem:[%s6680_s29 + $0xc20] sm:$0xff]  ;;  %1403 = vst [vmem:[%s6688_s30 + $0x600] sm:$0xff] %v1402_v0  ;;  %1405 = vst [vmem:[%s6688_s30 + $0x608] sm:$0xff] %v1404_v1  ;;  %v1408_v3 = vld [vmem:[%s6680_s29 + $0xc30] sm:$0xff] }
  0x73   : > { %1407 = vst [vmem:[%s6688_s30 + $0x610] sm:$0xff] %v1406_v2  ;;  %v1410_v4 = vld [vmem:[%s6680_s29 + $0xc40] sm:$0xff]  ;;  %v1412_v5 = vld [vmem:[%s6680_s29 + $0xc50] sm:$0xff]  ;;  %1409 = vst [vmem:[%s6688_s30 + $0x618] sm:$0xff] %v1408_v3 }
  0x74   : > { %1411 = vst [vmem:[%s6688_s30 + $0x620] sm:$0xff] %v1410_v4  ;;  %1413 = vst [vmem:[%s6688_s30 + $0x628] sm:$0xff] %v1412_v5  ;;  %v1414_v6 = vld [vmem:[%s6680_s29 + $0xc60] sm:$0xff]  ;;  %v1416_v7 = vld [vmem:[%s6680_s29 + $0xc70] sm:$0xff] }
  0x75   : > { %v1418_v8 = vld [vmem:[%s6680_s29 + $0xc80] sm:$0xff]  ;;  %1415 = vst [vmem:[%s6688_s30 + $0x630] sm:$0xff] %v1414_v6  ;;  %1417 = vst [vmem:[%s6688_s30 + $0x638] sm:$0xff] %v1416_v7  ;;  %v1420_v9 = vld [vmem:[%s6680_s29 + $0xc90] sm:$0xff] }
  0x76   : > { %1419 = vst [vmem:[%s6688_s30 + $0x640] sm:$0xff] %v1418_v8  ;;  %v1422_v10 = vld [vmem:[%s6680_s29 + $0xca0] sm:$0xff]  ;;  %v1424_v11 = vld [vmem:[%s6680_s29 + $0xcb0] sm:$0xff]  ;;  %1421 = vst [vmem:[%s6688_s30 + $0x648] sm:$0xff] %v1420_v9 }
  0x77   : > { %1423 = vst [vmem:[%s6688_s30 + $0x650] sm:$0xff] %v1422_v10  ;;  %1425 = vst [vmem:[%s6688_s30 + $0x658] sm:$0xff] %v1424_v11  ;;  %v1426_v12 = vld [vmem:[%s6680_s29 + $0xcc0] sm:$0xff]  ;;  %v1428_v13 = vld [vmem:[%s6680_s29 + $0xcd0] sm:$0xff] }
  0x78   : > { %v1430_v14 = vld [vmem:[%s6680_s29 + $0xce0] sm:$0xff]  ;;  %1427 = vst [vmem:[%s6688_s30 + $0x660] sm:$0xff] %v1426_v12  ;;  %1429 = vst [vmem:[%s6688_s30 + $0x668] sm:$0xff] %v1428_v13  ;;  %v1432_v15 = vld [vmem:[%s6680_s29 + $0xcf0] sm:$0xff] }
  0x79   : > { %1431 = vst [vmem:[%s6688_s30 + $0x670] sm:$0xff] %v1430_v14  ;;  %v1434_v16 = vld [vmem:[%s6680_s29 + $0xd00] sm:$0xff]  ;;  %v1436_v17 = vld [vmem:[%s6680_s29 + $0xd10] sm:$0xff]  ;;  %1433 = vst [vmem:[%s6688_s30 + $0x678] sm:$0xff] %v1432_v15 }
  0x7a   : > { %1435 = vst [vmem:[%s6688_s30 + $0x680] sm:$0xff] %v1434_v16  ;;  %1437 = vst [vmem:[%s6688_s30 + $0x688] sm:$0xff] %v1436_v17  ;;  %v1438_v18 = vld [vmem:[%s6680_s29 + $0xd20] sm:$0xff]  ;;  %v1440_v19 = vld [vmem:[%s6680_s29 + $0xd30] sm:$0xff] }
  0x7b   : > { %v1442_v20 = vld [vmem:[%s6680_s29 + $0xd40] sm:$0xff]  ;;  %1439 = vst [vmem:[%s6688_s30 + $0x690] sm:$0xff] %v1438_v18  ;;  %1441 = vst [vmem:[%s6688_s30 + $0x698] sm:$0xff] %v1440_v19  ;;  %v1444_v21 = vld [vmem:[%s6680_s29 + $0xd50] sm:$0xff] }
  0x7c   : > { %1443 = vst [vmem:[%s6688_s30 + $0x6a0] sm:$0xff] %v1442_v20  ;;  %v1446_v22 = vld [vmem:[%s6680_s29 + $0xd60] sm:$0xff]  ;;  %v1448_v23 = vld [vmem:[%s6680_s29 + $0xd70] sm:$0xff]  ;;  %1445 = vst [vmem:[%s6688_s30 + $0x6a8] sm:$0xff] %v1444_v21 }
  0x7d   : > { %1447 = vst [vmem:[%s6688_s30 + $0x6b0] sm:$0xff] %v1446_v22  ;;  %1449 = vst [vmem:[%s6688_s30 + $0x6b8] sm:$0xff] %v1448_v23  ;;  %v1450_v24 = vld [vmem:[%s6680_s29 + $0xd80] sm:$0xff]  ;;  %v1452_v25 = vld [vmem:[%s6680_s29 + $0xd90] sm:$0xff] }
  0x7e   : > { %v1454_v26 = vld [vmem:[%s6680_s29 + $0xda0] sm:$0xff]  ;;  %1451 = vst [vmem:[%s6688_s30 + $0x6c0] sm:$0xff] %v1450_v24  ;;  %1453 = vst [vmem:[%s6688_s30 + $0x6c8] sm:$0xff] %v1452_v25  ;;  %v1456_v27 = vld [vmem:[%s6680_s29 + $0xdb0] sm:$0xff] }
  0x7f   : > { %1455 = vst [vmem:[%s6688_s30 + $0x6d0] sm:$0xff] %v1454_v26  ;;  %v1458_v28 = vld [vmem:[%s6680_s29 + $0xdc0] sm:$0xff]  ;;  %v1460_v29 = vld [vmem:[%s6680_s29 + $0xdd0] sm:$0xff]  ;;  %1457 = vst [vmem:[%s6688_s30 + $0x6d8] sm:$0xff] %v1456_v27 }
  0x80   : > { %1459 = vst [vmem:[%s6688_s30 + $0x6e0] sm:$0xff] %v1458_v28  ;;  %1461 = vst [vmem:[%s6688_s30 + $0x6e8] sm:$0xff] %v1460_v29  ;;  %v1462_v30 = vld [vmem:[%s6680_s29 + $0xde0] sm:$0xff]  ;;  %v1464_v31 = vld [vmem:[%s6680_s29 + $0xdf0] sm:$0xff] }
  0x81   : > { %v1466_v32 = vld [vmem:[%s6680_s29 + $0xe00] sm:$0xff]  ;;  %1463 = vst [vmem:[%s6688_s30 + $0x6f0] sm:$0xff] %v1462_v30  ;;  %1465 = vst [vmem:[%s6688_s30 + $0x6f8] sm:$0xff] %v1464_v31  ;;  %v1468_v33 = vld [vmem:[%s6680_s29 + $0xe10] sm:$0xff] }
  0x82   : > { %1467 = vst [vmem:[%s6688_s30 + $0x700] sm:$0xff] %v1466_v32  ;;  %v1470_v34 = vld [vmem:[%s6680_s29 + $0xe20] sm:$0xff]  ;;  %v1472_v35 = vld [vmem:[%s6680_s29 + $0xe30] sm:$0xff]  ;;  %1469 = vst [vmem:[%s6688_s30 + $0x708] sm:$0xff] %v1468_v33 }
  0x83   : > { %1471 = vst [vmem:[%s6688_s30 + $0x710] sm:$0xff] %v1470_v34  ;;  %1473 = vst [vmem:[%s6688_s30 + $0x718] sm:$0xff] %v1472_v35  ;;  %v1474_v36 = vld [vmem:[%s6680_s29 + $0xe40] sm:$0xff]  ;;  %v1476_v37 = vld [vmem:[%s6680_s29 + $0xe50] sm:$0xff] }
  0x84   : > { %v1478_v38 = vld [vmem:[%s6680_s29 + $0xe60] sm:$0xff]  ;;  %1475 = vst [vmem:[%s6688_s30 + $0x720] sm:$0xff] %v1474_v36  ;;  %1477 = vst [vmem:[%s6688_s30 + $0x728] sm:$0xff] %v1476_v37  ;;  %v1480_v39 = vld [vmem:[%s6680_s29 + $0xe70] sm:$0xff] }
  0x85   : > { %1479 = vst [vmem:[%s6688_s30 + $0x730] sm:$0xff] %v1478_v38  ;;  %v1482_v40 = vld [vmem:[%s6680_s29 + $0xe80] sm:$0xff]  ;;  %v1484_v41 = vld [vmem:[%s6680_s29 + $0xe90] sm:$0xff]  ;;  %1481 = vst [vmem:[%s6688_s30 + $0x738] sm:$0xff] %v1480_v39 }
  0x86   : > { %1483 = vst [vmem:[%s6688_s30 + $0x740] sm:$0xff] %v1482_v40  ;;  %1485 = vst [vmem:[%s6688_s30 + $0x748] sm:$0xff] %v1484_v41  ;;  %v1486_v42 = vld [vmem:[%s6680_s29 + $0xea0] sm:$0xff]  ;;  %v1488_v43 = vld [vmem:[%s6680_s29 + $0xeb0] sm:$0xff] }
  0x87   : > { %v1490_v44 = vld [vmem:[%s6680_s29 + $0xec0] sm:$0xff]  ;;  %1487 = vst [vmem:[%s6688_s30 + $0x750] sm:$0xff] %v1486_v42  ;;  %1489 = vst [vmem:[%s6688_s30 + $0x758] sm:$0xff] %v1488_v43  ;;  %v1492_v45 = vld [vmem:[%s6680_s29 + $0xed0] sm:$0xff] }
  0x88   : > { %1491 = vst [vmem:[%s6688_s30 + $0x760] sm:$0xff] %v1490_v44  ;;  %v1494_v46 = vld [vmem:[%s6680_s29 + $0xee0] sm:$0xff]  ;;  %v1496_v47 = vld [vmem:[%s6680_s29 + $0xef0] sm:$0xff]  ;;  %1493 = vst [vmem:[%s6688_s30 + $0x768] sm:$0xff] %v1492_v45 }
  0x89   : > { %1495 = vst [vmem:[%s6688_s30 + $0x770] sm:$0xff] %v1494_v46  ;;  %1497 = vst [vmem:[%s6688_s30 + $0x778] sm:$0xff] %v1496_v47  ;;  %v1498_v48 = vld [vmem:[%s6680_s29 + $0xf00] sm:$0xff]  ;;  %v1500_v49 = vld [vmem:[%s6680_s29 + $0xf10] sm:$0xff] }
  0x8a   : > { %v1502_v50 = vld [vmem:[%s6680_s29 + $0xf20] sm:$0xff]  ;;  %1499 = vst [vmem:[%s6688_s30 + $0x780] sm:$0xff] %v1498_v48  ;;  %1501 = vst [vmem:[%s6688_s30 + $0x788] sm:$0xff] %v1500_v49  ;;  %v1504_v51 = vld [vmem:[%s6680_s29 + $0xf30] sm:$0xff] }
  0x8b   : > { %1503 = vst [vmem:[%s6688_s30 + $0x790] sm:$0xff] %v1502_v50  ;;  %v1506_v52 = vld [vmem:[%s6680_s29 + $0xf40] sm:$0xff]  ;;  %v1508_v53 = vld [vmem:[%s6680_s29 + $0xf50] sm:$0xff]  ;;  %1505 = vst [vmem:[%s6688_s30 + $0x798] sm:$0xff] %v1504_v51 }
  0x8c   : > { %1507 = vst [vmem:[%s6688_s30 + $0x7a0] sm:$0xff] %v1506_v52  ;;  %1509 = vst [vmem:[%s6688_s30 + $0x7a8] sm:$0xff] %v1508_v53  ;;  %v1510_v54 = vld [vmem:[%s6680_s29 + $0xf60] sm:$0xff]  ;;  %v1512_v55 = vld [vmem:[%s6680_s29 + $0xf70] sm:$0xff] }
  0x8d   : > { %v1514_v56 = vld [vmem:[%s6680_s29 + $0xf80] sm:$0xff]  ;;  %1511 = vst [vmem:[%s6688_s30 + $0x7b0] sm:$0xff] %v1510_v54  ;;  %1513 = vst [vmem:[%s6688_s30 + $0x7b8] sm:$0xff] %v1512_v55  ;;  %v1516_v57 = vld [vmem:[%s6680_s29 + $0xf90] sm:$0xff] }
  0x8e   : > { %1515 = vst [vmem:[%s6688_s30 + $0x7c0] sm:$0xff] %v1514_v56  ;;  %v1518_v58 = vld [vmem:[%s6680_s29 + $0xfa0] sm:$0xff]  ;;  %v1520_v59 = vld [vmem:[%s6680_s29 + $0xfb0] sm:$0xff]  ;;  %1517 = vst [vmem:[%s6688_s30 + $0x7c8] sm:$0xff] %v1516_v57 }
  0x8f   : > { %1519 = vst [vmem:[%s6688_s30 + $0x7d0] sm:$0xff] %v1518_v58  ;;  %1521 = vst [vmem:[%s6688_s30 + $0x7d8] sm:$0xff] %v1520_v59  ;;  %v1522_v60 = vld [vmem:[%s6680_s29 + $0xfc0] sm:$0xff]  ;;  %v1524_v61 = vld [vmem:[%s6680_s29 + $0xfd0] sm:$0xff] }
  0x90   : > { %v1526_v62 = vld [vmem:[%s6680_s29 + $0xfe0] sm:$0xff]  ;;  %1523 = vst [vmem:[%s6688_s30 + $0x7e0] sm:$0xff] %v1522_v60  ;;  %1525 = vst [vmem:[%s6688_s30 + $0x7e8] sm:$0xff] %v1524_v61  ;;  %v1528_v63 = vld [vmem:[%s6680_s29 + $0xff0] sm:$0xff] }
  0x91   : > { %1527 = vst [vmem:[%s6688_s30 + $0x7f0] sm:$0xff] %v1526_v62  ;;  %v1530_v0 = vld [vmem:[%s6680_s29 + $0x1000] sm:$0xff]  ;;  %v1532_v1 = vld [vmem:[%s6680_s29 + $0x1010] sm:$0xff]  ;;  %1529 = vst [vmem:[%s6688_s30 + $0x7f8] sm:$0xff] %v1528_v63 }
  0x92   : > { %1531 = vst [vmem:[%s6688_s30 + $0x800] sm:$0xff] %v1530_v0  ;;  %1533 = vst [vmem:[%s6688_s30 + $0x808] sm:$0xff] %v1532_v1  ;;  %v1534_v2 = vld [vmem:[%s6680_s29 + $0x1020] sm:$0xff]  ;;  %v1536_v3 = vld [vmem:[%s6680_s29 + $0x1030] sm:$0xff] }
  0x93   : > { %v1538_v4 = vld [vmem:[%s6680_s29 + $0x1040] sm:$0xff]  ;;  %1535 = vst [vmem:[%s6688_s30 + $0x810] sm:$0xff] %v1534_v2  ;;  %1537 = vst [vmem:[%s6688_s30 + $0x818] sm:$0xff] %v1536_v3  ;;  %v1540_v5 = vld [vmem:[%s6680_s29 + $0x1050] sm:$0xff] }
  0x94   : > { %1539 = vst [vmem:[%s6688_s30 + $0x820] sm:$0xff] %v1538_v4  ;;  %v1542_v6 = vld [vmem:[%s6680_s29 + $0x1060] sm:$0xff]  ;;  %v1544_v7 = vld [vmem:[%s6680_s29 + $0x1070] sm:$0xff]  ;;  %1541 = vst [vmem:[%s6688_s30 + $0x828] sm:$0xff] %v1540_v5 }
  0x95   : > { %1543 = vst [vmem:[%s6688_s30 + $0x830] sm:$0xff] %v1542_v6  ;;  %1545 = vst [vmem:[%s6688_s30 + $0x838] sm:$0xff] %v1544_v7  ;;  %v1546_v8 = vld [vmem:[%s6680_s29 + $0x1080] sm:$0xff]  ;;  %v1548_v9 = vld [vmem:[%s6680_s29 + $0x1090] sm:$0xff] }
  0x96   : > { %v1550_v10 = vld [vmem:[%s6680_s29 + $0x10a0] sm:$0xff]  ;;  %1547 = vst [vmem:[%s6688_s30 + $0x840] sm:$0xff] %v1546_v8  ;;  %1549 = vst [vmem:[%s6688_s30 + $0x848] sm:$0xff] %v1548_v9  ;;  %v1552_v11 = vld [vmem:[%s6680_s29 + $0x10b0] sm:$0xff] }
  0x97   : > { %1551 = vst [vmem:[%s6688_s30 + $0x850] sm:$0xff] %v1550_v10  ;;  %v1554_v12 = vld [vmem:[%s6680_s29 + $0x10c0] sm:$0xff]  ;;  %v1556_v13 = vld [vmem:[%s6680_s29 + $0x10d0] sm:$0xff]  ;;  %1553 = vst [vmem:[%s6688_s30 + $0x858] sm:$0xff] %v1552_v11 }
  0x98   : > { %1555 = vst [vmem:[%s6688_s30 + $0x860] sm:$0xff] %v1554_v12  ;;  %1557 = vst [vmem:[%s6688_s30 + $0x868] sm:$0xff] %v1556_v13  ;;  %v1558_v14 = vld [vmem:[%s6680_s29 + $0x10e0] sm:$0xff]  ;;  %v1560_v15 = vld [vmem:[%s6680_s29 + $0x10f0] sm:$0xff] }
  0x99   : > { %v1562_v16 = vld [vmem:[%s6680_s29 + $0x1100] sm:$0xff]  ;;  %1559 = vst [vmem:[%s6688_s30 + $0x870] sm:$0xff] %v1558_v14  ;;  %1561 = vst [vmem:[%s6688_s30 + $0x878] sm:$0xff] %v1560_v15  ;;  %v1564_v17 = vld [vmem:[%s6680_s29 + $0x1110] sm:$0xff] }
  0x9a   : > { %1563 = vst [vmem:[%s6688_s30 + $0x880] sm:$0xff] %v1562_v16  ;;  %v1566_v18 = vld [vmem:[%s6680_s29 + $0x1120] sm:$0xff]  ;;  %v1568_v19 = vld [vmem:[%s6680_s29 + $0x1130] sm:$0xff]  ;;  %1565 = vst [vmem:[%s6688_s30 + $0x888] sm:$0xff] %v1564_v17 }
  0x9b   : > { %1567 = vst [vmem:[%s6688_s30 + $0x890] sm:$0xff] %v1566_v18  ;;  %1569 = vst [vmem:[%s6688_s30 + $0x898] sm:$0xff] %v1568_v19  ;;  %v1570_v20 = vld [vmem:[%s6680_s29 + $0x1140] sm:$0xff]  ;;  %v1572_v21 = vld [vmem:[%s6680_s29 + $0x1150] sm:$0xff] }
  0x9c   : > { %v1574_v22 = vld [vmem:[%s6680_s29 + $0x1160] sm:$0xff]  ;;  %1571 = vst [vmem:[%s6688_s30 + $0x8a0] sm:$0xff] %v1570_v20  ;;  %1573 = vst [vmem:[%s6688_s30 + $0x8a8] sm:$0xff] %v1572_v21  ;;  %v1576_v23 = vld [vmem:[%s6680_s29 + $0x1170] sm:$0xff] }
  0x9d   : > { %1575 = vst [vmem:[%s6688_s30 + $0x8b0] sm:$0xff] %v1574_v22  ;;  %v1578_v24 = vld [vmem:[%s6680_s29 + $0x1180] sm:$0xff]  ;;  %v1580_v25 = vld [vmem:[%s6680_s29 + $0x1190] sm:$0xff]  ;;  %1577 = vst [vmem:[%s6688_s30 + $0x8b8] sm:$0xff] %v1576_v23 }
  0x9e   : > { %1579 = vst [vmem:[%s6688_s30 + $0x8c0] sm:$0xff] %v1578_v24  ;;  %1581 = vst [vmem:[%s6688_s30 + $0x8c8] sm:$0xff] %v1580_v25  ;;  %v1582_v26 = vld [vmem:[%s6680_s29 + $0x11a0] sm:$0xff]  ;;  %v1584_v27 = vld [vmem:[%s6680_s29 + $0x11b0] sm:$0xff] }
  0x9f   : > { %v1586_v28 = vld [vmem:[%s6680_s29 + $0x11c0] sm:$0xff]  ;;  %1583 = vst [vmem:[%s6688_s30 + $0x8d0] sm:$0xff] %v1582_v26  ;;  %1585 = vst [vmem:[%s6688_s30 + $0x8d8] sm:$0xff] %v1584_v27  ;;  %v1588_v29 = vld [vmem:[%s6680_s29 + $0x11d0] sm:$0xff] }
  0xa0   : > { %1587 = vst [vmem:[%s6688_s30 + $0x8e0] sm:$0xff] %v1586_v28  ;;  %v1590_v30 = vld [vmem:[%s6680_s29 + $0x11e0] sm:$0xff]  ;;  %v1592_v31 = vld [vmem:[%s6680_s29 + $0x11f0] sm:$0xff]  ;;  %1589 = vst [vmem:[%s6688_s30 + $0x8e8] sm:$0xff] %v1588_v29 }
  0xa1   : > { %1591 = vst [vmem:[%s6688_s30 + $0x8f0] sm:$0xff] %v1590_v30  ;;  %1593 = vst [vmem:[%s6688_s30 + $0x8f8] sm:$0xff] %v1592_v31  ;;  %v1594_v32 = vld [vmem:[%s6680_s29 + $0x1200] sm:$0xff]  ;;  %v1596_v33 = vld [vmem:[%s6680_s29 + $0x1210] sm:$0xff] }
  0xa2   : > { %v1598_v34 = vld [vmem:[%s6680_s29 + $0x1220] sm:$0xff]  ;;  %1595 = vst [vmem:[%s6688_s30 + $0x900] sm:$0xff] %v1594_v32  ;;  %1597 = vst [vmem:[%s6688_s30 + $0x908] sm:$0xff] %v1596_v33  ;;  %v1600_v35 = vld [vmem:[%s6680_s29 + $0x1230] sm:$0xff] }
  0xa3   : > { %1599 = vst [vmem:[%s6688_s30 + $0x910] sm:$0xff] %v1598_v34  ;;  %v1602_v36 = vld [vmem:[%s6680_s29 + $0x1240] sm:$0xff]  ;;  %v1604_v37 = vld [vmem:[%s6680_s29 + $0x1250] sm:$0xff]  ;;  %1601 = vst [vmem:[%s6688_s30 + $0x918] sm:$0xff] %v1600_v35 }
  0xa4   : > { %1603 = vst [vmem:[%s6688_s30 + $0x920] sm:$0xff] %v1602_v36  ;;  %1605 = vst [vmem:[%s6688_s30 + $0x928] sm:$0xff] %v1604_v37  ;;  %v1606_v38 = vld [vmem:[%s6680_s29 + $0x1260] sm:$0xff]  ;;  %v1608_v39 = vld [vmem:[%s6680_s29 + $0x1270] sm:$0xff] }
  0xa5   : > { %v1610_v40 = vld [vmem:[%s6680_s29 + $0x1280] sm:$0xff]  ;;  %1607 = vst [vmem:[%s6688_s30 + $0x930] sm:$0xff] %v1606_v38  ;;  %1609 = vst [vmem:[%s6688_s30 + $0x938] sm:$0xff] %v1608_v39  ;;  %v1612_v41 = vld [vmem:[%s6680_s29 + $0x1290] sm:$0xff] }
  0xa6   : > { %1611 = vst [vmem:[%s6688_s30 + $0x940] sm:$0xff] %v1610_v40  ;;  %v1614_v42 = vld [vmem:[%s6680_s29 + $0x12a0] sm:$0xff]  ;;  %v1616_v43 = vld [vmem:[%s6680_s29 + $0x12b0] sm:$0xff]  ;;  %1613 = vst [vmem:[%s6688_s30 + $0x948] sm:$0xff] %v1612_v41 }
  0xa7   : > { %1615 = vst [vmem:[%s6688_s30 + $0x950] sm:$0xff] %v1614_v42  ;;  %1617 = vst [vmem:[%s6688_s30 + $0x958] sm:$0xff] %v1616_v43  ;;  %v1618_v44 = vld [vmem:[%s6680_s29 + $0x12c0] sm:$0xff]  ;;  %v1620_v45 = vld [vmem:[%s6680_s29 + $0x12d0] sm:$0xff] }
  0xa8   : > { %v1622_v46 = vld [vmem:[%s6680_s29 + $0x12e0] sm:$0xff]  ;;  %1619 = vst [vmem:[%s6688_s30 + $0x960] sm:$0xff] %v1618_v44  ;;  %1621 = vst [vmem:[%s6688_s30 + $0x968] sm:$0xff] %v1620_v45  ;;  %v1624_v47 = vld [vmem:[%s6680_s29 + $0x12f0] sm:$0xff] }
  0xa9   : > { %1623 = vst [vmem:[%s6688_s30 + $0x970] sm:$0xff] %v1622_v46  ;;  %v1626_v48 = vld [vmem:[%s6680_s29 + $0x1300] sm:$0xff]  ;;  %v1628_v49 = vld [vmem:[%s6680_s29 + $0x1310] sm:$0xff]  ;;  %1625 = vst [vmem:[%s6688_s30 + $0x978] sm:$0xff] %v1624_v47 }
  0xaa   : > { %1627 = vst [vmem:[%s6688_s30 + $0x980] sm:$0xff] %v1626_v48  ;;  %1629 = vst [vmem:[%s6688_s30 + $0x988] sm:$0xff] %v1628_v49  ;;  %v1630_v50 = vld [vmem:[%s6680_s29 + $0x1320] sm:$0xff]  ;;  %v1632_v51 = vld [vmem:[%s6680_s29 + $0x1330] sm:$0xff] }
  0xab   : > { %v1634_v52 = vld [vmem:[%s6680_s29 + $0x1340] sm:$0xff]  ;;  %1631 = vst [vmem:[%s6688_s30 + $0x990] sm:$0xff] %v1630_v50  ;;  %1633 = vst [vmem:[%s6688_s30 + $0x998] sm:$0xff] %v1632_v51  ;;  %v1636_v53 = vld [vmem:[%s6680_s29 + $0x1350] sm:$0xff] }
  0xac   : > { %1635 = vst [vmem:[%s6688_s30 + $0x9a0] sm:$0xff] %v1634_v52  ;;  %v1638_v54 = vld [vmem:[%s6680_s29 + $0x1360] sm:$0xff]  ;;  %v1640_v55 = vld [vmem:[%s6680_s29 + $0x1370] sm:$0xff]  ;;  %1637 = vst [vmem:[%s6688_s30 + $0x9a8] sm:$0xff] %v1636_v53 }
  0xad   : > { %1639 = vst [vmem:[%s6688_s30 + $0x9b0] sm:$0xff] %v1638_v54  ;;  %1641 = vst [vmem:[%s6688_s30 + $0x9b8] sm:$0xff] %v1640_v55  ;;  %v1642_v56 = vld [vmem:[%s6680_s29 + $0x1380] sm:$0xff]  ;;  %v1644_v57 = vld [vmem:[%s6680_s29 + $0x1390] sm:$0xff] }
  0xae   : > { %v1646_v58 = vld [vmem:[%s6680_s29 + $0x13a0] sm:$0xff]  ;;  %1643 = vst [vmem:[%s6688_s30 + $0x9c0] sm:$0xff] %v1642_v56  ;;  %1645 = vst [vmem:[%s6688_s30 + $0x9c8] sm:$0xff] %v1644_v57  ;;  %v1648_v59 = vld [vmem:[%s6680_s29 + $0x13b0] sm:$0xff] }
  0xaf   : > { %1647 = vst [vmem:[%s6688_s30 + $0x9d0] sm:$0xff] %v1646_v58  ;;  %v1650_v60 = vld [vmem:[%s6680_s29 + $0x13c0] sm:$0xff]  ;;  %v1652_v61 = vld [vmem:[%s6680_s29 + $0x13d0] sm:$0xff]  ;;  %1649 = vst [vmem:[%s6688_s30 + $0x9d8] sm:$0xff] %v1648_v59 }
  0xb0   : > { %1651 = vst [vmem:[%s6688_s30 + $0x9e0] sm:$0xff] %v1650_v60  ;;  %1653 = vst [vmem:[%s6688_s30 + $0x9e8] sm:$0xff] %v1652_v61  ;;  %v1654_v62 = vld [vmem:[%s6680_s29 + $0x13e0] sm:$0xff]  ;;  %v1656_v63 = vld [vmem:[%s6680_s29 + $0x13f0] sm:$0xff] }
  0xb1   : > { %v1658_v0 = vld [vmem:[%s6680_s29 + $0x1400] sm:$0xff]  ;;  %1655 = vst [vmem:[%s6688_s30 + $0x9f0] sm:$0xff] %v1654_v62  ;;  %1657 = vst [vmem:[%s6688_s30 + $0x9f8] sm:$0xff] %v1656_v63  ;;  %v1660_v1 = vld [vmem:[%s6680_s29 + $0x1410] sm:$0xff] }
  0xb2   : > { %1659 = vst [vmem:[%s6688_s30 + $0xa00] sm:$0xff] %v1658_v0  ;;  %v1662_v2 = vld [vmem:[%s6680_s29 + $0x1420] sm:$0xff]  ;;  %v1664_v3 = vld [vmem:[%s6680_s29 + $0x1430] sm:$0xff]  ;;  %1661 = vst [vmem:[%s6688_s30 + $0xa08] sm:$0xff] %v1660_v1 }
  0xb3   : > { %1663 = vst [vmem:[%s6688_s30 + $0xa10] sm:$0xff] %v1662_v2  ;;  %1665 = vst [vmem:[%s6688_s30 + $0xa18] sm:$0xff] %v1664_v3  ;;  %v1666_v4 = vld [vmem:[%s6680_s29 + $0x1440] sm:$0xff]  ;;  %v1668_v5 = vld [vmem:[%s6680_s29 + $0x1450] sm:$0xff] }
  0xb4   : > { %v1670_v6 = vld [vmem:[%s6680_s29 + $0x1460] sm:$0xff]  ;;  %1667 = vst [vmem:[%s6688_s30 + $0xa20] sm:$0xff] %v1666_v4  ;;  %1669 = vst [vmem:[%s6688_s30 + $0xa28] sm:$0xff] %v1668_v5  ;;  %v1672_v7 = vld [vmem:[%s6680_s29 + $0x1470] sm:$0xff] }
  0xb5   : > { %1671 = vst [vmem:[%s6688_s30 + $0xa30] sm:$0xff] %v1670_v6  ;;  %v1674_v8 = vld [vmem:[%s6680_s29 + $0x1480] sm:$0xff]  ;;  %v1676_v9 = vld [vmem:[%s6680_s29 + $0x1490] sm:$0xff]  ;;  %1673 = vst [vmem:[%s6688_s30 + $0xa38] sm:$0xff] %v1672_v7 }
  0xb6   : > { %1675 = vst [vmem:[%s6688_s30 + $0xa40] sm:$0xff] %v1674_v8  ;;  %1677 = vst [vmem:[%s6688_s30 + $0xa48] sm:$0xff] %v1676_v9  ;;  %v1678_v10 = vld [vmem:[%s6680_s29 + $0x14a0] sm:$0xff]  ;;  %v1680_v11 = vld [vmem:[%s6680_s29 + $0x14b0] sm:$0xff] }
  0xb7   : > { %v1682_v12 = vld [vmem:[%s6680_s29 + $0x14c0] sm:$0xff]  ;;  %1679 = vst [vmem:[%s6688_s30 + $0xa50] sm:$0xff] %v1678_v10  ;;  %1681 = vst [vmem:[%s6688_s30 + $0xa58] sm:$0xff] %v1680_v11  ;;  %v1684_v13 = vld [vmem:[%s6680_s29 + $0x14d0] sm:$0xff] }
  0xb8   : > { %1683 = vst [vmem:[%s6688_s30 + $0xa60] sm:$0xff] %v1682_v12  ;;  %v1686_v14 = vld [vmem:[%s6680_s29 + $0x14e0] sm:$0xff]  ;;  %v1688_v15 = vld [vmem:[%s6680_s29 + $0x14f0] sm:$0xff]  ;;  %1685 = vst [vmem:[%s6688_s30 + $0xa68] sm:$0xff] %v1684_v13 }
  0xb9   : > { %1687 = vst [vmem:[%s6688_s30 + $0xa70] sm:$0xff] %v1686_v14  ;;  %1689 = vst [vmem:[%s6688_s30 + $0xa78] sm:$0xff] %v1688_v15  ;;  %v1690_v16 = vld [vmem:[%s6680_s29 + $0x1500] sm:$0xff]  ;;  %v1692_v17 = vld [vmem:[%s6680_s29 + $0x1510] sm:$0xff] }
  0xba   : > { %v1694_v18 = vld [vmem:[%s6680_s29 + $0x1520] sm:$0xff]  ;;  %1691 = vst [vmem:[%s6688_s30 + $0xa80] sm:$0xff] %v1690_v16  ;;  %1693 = vst [vmem:[%s6688_s30 + $0xa88] sm:$0xff] %v1692_v17  ;;  %v1696_v19 = vld [vmem:[%s6680_s29 + $0x1530] sm:$0xff] }
  0xbb   : > { %1695 = vst [vmem:[%s6688_s30 + $0xa90] sm:$0xff] %v1694_v18  ;;  %v1698_v20 = vld [vmem:[%s6680_s29 + $0x1540] sm:$0xff]  ;;  %v1700_v21 = vld [vmem:[%s6680_s29 + $0x1550] sm:$0xff]  ;;  %1697 = vst [vmem:[%s6688_s30 + $0xa98] sm:$0xff] %v1696_v19 }
  0xbc   : > { %1699 = vst [vmem:[%s6688_s30 + $0xaa0] sm:$0xff] %v1698_v20  ;;  %1701 = vst [vmem:[%s6688_s30 + $0xaa8] sm:$0xff] %v1700_v21  ;;  %v1702_v22 = vld [vmem:[%s6680_s29 + $0x1560] sm:$0xff]  ;;  %v1704_v23 = vld [vmem:[%s6680_s29 + $0x1570] sm:$0xff] }
  0xbd   : > { %v1706_v24 = vld [vmem:[%s6680_s29 + $0x1580] sm:$0xff]  ;;  %1703 = vst [vmem:[%s6688_s30 + $0xab0] sm:$0xff] %v1702_v22  ;;  %1705 = vst [vmem:[%s6688_s30 + $0xab8] sm:$0xff] %v1704_v23  ;;  %v1708_v25 = vld [vmem:[%s6680_s29 + $0x1590] sm:$0xff] }
  0xbe   : > { %1707 = vst [vmem:[%s6688_s30 + $0xac0] sm:$0xff] %v1706_v24  ;;  %v1710_v26 = vld [vmem:[%s6680_s29 + $0x15a0] sm:$0xff]  ;;  %v1712_v27 = vld [vmem:[%s6680_s29 + $0x15b0] sm:$0xff]  ;;  %1709 = vst [vmem:[%s6688_s30 + $0xac8] sm:$0xff] %v1708_v25 }
  0xbf   : > { %1711 = vst [vmem:[%s6688_s30 + $0xad0] sm:$0xff] %v1710_v26  ;;  %1713 = vst [vmem:[%s6688_s30 + $0xad8] sm:$0xff] %v1712_v27  ;;  %v1714_v28 = vld [vmem:[%s6680_s29 + $0x15c0] sm:$0xff]  ;;  %v1716_v29 = vld [vmem:[%s6680_s29 + $0x15d0] sm:$0xff] }
  0xc0   : > { %v1718_v30 = vld [vmem:[%s6680_s29 + $0x15e0] sm:$0xff]  ;;  %1715 = vst [vmem:[%s6688_s30 + $0xae0] sm:$0xff] %v1714_v28  ;;  %1717 = vst [vmem:[%s6688_s30 + $0xae8] sm:$0xff] %v1716_v29  ;;  %v1720_v31 = vld [vmem:[%s6680_s29 + $0x15f0] sm:$0xff] }
  0xc1   : > { %1719 = vst [vmem:[%s6688_s30 + $0xaf0] sm:$0xff] %v1718_v30  ;;  %v1722_v32 = vld [vmem:[%s6680_s29 + $0x1600] sm:$0xff]  ;;  %v1724_v33 = vld [vmem:[%s6680_s29 + $0x1610] sm:$0xff]  ;;  %1721 = vst [vmem:[%s6688_s30 + $0xaf8] sm:$0xff] %v1720_v31 }
  0xc2   : > { %1723 = vst [vmem:[%s6688_s30 + $0xb00] sm:$0xff] %v1722_v32  ;;  %1725 = vst [vmem:[%s6688_s30 + $0xb08] sm:$0xff] %v1724_v33  ;;  %v1726_v34 = vld [vmem:[%s6680_s29 + $0x1620] sm:$0xff]  ;;  %v1728_v35 = vld [vmem:[%s6680_s29 + $0x1630] sm:$0xff] }
  0xc3   : > { %v1730_v36 = vld [vmem:[%s6680_s29 + $0x1640] sm:$0xff]  ;;  %1727 = vst [vmem:[%s6688_s30 + $0xb10] sm:$0xff] %v1726_v34  ;;  %1729 = vst [vmem:[%s6688_s30 + $0xb18] sm:$0xff] %v1728_v35  ;;  %v1732_v37 = vld [vmem:[%s6680_s29 + $0x1650] sm:$0xff] }
  0xc4   : > { %1731 = vst [vmem:[%s6688_s30 + $0xb20] sm:$0xff] %v1730_v36  ;;  %v1734_v38 = vld [vmem:[%s6680_s29 + $0x1660] sm:$0xff]  ;;  %v1736_v39 = vld [vmem:[%s6680_s29 + $0x1670] sm:$0xff]  ;;  %1733 = vst [vmem:[%s6688_s30 + $0xb28] sm:$0xff] %v1732_v37 }
  0xc5   : > { %1735 = vst [vmem:[%s6688_s30 + $0xb30] sm:$0xff] %v1734_v38  ;;  %1737 = vst [vmem:[%s6688_s30 + $0xb38] sm:$0xff] %v1736_v39  ;;  %v1738_v40 = vld [vmem:[%s6680_s29 + $0x1680] sm:$0xff]  ;;  %v1740_v41 = vld [vmem:[%s6680_s29 + $0x1690] sm:$0xff] }
  0xc6   : > { %v1742_v42 = vld [vmem:[%s6680_s29 + $0x16a0] sm:$0xff]  ;;  %1739 = vst [vmem:[%s6688_s30 + $0xb40] sm:$0xff] %v1738_v40  ;;  %1741 = vst [vmem:[%s6688_s30 + $0xb48] sm:$0xff] %v1740_v41  ;;  %v1744_v43 = vld [vmem:[%s6680_s29 + $0x16b0] sm:$0xff] }
  0xc7   : > { %1743 = vst [vmem:[%s6688_s30 + $0xb50] sm:$0xff] %v1742_v42  ;;  %v1746_v44 = vld [vmem:[%s6680_s29 + $0x16c0] sm:$0xff]  ;;  %v1748_v45 = vld [vmem:[%s6680_s29 + $0x16d0] sm:$0xff]  ;;  %1745 = vst [vmem:[%s6688_s30 + $0xb58] sm:$0xff] %v1744_v43 }
  0xc8   : > { %1747 = vst [vmem:[%s6688_s30 + $0xb60] sm:$0xff] %v1746_v44  ;;  %1749 = vst [vmem:[%s6688_s30 + $0xb68] sm:$0xff] %v1748_v45  ;;  %v1750_v46 = vld [vmem:[%s6680_s29 + $0x16e0] sm:$0xff]  ;;  %v1752_v47 = vld [vmem:[%s6680_s29 + $0x16f0] sm:$0xff] }
  0xc9   : > { %v1754_v48 = vld [vmem:[%s6680_s29 + $0x1700] sm:$0xff]  ;;  %1751 = vst [vmem:[%s6688_s30 + $0xb70] sm:$0xff] %v1750_v46  ;;  %1753 = vst [vmem:[%s6688_s30 + $0xb78] sm:$0xff] %v1752_v47  ;;  %v1756_v49 = vld [vmem:[%s6680_s29 + $0x1710] sm:$0xff] }
  0xca   : > { %1755 = vst [vmem:[%s6688_s30 + $0xb80] sm:$0xff] %v1754_v48  ;;  %v1758_v50 = vld [vmem:[%s6680_s29 + $0x1720] sm:$0xff]  ;;  %v1760_v51 = vld [vmem:[%s6680_s29 + $0x1730] sm:$0xff]  ;;  %1757 = vst [vmem:[%s6688_s30 + $0xb88] sm:$0xff] %v1756_v49 }
  0xcb   : > { %1759 = vst [vmem:[%s6688_s30 + $0xb90] sm:$0xff] %v1758_v50  ;;  %1761 = vst [vmem:[%s6688_s30 + $0xb98] sm:$0xff] %v1760_v51  ;;  %v1762_v52 = vld [vmem:[%s6680_s29 + $0x1740] sm:$0xff]  ;;  %v1764_v53 = vld [vmem:[%s6680_s29 + $0x1750] sm:$0xff] }
  0xcc   : > { %v1766_v54 = vld [vmem:[%s6680_s29 + $0x1760] sm:$0xff]  ;;  %1763 = vst [vmem:[%s6688_s30 + $0xba0] sm:$0xff] %v1762_v52  ;;  %1765 = vst [vmem:[%s6688_s30 + $0xba8] sm:$0xff] %v1764_v53  ;;  %v1768_v55 = vld [vmem:[%s6680_s29 + $0x1770] sm:$0xff] }
  0xcd   : > { %1767 = vst [vmem:[%s6688_s30 + $0xbb0] sm:$0xff] %v1766_v54  ;;  %v1770_v56 = vld [vmem:[%s6680_s29 + $0x1780] sm:$0xff]  ;;  %v1772_v57 = vld [vmem:[%s6680_s29 + $0x1790] sm:$0xff]  ;;  %1769 = vst [vmem:[%s6688_s30 + $0xbb8] sm:$0xff] %v1768_v55 }
  0xce   : > { %1771 = vst [vmem:[%s6688_s30 + $0xbc0] sm:$0xff] %v1770_v56  ;;  %1773 = vst [vmem:[%s6688_s30 + $0xbc8] sm:$0xff] %v1772_v57  ;;  %v1774_v58 = vld [vmem:[%s6680_s29 + $0x17a0] sm:$0xff]  ;;  %v1776_v59 = vld [vmem:[%s6680_s29 + $0x17b0] sm:$0xff] }
  0xcf   : > { %v1778_v60 = vld [vmem:[%s6680_s29 + $0x17c0] sm:$0xff]  ;;  %1775 = vst [vmem:[%s6688_s30 + $0xbd0] sm:$0xff] %v1774_v58  ;;  %1777 = vst [vmem:[%s6688_s30 + $0xbd8] sm:$0xff] %v1776_v59  ;;  %v1780_v61 = vld [vmem:[%s6680_s29 + $0x17d0] sm:$0xff] }
  0xd0   : > { %1779 = vst [vmem:[%s6688_s30 + $0xbe0] sm:$0xff] %v1778_v60  ;;  %v1782_v62 = vld [vmem:[%s6680_s29 + $0x17e0] sm:$0xff]  ;;  %v1784_v63 = vld [vmem:[%s6680_s29 + $0x17f0] sm:$0xff]  ;;  %1781 = vst [vmem:[%s6688_s30 + $0xbe8] sm:$0xff] %v1780_v61 }
  0xd1   : > { %1783 = vst [vmem:[%s6688_s30 + $0xbf0] sm:$0xff] %v1782_v62  ;;  %1785 = vst [vmem:[%s6688_s30 + $0xbf8] sm:$0xff] %v1784_v63  ;;  %v1786_v0 = vld [vmem:[%s6680_s29 + $0x1800] sm:$0xff]  ;;  %v1788_v1 = vld [vmem:[%s6680_s29 + $0x1810] sm:$0xff] }
  0xd2   : > { %v1790_v2 = vld [vmem:[%s6680_s29 + $0x1820] sm:$0xff]  ;;  %1787 = vst [vmem:[%s6688_s30 + $0xc00] sm:$0xff] %v1786_v0  ;;  %1789 = vst [vmem:[%s6688_s30 + $0xc08] sm:$0xff] %v1788_v1  ;;  %v1792_v3 = vld [vmem:[%s6680_s29 + $0x1830] sm:$0xff] }
  0xd3   : > { %1791 = vst [vmem:[%s6688_s30 + $0xc10] sm:$0xff] %v1790_v2  ;;  %v1794_v4 = vld [vmem:[%s6680_s29 + $0x1840] sm:$0xff]  ;;  %v1796_v5 = vld [vmem:[%s6680_s29 + $0x1850] sm:$0xff]  ;;  %1793 = vst [vmem:[%s6688_s30 + $0xc18] sm:$0xff] %v1792_v3 }
  0xd4   : > { %1795 = vst [vmem:[%s6688_s30 + $0xc20] sm:$0xff] %v1794_v4  ;;  %1797 = vst [vmem:[%s6688_s30 + $0xc28] sm:$0xff] %v1796_v5  ;;  %v1798_v6 = vld [vmem:[%s6680_s29 + $0x1860] sm:$0xff]  ;;  %v1800_v7 = vld [vmem:[%s6680_s29 + $0x1870] sm:$0xff] }
  0xd5   : > { %v1802_v8 = vld [vmem:[%s6680_s29 + $0x1880] sm:$0xff]  ;;  %1799 = vst [vmem:[%s6688_s30 + $0xc30] sm:$0xff] %v1798_v6  ;;  %1801 = vst [vmem:[%s6688_s30 + $0xc38] sm:$0xff] %v1800_v7  ;;  %v1804_v9 = vld [vmem:[%s6680_s29 + $0x1890] sm:$0xff] }
  0xd6   : > { %1803 = vst [vmem:[%s6688_s30 + $0xc40] sm:$0xff] %v1802_v8  ;;  %v1806_v10 = vld [vmem:[%s6680_s29 + $0x18a0] sm:$0xff]  ;;  %v1808_v11 = vld [vmem:[%s6680_s29 + $0x18b0] sm:$0xff]  ;;  %1805 = vst [vmem:[%s6688_s30 + $0xc48] sm:$0xff] %v1804_v9 }
  0xd7   : > { %1807 = vst [vmem:[%s6688_s30 + $0xc50] sm:$0xff] %v1806_v10  ;;  %1809 = vst [vmem:[%s6688_s30 + $0xc58] sm:$0xff] %v1808_v11  ;;  %v1810_v12 = vld [vmem:[%s6680_s29 + $0x18c0] sm:$0xff]  ;;  %v1812_v13 = vld [vmem:[%s6680_s29 + $0x18d0] sm:$0xff] }
  0xd8   : > { %v1814_v14 = vld [vmem:[%s6680_s29 + $0x18e0] sm:$0xff]  ;;  %1811 = vst [vmem:[%s6688_s30 + $0xc60] sm:$0xff] %v1810_v12  ;;  %1813 = vst [vmem:[%s6688_s30 + $0xc68] sm:$0xff] %v1812_v13  ;;  %v1816_v15 = vld [vmem:[%s6680_s29 + $0x18f0] sm:$0xff] }
  0xd9   : > { %1815 = vst [vmem:[%s6688_s30 + $0xc70] sm:$0xff] %v1814_v14  ;;  %1817 = vst [vmem:[%s6688_s30 + $0xc78] sm:$0xff] %v1816_v15 }
  0xda PF: > { %p5350_p6 = scmp.ge.s32.totalorder %s6609_s19, 1  ;;  %p1839_p7 = scmp.lt.s32.totalorder %s6609_s19, 3 }
  0xdc   : > { %p1840_p8 = pnand %p5350_p6, %p1839_p7 }
  0xdd   : > { %s1846_s5 = sand.u32 (!%p1840_p8), 1, %s6593_s15   ;;  %v6016_v16 = vld [vmem:[%s7992_s0 + $0x4] ss:$100 sps:$4 sm:$0xff] (!%p1840_p8)   ;;  %v6022_v17 = vld [vmem:[%s7992_s0 + $0x34] ss:$100 sps:$4 sm:$0xff] (!%p1840_p8)   ;;  %s5352_s26 = sshll.u32 (!%p1840_p8), %s6601_s17, 5 }
  0xde   : > { %1843 = sbr.rel (%p1840_p8) target bundleno = 1084 (0x43c), region = 70  ;;  %4516 = vmatprep.mubr.bf16.mxu1 (!%p1840_p8), %v6016_v16  ;;  %4774 = vmatprep.mubr.bf16.mxu0 (!%p1840_p8), %v6022_v17  ;;  %p1904_p9 = scmp.lt.s32.totalorder (!%p1840_p8), %s5352_s26, 63 }
  0xdf   : > { %s5876_s6 = smul.u32 (!%p1840_p8), 3200, %s1846_s5  ;;  %p1910_p11 = scmp.lt.s32.totalorder (!%p1840_p8), %s6601_s17, 1 }
  0xe1   : > { %s7493_s11 = scalar_lea.vmem (!%p1840_p8), [#allocation2], %s5876_s6 }
  0xe2   : > { %v5918_v18 = vld [vmem:[%s7493_s11 + $0x4] ss:$8 sps:$4 sm:$0xff] (!%p1840_p8)   ;;  %v5922_v20 = vld [vmem:[%s7493_s11] ss:$8 sps:$4 sm:$0xff] (!%p1840_p8)   ;;  %v5924_v22 = vld [vmem:[%s7493_s11 + $0x14] ss:$8 sps:$4 sm:$0xff] (!%p1840_p8)  }
  0xe3   : > { %v5920_v19 = vld [vmem:[%s7493_s11 + $0x604] ss:$8 sps:$4 sm:$0xff] (!%p1840_p8)   ;;  %4484 = vmatprep.subr.bf16.mxu1 (!%p1840_p8), %v5918_v18  ;;  %v5923_v21 = vld [vmem:[%s7493_s11 + $0x600] ss:$8 sps:$4 sm:$0xff] (!%p1840_p8)   ;;  %v5926_v23 = vld [vmem:[%s7493_s11 + $0x614] ss:$8 sps:$4 sm:$0xff] (!%p1840_p8)  }
  0xe4   : > { %4742 = vmatprep.subr.bf16.mxu0 (!%p1840_p8), %v5920_v19  ;;  %4485 = vmatpush1.bf16.msra.mxu1 (!%p1840_p8), %v5922_v20  ;;  %v5928_v24 = vld [vmem:[%s7493_s11 + $0x10] ss:$8 sps:$4 sm:$0xff] (!%p1840_p8)   ;;  %v5930_v26 = vld [vmem:[%s7493_s11 + $0x24] ss:$8 sps:$4 sm:$0xff] (!%p1840_p8)   ;;  %v5934_v28 = vld [vmem:[%s7493_s11 + $0x20] ss:$8 sps:$4 sm:$0xff] (!%p1840_p8)  }
  0xe5   : > { %4743 = vmatpush1.bf16.msra.mxu0 %v5923_v21  ;;  %4486 = vmatprep.subr.bf16.mxu1 %v5924_v22  ;;  %v5929_v25 = vld [vmem:[%s7493_s11 + $0x610] ss:$8 sps:$4 sm:$0xff]   ;;  %v5932_v27 = vld [vmem:[%s7493_s11 + $0x624] ss:$8 sps:$4 sm:$0xff]   ;;  %v5935_v29 = vld [vmem:[%s7493_s11 + $0x620] ss:$8 sps:$4 sm:$0xff]  }
  0xe6   : > { %4744 = vmatprep.subr.bf16.mxu0 %v5926_v23  ;;  %v5936_v30 = vld [vmem:[%s7493_s11 + $0x34] ss:$8 sps:$4 sm:$0xff]   ;;  %v5940_v32 = vld [vmem:[%s7493_s11 + $0x30] ss:$8 sps:$4 sm:$0xff]   ;;  %v5942_v34 = vld [vmem:[%s7493_s11 + $0x44] ss:$8 sps:$4 sm:$0xff]  }
  0xe7   : > { %v5938_v31 = vld [vmem:[%s7493_s11 + $0x634] ss:$8 sps:$4 sm:$0xff]   ;;  %v5941_v33 = vld [vmem:[%s7493_s11 + $0x630] ss:$8 sps:$4 sm:$0xff]   ;;  %v5944_v35 = vld [vmem:[%s7493_s11 + $0x644] ss:$8 sps:$4 sm:$0xff]  }
  0xe8   : > { %4487 = vmatpush1.bf16.msra.mxu1 %v5928_v24  ;;  %v5946_v36 = vld [vmem:[%s7493_s11 + $0x40] ss:$8 sps:$4 sm:$0xff]   ;;  %v5948_v38 = vld [vmem:[%s7493_s11 + $0x54] ss:$8 sps:$4 sm:$0xff]   ;;  %v5952_v40 = vld [vmem:[%s7493_s11 + $0x50] ss:$8 sps:$4 sm:$0xff]  }
  0xe9   : > { %4745 = vmatpush1.bf16.msra.mxu0 %v5929_v25  ;;  %4488 = vmatprep.subr.bf16.mxu1 %v5930_v26  ;;  %v5947_v37 = vld [vmem:[%s7493_s11 + $0x640] ss:$8 sps:$4 sm:$0xff]   ;;  %v5950_v39 = vld [vmem:[%s7493_s11 + $0x654] ss:$8 sps:$4 sm:$0xff]   ;;  %v5953_v41 = vld [vmem:[%s7493_s11 + $0x650] ss:$8 sps:$4 sm:$0xff]  }
  0xea   : > { %4746 = vmatprep.subr.bf16.mxu0 %v5932_v27  ;;  %v5954_v42 = vld [vmem:[%s7493_s11 + $0x64] ss:$8 sps:$4 sm:$0xff]   ;;  %v5958_v44 = vld [vmem:[%s7493_s11 + $0x60] ss:$8 sps:$4 sm:$0xff]   ;;  %v5960_v46 = vld [vmem:[%s7493_s11 + $0x74] ss:$8 sps:$4 sm:$0xff]  }
  0xeb   : > { %v5956_v43 = vld [vmem:[%s7493_s11 + $0x664] ss:$8 sps:$4 sm:$0xff]   ;;  %v5959_v45 = vld [vmem:[%s7493_s11 + $0x660] ss:$8 sps:$4 sm:$0xff]   ;;  %v5962_v47 = vld [vmem:[%s7493_s11 + $0x674] ss:$8 sps:$4 sm:$0xff]  }
  0xec   : > { %4489 = vmatpush1.bf16.msra.mxu1 %v5934_v28  ;;  %v5964_v48 = vld [vmem:[%s7493_s11 + $0x70] ss:$8 sps:$4 sm:$0xff]   ;;  %v5966_v50 = vld [vmem:[%s7493_s11 + $0x84] ss:$8 sps:$4 sm:$0xff]   ;;  %v5970_v52 = vld [vmem:[%s7493_s11 + $0x80] ss:$8 sps:$4 sm:$0xff]  }
  0xed   : > { %4747 = vmatpush1.bf16.msra.mxu0 %v5935_v29  ;;  %4490 = vmatprep.subr.bf16.mxu1 %v5936_v30  ;;  %v5965_v49 = vld [vmem:[%s7493_s11 + $0x670] ss:$8 sps:$4 sm:$0xff]   ;;  %v5968_v51 = vld [vmem:[%s7493_s11 + $0x684] ss:$8 sps:$4 sm:$0xff]   ;;  %v5971_v53 = vld [vmem:[%s7493_s11 + $0x680] ss:$8 sps:$4 sm:$0xff]  }
  0xee   : > { %4748 = vmatprep.subr.bf16.mxu0 %v5938_v31  ;;  %v5972_v54 = vld [vmem:[%s7493_s11 + $0x94] ss:$8 sps:$4 sm:$0xff]   ;;  %v5976_v56 = vld [vmem:[%s7493_s11 + $0x90] ss:$8 sps:$4 sm:$0xff]   ;;  %v5978_v58 = vld [vmem:[%s7493_s11 + $0xa4] ss:$8 sps:$4 sm:$0xff]  }
  0xef   : > { %v5974_v55 = vld [vmem:[%s7493_s11 + $0x694] ss:$8 sps:$4 sm:$0xff]   ;;  %v5977_v57 = vld [vmem:[%s7493_s11 + $0x690] ss:$8 sps:$4 sm:$0xff]   ;;  %v5980_v59 = vld [vmem:[%s7493_s11 + $0x6a4] ss:$8 sps:$4 sm:$0xff]  }
  0xf0   : > { %4491 = vmatpush1.bf16.msra.mxu1 %v5940_v32  ;;  %v5982_v60 = vld [vmem:[%s7493_s11 + $0xa0] ss:$8 sps:$4 sm:$0xff]   ;;  %v5984_v62 = vld [vmem:[%s7493_s11 + $0xb4] ss:$8 sps:$4 sm:$0xff]   ;;  %v5988_v0 = vld [vmem:[%s7493_s11 + $0xb0] ss:$8 sps:$4 sm:$0xff]  }
  0xf1   : > { %4749 = vmatpush1.bf16.msra.mxu0 %v5941_v33  ;;  %4492 = vmatprep.subr.bf16.mxu1 %v5942_v34  ;;  %v5983_v61 = vld [vmem:[%s7493_s11 + $0x6a0] ss:$8 sps:$4 sm:$0xff]   ;;  %v5986_v63 = vld [vmem:[%s7493_s11 + $0x6b4] ss:$8 sps:$4 sm:$0xff]   ;;  %v5989_v1 = vld [vmem:[%s7493_s11 + $0x6b0] ss:$8 sps:$4 sm:$0xff]  }
  0xf2   : > { %4750 = vmatprep.subr.bf16.mxu0 %v5944_v35  ;;  %v5990_v2 = vld [vmem:[%s7493_s11 + $0xc4] ss:$8 sps:$4 sm:$0xff]   ;;  %v5994_v4 = vld [vmem:[%s7493_s11 + $0xc0] ss:$8 sps:$4 sm:$0xff]   ;;  %v5996_v6 = vld [vmem:[%s7493_s11 + $0xd4] ss:$8 sps:$4 sm:$0xff]  }
  0xf3   : > { %v5992_v3 = vld [vmem:[%s7493_s11 + $0x6c4] ss:$8 sps:$4 sm:$0xff]   ;;  %v5995_v5 = vld [vmem:[%s7493_s11 + $0x6c0] ss:$8 sps:$4 sm:$0xff]   ;;  %v5998_v7 = vld [vmem:[%s7493_s11 + $0x6d4] ss:$8 sps:$4 sm:$0xff]  }
  0xf4   : > { %4493 = vmatpush1.bf16.msra.mxu1 %v5946_v36  ;;  %v6000_v8 = vld [vmem:[%s7493_s11 + $0xd0] ss:$8 sps:$4 sm:$0xff]   ;;  %v6002_v10 = vld [vmem:[%s7493_s11 + $0xe4] ss:$8 sps:$4 sm:$0xff]   ;;  %v6006_v12 = vld [vmem:[%s7493_s11 + $0xe0] ss:$8 sps:$4 sm:$0xff]  }
  0xf5   : > { %4751 = vmatpush1.bf16.msra.mxu0 %v5947_v37  ;;  %4494 = vmatprep.subr.bf16.mxu1 %v5948_v38  ;;  %v6001_v9 = vld [vmem:[%s7493_s11 + $0x6d0] ss:$8 sps:$4 sm:$0xff]   ;;  %v6004_v11 = vld [vmem:[%s7493_s11 + $0x6e4] ss:$8 sps:$4 sm:$0xff]   ;;  %v6007_v13 = vld [vmem:[%s7493_s11 + $0x6e0] ss:$8 sps:$4 sm:$0xff]  }
  0xf6   : > { %4752 = vmatprep.subr.bf16.mxu0 %v5950_v39  ;;  %v6008_v14 = vld [vmem:[%s7493_s11 + $0xf4] ss:$8 sps:$4 sm:$0xff]   ;;  %v6012_v16 = vld [vmem:[%s7493_s11 + $0xf0] ss:$8 sps:$4 sm:$0xff]   ;;  %v6019_v18 = vld [vmem:[%s7493_s11 + $0x104] ss:$8 sps:$4 sm:$0xff]  }
  0xf7   : > { %v6010_v15 = vld [vmem:[%s7493_s11 + $0x6f4] ss:$8 sps:$4 sm:$0xff]   ;;  %v6013_v17 = vld [vmem:[%s7493_s11 + $0x6f0] ss:$8 sps:$4 sm:$0xff]   ;;  %v6025_v19 = vld [vmem:[%s7493_s11 + $0x704] ss:$8 sps:$4 sm:$0xff]  }
  0xf8   : > { %4495 = vmatpush1.bf16.msra.mxu1 %v5952_v40  ;;  %v6014_v20 = vld [vmem:[%s7992_s0] ss:$100 sps:$4 sm:$0xff]   ;;  %v6020_v21 = vld [vmem:[%s7992_s0 + $0x30] ss:$100 sps:$4 sm:$0xff]   ;;  %s8004_s26 = smov (!%p1904_p9, %s5352_s26), 63 }
  0xf9   : > { %4753 = vmatpush1.bf16.msra.mxu0 %v5953_v41  ;;  %4496 = vmatprep.subr.bf16.mxu1 %v5954_v42  ;;  %v6017_v22 = vld [vmem:[%s7493_s11 + $0x100] ss:$8 sps:$4 sm:$0xff]   ;;  %v6028_v24 = vld [vmem:[%s7493_s11 + $0x114] ss:$8 sps:$4 sm:$0xff]   ;;  %v6026_v26 = vld [vmem:[%s7493_s11 + $0x110] ss:$8 sps:$4 sm:$0xff]  }
  0xfa   : > { %4754 = vmatprep.subr.bf16.mxu0 %v5956_v43  ;;  %v6023_v23 = vld [vmem:[%s7493_s11 + $0x700] ss:$8 sps:$4 sm:$0xff]   ;;  %v6031_v25 = vld [vmem:[%s7493_s11 + $0x714] ss:$8 sps:$4 sm:$0xff]   ;;  %v6029_v27 = vld [vmem:[%s7493_s11 + $0x710] ss:$8 sps:$4 sm:$0xff]  }
  0xfb   : > { %v6034_v28 = vld [vmem:[%s7493_s11 + $0x124] ss:$8 sps:$4 sm:$0xff]   ;;  %v6032_v30 = vld [vmem:[%s7493_s11 + $0x120] ss:$8 sps:$4 sm:$0xff]   ;;  %v6040_v32 = vld [vmem:[%s7493_s11 + $0x134] ss:$8 sps:$4 sm:$0xff]  }
  0xfc   : > { %4497 = vmatpush1.bf16.msra.mxu1 %v5958_v44  ;;  %v6037_v29 = vld [vmem:[%s7493_s11 + $0x724] ss:$8 sps:$4 sm:$0xff]   ;;  %v6035_v31 = vld [vmem:[%s7493_s11 + $0x720] ss:$8 sps:$4 sm:$0xff]   ;;  %v6043_v33 = vld [vmem:[%s7493_s11 + $0x734] ss:$8 sps:$4 sm:$0xff]  }
  0xfd   : > { %4755 = vmatpush1.bf16.msra.mxu0 %v5959_v45  ;;  %4498 = vmatprep.subr.bf16.mxu1 %v5960_v46  ;;  %v6038_v34 = vld [vmem:[%s7493_s11 + $0x130] ss:$8 sps:$4 sm:$0xff]   ;;  %v6046_v36 = vld [vmem:[%s7493_s11 + $0x144] ss:$8 sps:$4 sm:$0xff]   ;;  %v6044_v38 = vld [vmem:[%s7493_s11 + $0x140] ss:$8 sps:$4 sm:$0xff]  }
  0xfe   : > { %4756 = vmatprep.subr.bf16.mxu0 %v5962_v47  ;;  %v6041_v35 = vld [vmem:[%s7493_s11 + $0x730] ss:$8 sps:$4 sm:$0xff]   ;;  %v6049_v37 = vld [vmem:[%s7493_s11 + $0x744] ss:$8 sps:$4 sm:$0xff]   ;;  %v6047_v39 = vld [vmem:[%s7493_s11 + $0x740] ss:$8 sps:$4 sm:$0xff]  }
  0xff   : > { %v6052_v40 = vld [vmem:[%s7493_s11 + $0x154] ss:$8 sps:$4 sm:$0xff]   ;;  %v6050_v42 = vld [vmem:[%s7493_s11 + $0x150] ss:$8 sps:$4 sm:$0xff]   ;;  %v6058_v44 = vld [vmem:[%s7493_s11 + $0x164] ss:$8 sps:$4 sm:$0xff]  }
 0x100   : > { %4499 = vmatpush1.bf16.msra.mxu1 %v5964_v48  ;;  %v6055_v41 = vld [vmem:[%s7493_s11 + $0x754] ss:$8 sps:$4 sm:$0xff]   ;;  %v6053_v43 = vld [vmem:[%s7493_s11 + $0x750] ss:$8 sps:$4 sm:$0xff]   ;;  %v6061_v45 = vld [vmem:[%s7493_s11 + $0x764] ss:$8 sps:$4 sm:$0xff]  }
 0x101   : > { %4757 = vmatpush1.bf16.msra.mxu0 %v5965_v49  ;;  %4500 = vmatprep.subr.bf16.mxu1 %v5966_v50  ;;  %v6118_v46 = vld [vmem:[%s7992_s0 + $0xc] ss:$100 sps:$4 sm:$0xff]   ;;  %v6056_v47 = vld [vmem:[%s7493_s11 + $0x160] ss:$8 sps:$4 sm:$0xff]   ;;  %v6064_v50 = vld [vmem:[%s7493_s11 + $0x174] ss:$8 sps:$4 sm:$0xff]  }
 0x102   : > { %4758 = vmatprep.subr.bf16.mxu0 %v5968_v51  ;;  %v6059_v48 = vld [vmem:[%s7493_s11 + $0x760] ss:$8 sps:$4 sm:$0xff]   ;;  %v6067_v51 = vld [vmem:[%s7493_s11 + $0x774] ss:$8 sps:$4 sm:$0xff]   ;;  %s5353_s27 = sshll.u32 %s8004_s26, 2 }
 0x103   : > { %v6124_v49 = vld [vmem:[%s7992_s0 + $0x3c] ss:$100 sps:$4 sm:$0xff]   ;;  %s1907_s30 = scalar_lea.vmem %s7995_s3, %s5353_s27 }
 0x104   : > { %4501 = vmatpush1.bf16.msra.mxu1 %v5970_v52  ;;  %v6062_v52 = vld [vmem:[%s7493_s11 + $0x170] ss:$8 sps:$4 sm:$0xff]  }
 0x105   : > { %4759 = vmatpush1.bf16.msra.mxu0 %v5971_v53  ;;  %4502 = vmatprep.subr.bf16.mxu1 %v5972_v54  ;;  %v6065_v53 = vld [vmem:[%s7493_s11 + $0x770] ss:$8 sps:$4 sm:$0xff]   ;;  %v6070_v54 = vld [vmem:[%s7493_s11 + $0x184] ss:$8 sps:$4 sm:$0xff]  }
 0x106   : > { %4760 = vmatprep.subr.bf16.mxu0 %v5974_v55  ;;  %v6073_v55 = vld [vmem:[%s7493_s11 + $0x784] ss:$8 sps:$4 sm:$0xff]  }
 0x108   : > { %4503 = vmatpush1.bf16.msra.mxu1 %v5976_v56  ;;  %v6068_v56 = vld [vmem:[%s7493_s11 + $0x180] ss:$8 sps:$4 sm:$0xff]  }
 0x109   : > { %4761 = vmatpush1.bf16.msra.mxu0 %v5977_v57  ;;  %4504 = vmatprep.subr.bf16.mxu1 %v5978_v58  ;;  %v6071_v57 = vld [vmem:[%s7493_s11 + $0x780] ss:$8 sps:$4 sm:$0xff]   ;;  %v6076_v58 = vld [vmem:[%s7493_s11 + $0x194] ss:$8 sps:$4 sm:$0xff]  }
 0x10a   : > { %4762 = vmatprep.subr.bf16.mxu0 %v5980_v59  ;;  %v6079_v59 = vld [vmem:[%s7493_s11 + $0x794] ss:$8 sps:$4 sm:$0xff]  }
 0x10c   : > { %4505 = vmatpush1.bf16.msra.mxu1 %v5982_v60  ;;  %v6074_v60 = vld [vmem:[%s7493_s11 + $0x190] ss:$8 sps:$4 sm:$0xff]  }
 0x10d   : > { %4763 = vmatpush1.bf16.msra.mxu0 %v5983_v61  ;;  %4506 = vmatprep.subr.bf16.mxu1 %v5984_v62  ;;  %v6077_v61 = vld [vmem:[%s7493_s11 + $0x790] ss:$8 sps:$4 sm:$0xff]   ;;  %v6082_v62 = vld [vmem:[%s7493_s11 + $0x1a4] ss:$8 sps:$4 sm:$0xff]  }
 0x10e   : > { %4764 = vmatprep.subr.bf16.mxu0 %v5986_v63  ;;  %v6085_v63 = vld [vmem:[%s7493_s11 + $0x7a4] ss:$8 sps:$4 sm:$0xff]  }
 0x110   : > { %4507 = vmatpush1.bf16.msra.mxu1 %v5988_v0  ;;  %v6080_v0 = vld [vmem:[%s7493_s11 + $0x1a0] ss:$8 sps:$4 sm:$0xff]  }
 0x111   : > { %4765 = vmatpush1.bf16.msra.mxu0 %v5989_v1  ;;  %4508 = vmatprep.subr.bf16.mxu1 %v5990_v2  ;;  %v6083_v1 = vld [vmem:[%s7493_s11 + $0x7a0] ss:$8 sps:$4 sm:$0xff]   ;;  %v6088_v2 = vld [vmem:[%s7493_s11 + $0x1b4] ss:$8 sps:$4 sm:$0xff]  }
 0x112   : > { %4766 = vmatprep.subr.bf16.mxu0 %v5992_v3  ;;  %v6091_v3 = vld [vmem:[%s7493_s11 + $0x7b4] ss:$8 sps:$4 sm:$0xff]  }
 0x114   : > { %4509 = vmatpush1.bf16.msra.mxu1 %v5994_v4  ;;  %v6086_v4 = vld [vmem:[%s7493_s11 + $0x1b0] ss:$8 sps:$4 sm:$0xff]  }
 0x115   : > { %4767 = vmatpush1.bf16.msra.mxu0 %v5995_v5  ;;  %4510 = vmatprep.subr.bf16.mxu1 %v5996_v6  ;;  %v6089_v5 = vld [vmem:[%s7493_s11 + $0x7b0] ss:$8 sps:$4 sm:$0xff]   ;;  %v6094_v6 = vld [vmem:[%s7493_s11 + $0x1c4] ss:$8 sps:$4 sm:$0xff]  }
 0x116   : > { %4768 = vmatprep.subr.bf16.mxu0 %v5998_v7  ;;  %v6097_v7 = vld [vmem:[%s7493_s11 + $0x7c4] ss:$8 sps:$4 sm:$0xff]  }
 0x118   : > { %4511 = vmatpush1.bf16.msra.mxu1 %v6000_v8  ;;  %v6092_v8 = vld [vmem:[%s7493_s11 + $0x1c0] ss:$8 sps:$4 sm:$0xff]  }
 0x119   : > { %4769 = vmatpush1.bf16.msra.mxu0 %v6001_v9  ;;  %4512 = vmatprep.subr.bf16.mxu1 %v6002_v10  ;;  %v6095_v9 = vld [vmem:[%s7493_s11 + $0x7c0] ss:$8 sps:$4 sm:$0xff]   ;;  %v6100_v10 = vld [vmem:[%s7493_s11 + $0x1d4] ss:$8 sps:$4 sm:$0xff]  }
 0x11a   : > { %4770 = vmatprep.subr.bf16.mxu0 %v6004_v11  ;;  %v6103_v11 = vld [vmem:[%s7493_s11 + $0x7d4] ss:$8 sps:$4 sm:$0xff]  }
 0x11c   : > { %4513 = vmatpush1.bf16.msra.mxu1 %v6006_v12  ;;  %v6098_v12 = vld [vmem:[%s7493_s11 + $0x1d0] ss:$8 sps:$4 sm:$0xff]  }
 0x11d   : > { %4771 = vmatpush1.bf16.msra.mxu0 %v6007_v13  ;;  %4514 = vmatprep.subr.bf16.mxu1 %v6008_v14  ;;  %v6101_v13 = vld [vmem:[%s7493_s11 + $0x7d0] ss:$8 sps:$4 sm:$0xff]   ;;  %v6106_v14 = vld [vmem:[%s7493_s11 + $0x1e4] ss:$8 sps:$4 sm:$0xff]  }
 0x11e   : > { %4772 = vmatprep.subr.bf16.mxu0 %v6010_v15  ;;  %v6109_v15 = vld [vmem:[%s7493_s11 + $0x7e4] ss:$8 sps:$4 sm:$0xff]  }
 0x120   : > { %4515 = vmatpush1.bf16.msra.mxu1 %v6012_v16  ;;  %v6104_v16 = vld [vmem:[%s7493_s11 + $0x1e0] ss:$8 sps:$4 sm:$0xff]  }
 0x121   : > { %4773 = vmatpush1.bf16.msra.mxu0 %v6013_v17  ;;  %4527 = vmatprep.subr.bf16.mxu1 %v6019_v18  ;;  %v6107_v17 = vld [vmem:[%s7493_s11 + $0x7e0] ss:$8 sps:$4 sm:$0xff]   ;;  %v6112_v18 = vld [vmem:[%s7493_s11 + $0x1f4] ss:$8 sps:$4 sm:$0xff]  }
 0x122   : > { %4785 = vmatprep.subr.bf16.mxu0 %v6025_v19  ;;  %v6115_v19 = vld [vmem:[%s7493_s11 + $0x7f4] ss:$8 sps:$4 sm:$0xff]  }
 0x123   : > { %4517 = vmatmul.mubr.bf16.vlgmr.msra.gmra.mrb[0].mxu1 %v6014_v20  ;;  %v6110_v20 = vld [vmem:[%s7493_s11 + $0x1f0] ss:$8 sps:$4 sm:$0xff]  }
 0x124   : > { %4775 = vmatmul.mubr.bf16.vlgmr.msra.gmra.mrb[0].mxu0 %v6020_v21  ;;  %4528 = vmatpush1.bf16.msra.mxu1 %v6017_v22  ;;  %v6113_v21 = vld [vmem:[%s7493_s11 + $0x7f0] ss:$8 sps:$4 sm:$0xff]   ;;  %v6121_v22 = vld [vmem:[%s7493_s11 + $0x204] ss:$8 sps:$4 sm:$0xff]  }
 0x125   : > { %4786 = vmatpush1.bf16.msra.mxu0 %v6023_v23  ;;  %4529 = vmatprep.subr.bf16.mxu1 %v6028_v24  ;;  %v6127_v23 = vld [vmem:[%s7493_s11 + $0x804] ss:$8 sps:$4 sm:$0xff]  }
 0x126   : > { %4787 = vmatprep.subr.bf16.mxu0 %v6031_v25  ;;  %4559 = vmatprep.mubr.bf16.mxu1 %v6118_v46  ;;  %v6116_v24 = vld [vmem:[%s7992_s0 + $0x8] ss:$100 sps:$4 sm:$0xff]   ;;  %v6154_v46 = vld [vmem:[%s7493_s11 + $0x254] ss:$8 sps:$4 sm:$0xff]  }
 0x127   : > { %4817 = vmatprep.mubr.bf16.mxu0 %v6124_v49  ;;  %v6119_v25 = vld [vmem:[%s7493_s11 + $0x200] ss:$8 sps:$4 sm:$0xff]   ;;  %v6155_v49 = vld [vmem:[%s7493_s11 + $0x850] ss:$8 sps:$4 sm:$0xff]  }
 0x128   : > { %4530 = vmatpush1.bf16.msra.mxu1 %v6026_v26  ;;  %v6122_v26 = vld [vmem:[%s7992_s0 + $0x38] ss:$100 sps:$4 sm:$0xff]  }
 0x129   : > { %4788 = vmatpush1.bf16.msra.mxu0 %v6029_v27  ;;  %4531 = vmatprep.subr.bf16.mxu1 %v6034_v28  ;;  %v6125_v27 = vld [vmem:[%s7493_s11 + $0x800] ss:$8 sps:$4 sm:$0xff]   ;;  %v6130_v28 = vld [vmem:[%s7493_s11 + $0x214] ss:$8 sps:$4 sm:$0xff]  }
 0x12a   : > { %4789 = vmatprep.subr.bf16.mxu0 %v6037_v29  ;;  %v6133_v29 = vld [vmem:[%s7493_s11 + $0x814] ss:$8 sps:$4 sm:$0xff]  }
 0x12c   : > { %4532 = vmatpush1.bf16.msra.mxu1 %v6032_v30  ;;  %v6128_v30 = vld [vmem:[%s7493_s11 + $0x210] ss:$8 sps:$4 sm:$0xff]  }
 0x12d   : > { %4790 = vmatpush1.bf16.msra.mxu0 %v6035_v31  ;;  %4533 = vmatprep.subr.bf16.mxu1 %v6040_v32  ;;  %v6220_v31 = vld [vmem:[%s7992_s0 + $0x14] ss:$100 sps:$4 sm:$0xff]  }
 0x12e   : > { %4791 = vmatprep.subr.bf16.mxu0 %v6043_v33  ;;  %v6131_v32 = vld [vmem:[%s7493_s11 + $0x810] ss:$8 sps:$4 sm:$0xff]   ;;  %v6136_v33 = vld [vmem:[%s7493_s11 + $0x224] ss:$8 sps:$4 sm:$0xff]  }
 0x130   : > { %4534 = vmatpush1.bf16.msra.mxu1 %v6038_v34  ;;  %v6139_v34 = vld [vmem:[%s7493_s11 + $0x824] ss:$8 sps:$4 sm:$0xff]  }
 0x131   : > { %4792 = vmatpush1.bf16.msra.mxu0 %v6041_v35  ;;  %4535 = vmatprep.subr.bf16.mxu1 %v6046_v36  ;;  %v6226_v35 = vld [vmem:[%s7992_s0 + $0x44] ss:$100 sps:$4 sm:$0xff]  }
 0x132   : > { %4793 = vmatprep.subr.bf16.mxu0 %v6049_v37  ;;  %v6134_v36 = vld [vmem:[%s7493_s11 + $0x220] ss:$8 sps:$4 sm:$0xff]  }
 0x133   : > { %v6137_v37 = vld [vmem:[%s7493_s11 + $0x820] ss:$8 sps:$4 sm:$0xff]  }
 0x134   : > { %4536 = vmatpush1.bf16.msra.mxu1 %v6044_v38  ;;  %v6142_v38 = vld [vmem:[%s7493_s11 + $0x234] ss:$8 sps:$4 sm:$0xff]  }
 0x135   : > { %4794 = vmatpush1.bf16.msra.mxu0 %v6047_v39  ;;  %4537 = vmatprep.subr.bf16.mxu1 %v6052_v40  ;;  %v6145_v39 = vld [vmem:[%s7493_s11 + $0x834] ss:$8 sps:$4 sm:$0xff]   ;;  %v6140_v40 = vld [vmem:[%s7493_s11 + $0x230] ss:$8 sps:$4 sm:$0xff]  }
 0x136   : > { %4795 = vmatprep.subr.bf16.mxu0 %v6055_v41  ;;  %v6143_v41 = vld [vmem:[%s7493_s11 + $0x830] ss:$8 sps:$4 sm:$0xff]  }
 0x138   : > { %4538 = vmatpush1.bf16.msra.mxu1 %v6050_v42  ;;  %v6148_v42 = vld [vmem:[%s7493_s11 + $0x244] ss:$8 sps:$4 sm:$0xff]  }
 0x139   : > { %4796 = vmatpush1.bf16.msra.mxu0 %v6053_v43  ;;  %4539 = vmatprep.subr.bf16.mxu1 %v6058_v44  ;;  %v6151_v43 = vld [vmem:[%s7493_s11 + $0x844] ss:$8 sps:$4 sm:$0xff]   ;;  %v6146_v44 = vld [vmem:[%s7493_s11 + $0x240] ss:$8 sps:$4 sm:$0xff]  }
 0x13a   : > { %4797 = vmatprep.subr.bf16.mxu0 %v6061_v45  ;;  %v6149_v45 = vld [vmem:[%s7493_s11 + $0x840] ss:$8 sps:$4 sm:$0xff]  }
 0x13c   : > { %4540 = vmatpush1.bf16.msra.mxu1 %v6056_v47  ;;  %v6157_v47 = vld [vmem:[%s7493_s11 + $0x854] ss:$8 sps:$4 sm:$0xff]  }
 0x13d   : > { %4798 = vmatpush1.bf16.msra.mxu0 %v6059_v48  ;;  %4541 = vmatprep.subr.bf16.mxu1 %v6064_v50  ;;  %v6152_v48 = vld [vmem:[%s7493_s11 + $0x250] ss:$8 sps:$4 sm:$0xff]   ;;  %v6160_v50 = vld [vmem:[%s7493_s11 + $0x264] ss:$8 sps:$4 sm:$0xff]  }
 0x13e   : > { %4799 = vmatprep.subr.bf16.mxu0 %v6067_v51  ;;  %v6163_v51 = vld [vmem:[%s7493_s11 + $0x864] ss:$8 sps:$4 sm:$0xff]  }
 0x140   : > { %4542 = vmatpush1.bf16.msra.mxu1 %v6062_v52  ;;  %v6158_v52 = vld [vmem:[%s7493_s11 + $0x260] ss:$8 sps:$4 sm:$0xff]  }
 0x141   : > { %4800 = vmatpush1.bf16.msra.mxu0 %v6065_v53  ;;  %4543 = vmatprep.subr.bf16.mxu1 %v6070_v54  ;;  %v6161_v53 = vld [vmem:[%s7493_s11 + $0x860] ss:$8 sps:$4 sm:$0xff]   ;;  %v6166_v54 = vld [vmem:[%s7493_s11 + $0x274] ss:$8 sps:$4 sm:$0xff]  }
 0x142   : > { %4801 = vmatprep.subr.bf16.mxu0 %v6073_v55  ;;  %v6169_v55 = vld [vmem:[%s7493_s11 + $0x874] ss:$8 sps:$4 sm:$0xff]  }
 0x144   : > { %4544 = vmatpush1.bf16.msra.mxu1 %v6068_v56  ;;  %v6164_v56 = vld [vmem:[%s7493_s11 + $0x270] ss:$8 sps:$4 sm:$0xff]  }
 0x145   : > { %4802 = vmatpush1.bf16.msra.mxu0 %v6071_v57  ;;  %4545 = vmatprep.subr.bf16.mxu1 %v6076_v58  ;;  %v6167_v57 = vld [vmem:[%s7493_s11 + $0x870] ss:$8 sps:$4 sm:$0xff]   ;;  %v6172_v58 = vld [vmem:[%s7493_s11 + $0x284] ss:$8 sps:$4 sm:$0xff]  }
 0x146   : > { %4803 = vmatprep.subr.bf16.mxu0 %v6079_v59  ;;  %v6175_v59 = vld [vmem:[%s7493_s11 + $0x884] ss:$8 sps:$4 sm:$0xff]  }
 0x148   : > { %4546 = vmatpush1.bf16.msra.mxu1 %v6074_v60  ;;  %v6170_v60 = vld [vmem:[%s7493_s11 + $0x280] ss:$8 sps:$4 sm:$0xff]  }
 0x149   : > { %4804 = vmatpush1.bf16.msra.mxu0 %v6077_v61  ;;  %4547 = vmatprep.subr.bf16.mxu1 %v6082_v62  ;;  %v6173_v61 = vld [vmem:[%s7493_s11 + $0x880] ss:$8 sps:$4 sm:$0xff]   ;;  %v6178_v62 = vld [vmem:[%s7493_s11 + $0x294] ss:$8 sps:$4 sm:$0xff]  }
 0x14a   : > { %4805 = vmatprep.subr.bf16.mxu0 %v6085_v63  ;;  %v6181_v63 = vld [vmem:[%s7493_s11 + $0x894] ss:$8 sps:$4 sm:$0xff]  }
 0x14c   : > { %4548 = vmatpush1.bf16.msra.mxu1 %v6080_v0  ;;  %v6176_v0 = vld [vmem:[%s7493_s11 + $0x290] ss:$8 sps:$4 sm:$0xff]  }
 0x14d   : > { %4806 = vmatpush1.bf16.msra.mxu0 %v6083_v1  ;;  %4549 = vmatprep.subr.bf16.mxu1 %v6088_v2  ;;  %v6179_v1 = vld [vmem:[%s7493_s11 + $0x890] ss:$8 sps:$4 sm:$0xff]   ;;  %v6184_v2 = vld [vmem:[%s7493_s11 + $0x2a4] ss:$8 sps:$4 sm:$0xff]  }
 0x14e   : > { %4807 = vmatprep.subr.bf16.mxu0 %v6091_v3  ;;  %v6187_v3 = vld [vmem:[%s7493_s11 + $0x8a4] ss:$8 sps:$4 sm:$0xff]  }
 0x150   : > { %4550 = vmatpush1.bf16.msra.mxu1 %v6086_v4  ;;  %v6182_v4 = vld [vmem:[%s7493_s11 + $0x2a0] ss:$8 sps:$4 sm:$0xff]  }
 0x151   : > { %4808 = vmatpush1.bf16.msra.mxu0 %v6089_v5  ;;  %4551 = vmatprep.subr.bf16.mxu1 %v6094_v6  ;;  %v6185_v5 = vld [vmem:[%s7493_s11 + $0x8a0] ss:$8 sps:$4 sm:$0xff]   ;;  %v6190_v6 = vld [vmem:[%s7493_s11 + $0x2b4] ss:$8 sps:$4 sm:$0xff]  }
 0x152   : > { %4809 = vmatprep.subr.bf16.mxu0 %v6097_v7  ;;  %v6193_v7 = vld [vmem:[%s7493_s11 + $0x8b4] ss:$8 sps:$4 sm:$0xff]  }
 0x154   : > { %4552 = vmatpush1.bf16.msra.mxu1 %v6092_v8  ;;  %v6188_v8 = vld [vmem:[%s7493_s11 + $0x2b0] ss:$8 sps:$4 sm:$0xff]  }
 0x155   : > { %4810 = vmatpush1.bf16.msra.mxu0 %v6095_v9  ;;  %4553 = vmatprep.subr.bf16.mxu1 %v6100_v10  ;;  %v6191_v9 = vld [vmem:[%s7493_s11 + $0x8b0] ss:$8 sps:$4 sm:$0xff]   ;;  %v6196_v10 = vld [vmem:[%s7493_s11 + $0x2c4] ss:$8 sps:$4 sm:$0xff]  }
 0x156   : > { %4811 = vmatprep.subr.bf16.mxu0 %v6103_v11  ;;  %v6199_v11 = vld [vmem:[%s7493_s11 + $0x8c4] ss:$8 sps:$4 sm:$0xff]  }
 0x158   : > { %4554 = vmatpush1.bf16.msra.mxu1 %v6098_v12  ;;  %v6194_v12 = vld [vmem:[%s7493_s11 + $0x2c0] ss:$8 sps:$4 sm:$0xff]  }
 0x159   : > { %4812 = vmatpush1.bf16.msra.mxu0 %v6101_v13  ;;  %4555 = vmatprep.subr.bf16.mxu1 %v6106_v14  ;;  %v6197_v13 = vld [vmem:[%s7493_s11 + $0x8c0] ss:$8 sps:$4 sm:$0xff]   ;;  %v6202_v14 = vld [vmem:[%s7493_s11 + $0x2d4] ss:$8 sps:$4 sm:$0xff]  }
 0x15a   : > { %4813 = vmatprep.subr.bf16.mxu0 %v6109_v15  ;;  %v6205_v15 = vld [vmem:[%s7493_s11 + $0x8d4] ss:$8 sps:$4 sm:$0xff]  }
 0x15c   : > { %4556 = vmatpush1.bf16.msra.mxu1 %v6104_v16  ;;  %v6200_v16 = vld [vmem:[%s7493_s11 + $0x2d0] ss:$8 sps:$4 sm:$0xff]  }
 0x15d   : > { %4814 = vmatpush1.bf16.msra.mxu0 %v6107_v17  ;;  %4557 = vmatprep.subr.bf16.mxu1 %v6112_v18  ;;  %v6203_v17 = vld [vmem:[%s7493_s11 + $0x8d0] ss:$8 sps:$4 sm:$0xff]   ;;  %v6208_v18 = vld [vmem:[%s7493_s11 + $0x2e4] ss:$8 sps:$4 sm:$0xff]  }
 0x15e   : > { %4815 = vmatprep.subr.bf16.mxu0 %v6115_v19  ;;  %v6211_v19 = vld [vmem:[%s7493_s11 + $0x8e4] ss:$8 sps:$4 sm:$0xff]  }
 0x160   : > { %4558 = vmatpush1.bf16.msra.mxu1 %v6110_v20  ;;  %v6206_v20 = vld [vmem:[%s7493_s11 + $0x2e0] ss:$8 sps:$4 sm:$0xff]  }
 0x161   : > { %4816 = vmatpush1.bf16.msra.mxu0 %v6113_v21  ;;  %4570 = vmatprep.subr.bf16.mxu1 %v6121_v22  ;;  %v6209_v21 = vld [vmem:[%s7493_s11 + $0x8e0] ss:$8 sps:$4 sm:$0xff]   ;;  %v6214_v22 = vld [vmem:[%s7493_s11 + $0x2f4] ss:$8 sps:$4 sm:$0xff]  }
 0x162   : > { %4828 = vmatprep.subr.bf16.mxu0 %v6127_v23  ;;  %v6217_v23 = vld [vmem:[%s7493_s11 + $0x8f4] ss:$8 sps:$4 sm:$0xff]  }
 0x163   : > { %4560 = vmatmul.mubr.bf16.vlgmr.msra.gmra.mrb[0].mxu1 %v6116_v24  ;;  %v6212_v24 = vld [vmem:[%s7493_s11 + $0x2f0] ss:$8 sps:$4 sm:$0xff]  }
 0x164   : > { %4818 = vmatmul.mubr.bf16.vlgmr.msra.gmra.mrb[0].mxu0 %v6122_v26  ;;  %4571 = vmatpush1.bf16.msra.mxu1 %v6119_v25  ;;  %v6215_v25 = vld [vmem:[%s7493_s11 + $0x8f0] ss:$8 sps:$4 sm:$0xff]   ;;  %v6223_v26 = vld [vmem:[%s7493_s11 + $0x304] ss:$8 sps:$4 sm:$0xff]  }
 0x165   : > { %4829 = vmatpush1.bf16.msra.mxu0 %v6125_v27  ;;  %4572 = vmatprep.subr.bf16.mxu1 %v6130_v28  ;;  %v6229_v27 = vld [vmem:[%s7493_s11 + $0x904] ss:$8 sps:$4 sm:$0xff]   ;;  %v6218_v28 = vld [vmem:[%s7992_s0 + $0x10] ss:$100 sps:$4 sm:$0xff]  }
 0x166   : > { %4830 = vmatprep.subr.bf16.mxu0 %v6133_v29  ;;  %4602 = vmatprep.mubr.bf16.mxu1 %v6220_v31  ;;  %v6221_v29 = vld [vmem:[%s7493_s11 + $0x300] ss:$8 sps:$4 sm:$0xff]  }
 0x167   : > { %4860 = vmatprep.mubr.bf16.mxu0 %v6226_v35  ;;  %v6227_v31 = vld [vmem:[%s7493_s11 + $0x900] ss:$8 sps:$4 sm:$0xff]   ;;  %v6328_v35 = vld [vmem:[%s7992_s0 + $0x4c] ss:$100 sps:$4 sm:$0xff]  }
 0x168   : > { %4573 = vmatpush1.bf16.msra.mxu1 %v6128_v30  ;;  %v6224_v30 = vld [vmem:[%s7992_s0 + $0x40] ss:$100 sps:$4 sm:$0xff]  }
 0x169   : > { %4831 = vmatpush1.bf16.msra.mxu0 %v6131_v32  ;;  %4574 = vmatprep.subr.bf16.mxu1 %v6136_v33  ;;  %v6232_v32 = vld [vmem:[%s7493_s11 + $0x314] ss:$8 sps:$4 sm:$0xff]  }
 0x16a   : > { %4832 = vmatprep.subr.bf16.mxu0 %v6139_v34  ;;  %v6235_v33 = vld [vmem:[%s7493_s11 + $0x914] ss:$8 sps:$4 sm:$0xff]  }
 0x16b   : > { %v6322_v34 = vld [vmem:[%s7992_s0 + $0x1c] ss:$100 sps:$4 sm:$0xff]  }
 0x16c   : > { %4575 = vmatpush1.bf16.msra.mxu1 %v6134_v36  ;;  %v6230_v36 = vld [vmem:[%s7493_s11 + $0x310] ss:$8 sps:$4 sm:$0xff]  }
 0x16d   : > { %4833 = vmatpush1.bf16.msra.mxu0 %v6137_v37  ;;  %4576 = vmatprep.subr.bf16.mxu1 %v6142_v38  ;;  %v6233_v37 = vld [vmem:[%s7493_s11 + $0x910] ss:$8 sps:$4 sm:$0xff]   ;;  %v6238_v38 = vld [vmem:[%s7493_s11 + $0x324] ss:$8 sps:$4 sm:$0xff]  }
 0x16e   : > { %4834 = vmatprep.subr.bf16.mxu0 %v6145_v39  ;;  %v6241_v39 = vld [vmem:[%s7493_s11 + $0x924] ss:$8 sps:$4 sm:$0xff]  }
 0x170   : > { %4577 = vmatpush1.bf16.msra.mxu1 %v6140_v40  ;;  %v6236_v40 = vld [vmem:[%s7493_s11 + $0x320] ss:$8 sps:$4 sm:$0xff]  }
 0x171   : > { %4835 = vmatpush1.bf16.msra.mxu0 %v6143_v41  ;;  %4578 = vmatprep.subr.bf16.mxu1 %v6148_v42  ;;  %v6239_v41 = vld [vmem:[%s7493_s11 + $0x920] ss:$8 sps:$4 sm:$0xff]   ;;  %v6244_v42 = vld [vmem:[%s7493_s11 + $0x334] ss:$8 sps:$4 sm:$0xff]  }
 0x172   : > { %4836 = vmatprep.subr.bf16.mxu0 %v6151_v43  ;;  %v6247_v43 = vld [vmem:[%s7493_s11 + $0x934] ss:$8 sps:$4 sm:$0xff]  }
 0x174   : > { %4579 = vmatpush1.bf16.msra.mxu1 %v6146_v44  ;;  %v6242_v44 = vld [vmem:[%s7493_s11 + $0x330] ss:$8 sps:$4 sm:$0xff]  }
 0x175   : > { %4837 = vmatpush1.bf16.msra.mxu0 %v6149_v45  ;;  %4580 = vmatprep.subr.bf16.mxu1 %v6154_v46  ;;  %v6245_v45 = vld [vmem:[%s7493_s11 + $0x930] ss:$8 sps:$4 sm:$0xff]   ;;  %v6250_v46 = vld [vmem:[%s7493_s11 + $0x344] ss:$8 sps:$4 sm:$0xff]  }
 0x176   : > { %4838 = vmatprep.subr.bf16.mxu0 %v6157_v47  ;;  %v6253_v47 = vld [vmem:[%s7493_s11 + $0x944] ss:$8 sps:$4 sm:$0xff]  }
 0x178   : > { %4581 = vmatpush1.bf16.msra.mxu1 %v6152_v48  ;;  %v6248_v48 = vld [vmem:[%s7493_s11 + $0x340] ss:$8 sps:$4 sm:$0xff]  }
 0x179   : > { %4839 = vmatpush1.bf16.msra.mxu0 %v6155_v49  ;;  %4582 = vmatprep.subr.bf16.mxu1 %v6160_v50  ;;  %v6251_v49 = vld [vmem:[%s7493_s11 + $0x940] ss:$8 sps:$4 sm:$0xff]   ;;  %v6256_v50 = vld [vmem:[%s7493_s11 + $0x354] ss:$8 sps:$4 sm:$0xff]  }
 0x17a   : > { %4840 = vmatprep.subr.bf16.mxu0 %v6163_v51  ;;  %v6259_v51 = vld [vmem:[%s7493_s11 + $0x954] ss:$8 sps:$4 sm:$0xff]  }
 0x17c   : > { %4583 = vmatpush1.bf16.msra.mxu1 %v6158_v52  ;;  %v6254_v52 = vld [vmem:[%s7493_s11 + $0x350] ss:$8 sps:$4 sm:$0xff]  }
 0x17d   : > { %4841 = vmatpush1.bf16.msra.mxu0 %v6161_v53  ;;  %4584 = vmatprep.subr.bf16.mxu1 %v6166_v54  ;;  %v6257_v53 = vld [vmem:[%s7493_s11 + $0x950] ss:$8 sps:$4 sm:$0xff]   ;;  %v6262_v54 = vld [vmem:[%s7493_s11 + $0x364] ss:$8 sps:$4 sm:$0xff]  }
 0x17e   : > { %4842 = vmatprep.subr.bf16.mxu0 %v6169_v55  ;;  %v6265_v55 = vld [vmem:[%s7493_s11 + $0x964] ss:$8 sps:$4 sm:$0xff]  }
 0x180   : > { %4585 = vmatpush1.bf16.msra.mxu1 %v6164_v56  ;;  %v6260_v56 = vld [vmem:[%s7493_s11 + $0x360] ss:$8 sps:$4 sm:$0xff]  }
 0x181   : > { %4843 = vmatpush1.bf16.msra.mxu0 %v6167_v57  ;;  %4586 = vmatprep.subr.bf16.mxu1 %v6172_v58  ;;  %v6263_v57 = vld [vmem:[%s7493_s11 + $0x960] ss:$8 sps:$4 sm:$0xff]   ;;  %v6268_v58 = vld [vmem:[%s7493_s11 + $0x374] ss:$8 sps:$4 sm:$0xff]  }
 0x182   : > { %4844 = vmatprep.subr.bf16.mxu0 %v6175_v59  ;;  %v6271_v59 = vld [vmem:[%s7493_s11 + $0x974] ss:$8 sps:$4 sm:$0xff]  }
 0x184   : > { %4587 = vmatpush1.bf16.msra.mxu1 %v6170_v60  ;;  %v6266_v60 = vld [vmem:[%s7493_s11 + $0x370] ss:$8 sps:$4 sm:$0xff]  }
 0x185   : > { %4845 = vmatpush1.bf16.msra.mxu0 %v6173_v61  ;;  %4588 = vmatprep.subr.bf16.mxu1 %v6178_v62  ;;  %v6269_v61 = vld [vmem:[%s7493_s11 + $0x970] ss:$8 sps:$4 sm:$0xff]   ;;  %v6274_v62 = vld [vmem:[%s7493_s11 + $0x384] ss:$8 sps:$4 sm:$0xff]  }
 0x186   : > { %4846 = vmatprep.subr.bf16.mxu0 %v6181_v63  ;;  %v6277_v63 = vld [vmem:[%s7493_s11 + $0x984] ss:$8 sps:$4 sm:$0xff]  }
 0x188   : > { %4589 = vmatpush1.bf16.msra.mxu1 %v6176_v0  ;;  %v6272_v0 = vld [vmem:[%s7493_s11 + $0x380] ss:$8 sps:$4 sm:$0xff]  }
 0x189   : > { %4847 = vmatpush1.bf16.msra.mxu0 %v6179_v1  ;;  %4590 = vmatprep.subr.bf16.mxu1 %v6184_v2  ;;  %v6275_v1 = vld [vmem:[%s7493_s11 + $0x980] ss:$8 sps:$4 sm:$0xff]   ;;  %v6280_v2 = vld [vmem:[%s7493_s11 + $0x394] ss:$8 sps:$4 sm:$0xff]  }
 0x18a   : > { %4848 = vmatprep.subr.bf16.mxu0 %v6187_v3  ;;  %v6283_v3 = vld [vmem:[%s7493_s11 + $0x994] ss:$8 sps:$4 sm:$0xff]  }
 0x18c   : > { %4591 = vmatpush1.bf16.msra.mxu1 %v6182_v4  ;;  %v6278_v4 = vld [vmem:[%s7493_s11 + $0x390] ss:$8 sps:$4 sm:$0xff]  }
 0x18d   : > { %4849 = vmatpush1.bf16.msra.mxu0 %v6185_v5  ;;  %4592 = vmatprep.subr.bf16.mxu1 %v6190_v6  ;;  %v6281_v5 = vld [vmem:[%s7493_s11 + $0x990] ss:$8 sps:$4 sm:$0xff]   ;;  %v6286_v6 = vld [vmem:[%s7493_s11 + $0x3a4] ss:$8 sps:$4 sm:$0xff]  }
 0x18e   : > { %4850 = vmatprep.subr.bf16.mxu0 %v6193_v7  ;;  %v6289_v7 = vld [vmem:[%s7493_s11 + $0x9a4] ss:$8 sps:$4 sm:$0xff]  }
 0x190   : > { %4593 = vmatpush1.bf16.msra.mxu1 %v6188_v8  ;;  %v6284_v8 = vld [vmem:[%s7493_s11 + $0x3a0] ss:$8 sps:$4 sm:$0xff]  }
 0x191   : > { %4851 = vmatpush1.bf16.msra.mxu0 %v6191_v9  ;;  %4594 = vmatprep.subr.bf16.mxu1 %v6196_v10  ;;  %v6287_v9 = vld [vmem:[%s7493_s11 + $0x9a0] ss:$8 sps:$4 sm:$0xff]   ;;  %v6292_v10 = vld [vmem:[%s7493_s11 + $0x3b4] ss:$8 sps:$4 sm:$0xff]  }
 0x192   : > { %4852 = vmatprep.subr.bf16.mxu0 %v6199_v11  ;;  %v6295_v11 = vld [vmem:[%s7493_s11 + $0x9b4] ss:$8 sps:$4 sm:$0xff]  }
 0x194   : > { %4595 = vmatpush1.bf16.msra.mxu1 %v6194_v12  ;;  %v6290_v12 = vld [vmem:[%s7493_s11 + $0x3b0] ss:$8 sps:$4 sm:$0xff]  }
 0x195   : > { %4853 = vmatpush1.bf16.msra.mxu0 %v6197_v13  ;;  %4596 = vmatprep.subr.bf16.mxu1 %v6202_v14  ;;  %v6293_v13 = vld [vmem:[%s7493_s11 + $0x9b0] ss:$8 sps:$4 sm:$0xff]   ;;  %v6298_v14 = vld [vmem:[%s7493_s11 + $0x3c4] ss:$8 sps:$4 sm:$0xff]  }
 0x196   : > { %4854 = vmatprep.subr.bf16.mxu0 %v6205_v15  ;;  %v6301_v15 = vld [vmem:[%s7493_s11 + $0x9c4] ss:$8 sps:$4 sm:$0xff]  }
 0x198   : > { %4597 = vmatpush1.bf16.msra.mxu1 %v6200_v16  ;;  %v6296_v16 = vld [vmem:[%s7493_s11 + $0x3c0] ss:$8 sps:$4 sm:$0xff]  }
 0x199   : > { %4855 = vmatpush1.bf16.msra.mxu0 %v6203_v17  ;;  %4598 = vmatprep.subr.bf16.mxu1 %v6208_v18  ;;  %v6299_v17 = vld [vmem:[%s7493_s11 + $0x9c0] ss:$8 sps:$4 sm:$0xff]   ;;  %v6304_v18 = vld [vmem:[%s7493_s11 + $0x3d4] ss:$8 sps:$4 sm:$0xff]  }
 0x19a   : > { %4856 = vmatprep.subr.bf16.mxu0 %v6211_v19  ;;  %v6307_v19 = vld [vmem:[%s7493_s11 + $0x9d4] ss:$8 sps:$4 sm:$0xff]  }
 0x19c   : > { %4599 = vmatpush1.bf16.msra.mxu1 %v6206_v20  ;;  %v6302_v20 = vld [vmem:[%s7493_s11 + $0x3d0] ss:$8 sps:$4 sm:$0xff]  }
 0x19d   : > { %4857 = vmatpush1.bf16.msra.mxu0 %v6209_v21  ;;  %4600 = vmatprep.subr.bf16.mxu1 %v6214_v22  ;;  %v6305_v21 = vld [vmem:[%s7493_s11 + $0x9d0] ss:$8 sps:$4 sm:$0xff]   ;;  %v6310_v22 = vld [vmem:[%s7493_s11 + $0x3e4] ss:$8 sps:$4 sm:$0xff]  }
 0x19e   : > { %4858 = vmatprep.subr.bf16.mxu0 %v6217_v23  ;;  %v6313_v23 = vld [vmem:[%s7493_s11 + $0x9e4] ss:$8 sps:$4 sm:$0xff]  }
 0x1a0   : > { %4601 = vmatpush1.bf16.msra.mxu1 %v6212_v24  ;;  %v6308_v24 = vld [vmem:[%s7493_s11 + $0x3e0] ss:$8 sps:$4 sm:$0xff]  }
 0x1a1   : > { %4859 = vmatpush1.bf16.msra.mxu0 %v6215_v25  ;;  %4613 = vmatprep.subr.bf16.mxu1 %v6223_v26  ;;  %v6311_v25 = vld [vmem:[%s7493_s11 + $0x9e0] ss:$8 sps:$4 sm:$0xff]   ;;  %v6316_v26 = vld [vmem:[%s7493_s11 + $0x3f4] ss:$8 sps:$4 sm:$0xff]  }
 0x1a2   : > { %4871 = vmatprep.subr.bf16.mxu0 %v6229_v27  ;;  %v6319_v27 = vld [vmem:[%s7493_s11 + $0x9f4] ss:$8 sps:$4 sm:$0xff]  }
 0x1a3   : > { %4603 = vmatmul.mubr.bf16.vlgmr.msra.gmra.mrb[0].mxu1 %v6218_v28  ;;  %v6314_v28 = vld [vmem:[%s7493_s11 + $0x3f0] ss:$8 sps:$4 sm:$0xff]  }
 0x1a4   : > { %4861 = vmatmul.mubr.bf16.vlgmr.msra.gmra.mrb[0].mxu0 %v6224_v30  ;;  %4614 = vmatpush1.bf16.msra.mxu1 %v6221_v29  ;;  %v6317_v29 = vld [vmem:[%s7493_s11 + $0x9f0] ss:$8 sps:$4 sm:$0xff]   ;;  %v6325_v30 = vld [vmem:[%s7493_s11 + $0x404] ss:$8 sps:$4 sm:$0xff]  }
 0x1a5   : > { %4872 = vmatpush1.bf16.msra.mxu0 %v6227_v31  ;;  %4615 = vmatprep.subr.bf16.mxu1 %v6232_v32  ;;  %v6331_v31 = vld [vmem:[%s7493_s11 + $0xa04] ss:$8 sps:$4 sm:$0xff]   ;;  %v6320_v32 = vld [vmem:[%s7992_s0 + $0x18] ss:$100 sps:$4 sm:$0xff]  }
 0x1a6   : > { %4873 = vmatprep.subr.bf16.mxu0 %v6235_v33  ;;  %4645 = vmatprep.mubr.bf16.mxu1 %v6322_v34  ;;  %v6323_v33 = vld [vmem:[%s7493_s11 + $0x400] ss:$8 sps:$4 sm:$0xff]  }
 0x1a7   : > { %4903 = vmatprep.mubr.bf16.mxu0 %v6328_v35  ;;  %v6326_v34 = vld [vmem:[%s7992_s0 + $0x48] ss:$100 sps:$4 sm:$0xff]  }
 0x1a8   : > { %4616 = vmatpush1.bf16.msra.mxu1 %v6230_v36  ;;  %v6329_v35 = vld [vmem:[%s7493_s11 + $0xa00] ss:$8 sps:$4 sm:$0xff]   ;;  %v6334_v36 = vld [vmem:[%s7493_s11 + $0x414] ss:$8 sps:$4 sm:$0xff]  }
 0x1a9   : > { %4874 = vmatpush1.bf16.msra.mxu0 %v6233_v37  ;;  %4617 = vmatprep.subr.bf16.mxu1 %v6238_v38  ;;  %v6337_v37 = vld [vmem:[%s7493_s11 + $0xa14] ss:$8 sps:$4 sm:$0xff]   ;;  %v6424_v38 = vld [vmem:[%s7992_s0 + $0x24] ss:$100 sps:$4 sm:$0xff]  }
 0x1aa   : > { %4875 = vmatprep.subr.bf16.mxu0 %v6241_v39  ;;  %v6430_v39 = vld [vmem:[%s7992_s0 + $0x54] ss:$100 sps:$4 sm:$0xff]  }
 0x1ac   : > { %4618 = vmatpush1.bf16.msra.mxu1 %v6236_v40  ;;  %v6332_v40 = vld [vmem:[%s7493_s11 + $0x410] ss:$8 sps:$4 sm:$0xff]  }
 0x1ad   : > { %4876 = vmatpush1.bf16.msra.mxu0 %v6239_v41  ;;  %4619 = vmatprep.subr.bf16.mxu1 %v6244_v42  ;;  %v6335_v41 = vld [vmem:[%s7493_s11 + $0xa10] ss:$8 sps:$4 sm:$0xff]   ;;  %v6340_v42 = vld [vmem:[%s7493_s11 + $0x424] ss:$8 sps:$4 sm:$0xff]  }
 0x1ae   : > { %4877 = vmatprep.subr.bf16.mxu0 %v6247_v43  ;;  %v6343_v43 = vld [vmem:[%s7493_s11 + $0xa24] ss:$8 sps:$4 sm:$0xff]  }
 0x1b0   : > { %4620 = vmatpush1.bf16.msra.mxu1 %v6242_v44  ;;  %v6338_v44 = vld [vmem:[%s7493_s11 + $0x420] ss:$8 sps:$4 sm:$0xff]  }
 0x1b1   : > { %4878 = vmatpush1.bf16.msra.mxu0 %v6245_v45  ;;  %4621 = vmatprep.subr.bf16.mxu1 %v6250_v46  ;;  %v6341_v45 = vld [vmem:[%s7493_s11 + $0xa20] ss:$8 sps:$4 sm:$0xff]   ;;  %v6346_v46 = vld [vmem:[%s7493_s11 + $0x434] ss:$8 sps:$4 sm:$0xff]  }
 0x1b2   : > { %4879 = vmatprep.subr.bf16.mxu0 %v6253_v47  ;;  %v6349_v47 = vld [vmem:[%s7493_s11 + $0xa34] ss:$8 sps:$4 sm:$0xff]  }
 0x1b4   : > { %4622 = vmatpush1.bf16.msra.mxu1 %v6248_v48  ;;  %v6344_v48 = vld [vmem:[%s7493_s11 + $0x430] ss:$8 sps:$4 sm:$0xff]  }
 0x1b5   : > { %4880 = vmatpush1.bf16.msra.mxu0 %v6251_v49  ;;  %4623 = vmatprep.subr.bf16.mxu1 %v6256_v50  ;;  %v6347_v49 = vld [vmem:[%s7493_s11 + $0xa30] ss:$8 sps:$4 sm:$0xff]   ;;  %v6352_v50 = vld [vmem:[%s7493_s11 + $0x444] ss:$8 sps:$4 sm:$0xff]  }
 0x1b6   : > { %4881 = vmatprep.subr.bf16.mxu0 %v6259_v51  ;;  %v6355_v51 = vld [vmem:[%s7493_s11 + $0xa44] ss:$8 sps:$4 sm:$0xff]  }
 0x1b8   : > { %4624 = vmatpush1.bf16.msra.mxu1 %v6254_v52  ;;  %v6350_v52 = vld [vmem:[%s7493_s11 + $0x440] ss:$8 sps:$4 sm:$0xff]  }
 0x1b9   : > { %4882 = vmatpush1.bf16.msra.mxu0 %v6257_v53  ;;  %4625 = vmatprep.subr.bf16.mxu1 %v6262_v54  ;;  %v6353_v53 = vld [vmem:[%s7493_s11 + $0xa40] ss:$8 sps:$4 sm:$0xff]   ;;  %v6358_v54 = vld [vmem:[%s7493_s11 + $0x454] ss:$8 sps:$4 sm:$0xff]  }
 0x1ba   : > { %4883 = vmatprep.subr.bf16.mxu0 %v6265_v55  ;;  %v6361_v55 = vld [vmem:[%s7493_s11 + $0xa54] ss:$8 sps:$4 sm:$0xff]  }
 0x1bc   : > { %4626 = vmatpush1.bf16.msra.mxu1 %v6260_v56  ;;  %v6356_v56 = vld [vmem:[%s7493_s11 + $0x450] ss:$8 sps:$4 sm:$0xff]  }
 0x1bd   : > { %4884 = vmatpush1.bf16.msra.mxu0 %v6263_v57  ;;  %4627 = vmatprep.subr.bf16.mxu1 %v6268_v58  ;;  %v6359_v57 = vld [vmem:[%s7493_s11 + $0xa50] ss:$8 sps:$4 sm:$0xff]   ;;  %v6364_v58 = vld [vmem:[%s7493_s11 + $0x464] ss:$8 sps:$4 sm:$0xff]  }
 0x1be   : > { %4885 = vmatprep.subr.bf16.mxu0 %v6271_v59  ;;  %v6367_v59 = vld [vmem:[%s7493_s11 + $0xa64] ss:$8 sps:$4 sm:$0xff]  }
 0x1c0   : > { %4628 = vmatpush1.bf16.msra.mxu1 %v6266_v60  ;;  %v6362_v60 = vld [vmem:[%s7493_s11 + $0x460] ss:$8 sps:$4 sm:$0xff]  }
 0x1c1   : > { %4886 = vmatpush1.bf16.msra.mxu0 %v6269_v61  ;;  %4629 = vmatprep.subr.bf16.mxu1 %v6274_v62  ;;  %v6365_v61 = vld [vmem:[%s7493_s11 + $0xa60] ss:$8 sps:$4 sm:$0xff]   ;;  %v6370_v62 = vld [vmem:[%s7493_s11 + $0x474] ss:$8 sps:$4 sm:$0xff]  }
 0x1c2   : > { %4887 = vmatprep.subr.bf16.mxu0 %v6277_v63  ;;  %v6373_v63 = vld [vmem:[%s7493_s11 + $0xa74] ss:$8 sps:$4 sm:$0xff]  }
 0x1c4   : > { %4630 = vmatpush1.bf16.msra.mxu1 %v6272_v0  ;;  %v6368_v0 = vld [vmem:[%s7493_s11 + $0x470] ss:$8 sps:$4 sm:$0xff]  }
 0x1c5   : > { %4888 = vmatpush1.bf16.msra.mxu0 %v6275_v1  ;;  %4631 = vmatprep.subr.bf16.mxu1 %v6280_v2  ;;  %v6371_v1 = vld [vmem:[%s7493_s11 + $0xa70] ss:$8 sps:$4 sm:$0xff]   ;;  %v6376_v2 = vld [vmem:[%s7493_s11 + $0x484] ss:$8 sps:$4 sm:$0xff]  }
 0x1c6   : > { %4889 = vmatprep.subr.bf16.mxu0 %v6283_v3  ;;  %v6379_v3 = vld [vmem:[%s7493_s11 + $0xa84] ss:$8 sps:$4 sm:$0xff]  }
 0x1c8   : > { %4632 = vmatpush1.bf16.msra.mxu1 %v6278_v4  ;;  %v6374_v4 = vld [vmem:[%s7493_s11 + $0x480] ss:$8 sps:$4 sm:$0xff]  }
 0x1c9   : > { %4890 = vmatpush1.bf16.msra.mxu0 %v6281_v5  ;;  %4633 = vmatprep.subr.bf16.mxu1 %v6286_v6  ;;  %v6377_v5 = vld [vmem:[%s7493_s11 + $0xa80] ss:$8 sps:$4 sm:$0xff]   ;;  %v6382_v6 = vld [vmem:[%s7493_s11 + $0x494] ss:$8 sps:$4 sm:$0xff]  }
 0x1ca   : > { %4891 = vmatprep.subr.bf16.mxu0 %v6289_v7  ;;  %v6385_v7 = vld [vmem:[%s7493_s11 + $0xa94] ss:$8 sps:$4 sm:$0xff]  }
 0x1cc   : > { %4634 = vmatpush1.bf16.msra.mxu1 %v6284_v8  ;;  %v6380_v8 = vld [vmem:[%s7493_s11 + $0x490] ss:$8 sps:$4 sm:$0xff]  }
 0x1cd   : > { %4892 = vmatpush1.bf16.msra.mxu0 %v6287_v9  ;;  %4635 = vmatprep.subr.bf16.mxu1 %v6292_v10  ;;  %v6383_v9 = vld [vmem:[%s7493_s11 + $0xa90] ss:$8 sps:$4 sm:$0xff]   ;;  %v6388_v10 = vld [vmem:[%s7493_s11 + $0x4a4] ss:$8 sps:$4 sm:$0xff]  }
 0x1ce   : > { %4893 = vmatprep.subr.bf16.mxu0 %v6295_v11  ;;  %v6391_v11 = vld [vmem:[%s7493_s11 + $0xaa4] ss:$8 sps:$4 sm:$0xff]  }
 0x1d0   : > { %4636 = vmatpush1.bf16.msra.mxu1 %v6290_v12  ;;  %v6386_v12 = vld [vmem:[%s7493_s11 + $0x4a0] ss:$8 sps:$4 sm:$0xff]  }
 0x1d1   : > { %4894 = vmatpush1.bf16.msra.mxu0 %v6293_v13  ;;  %4637 = vmatprep.subr.bf16.mxu1 %v6298_v14  ;;  %v6389_v13 = vld [vmem:[%s7493_s11 + $0xaa0] ss:$8 sps:$4 sm:$0xff]   ;;  %v6394_v14 = vld [vmem:[%s7493_s11 + $0x4b4] ss:$8 sps:$4 sm:$0xff]  }
 0x1d2   : > { %4895 = vmatprep.subr.bf16.mxu0 %v6301_v15  ;;  %v6397_v15 = vld [vmem:[%s7493_s11 + $0xab4] ss:$8 sps:$4 sm:$0xff]  }
 0x1d4   : > { %4638 = vmatpush1.bf16.msra.mxu1 %v6296_v16  ;;  %v6392_v16 = vld [vmem:[%s7493_s11 + $0x4b0] ss:$8 sps:$4 sm:$0xff]  }
 0x1d5   : > { %4896 = vmatpush1.bf16.msra.mxu0 %v6299_v17  ;;  %4639 = vmatprep.subr.bf16.mxu1 %v6304_v18  ;;  %v6395_v17 = vld [vmem:[%s7493_s11 + $0xab0] ss:$8 sps:$4 sm:$0xff]   ;;  %v6400_v18 = vld [vmem:[%s7493_s11 + $0x4c4] ss:$8 sps:$4 sm:$0xff]  }
 0x1d6   : > { %4897 = vmatprep.subr.bf16.mxu0 %v6307_v19  ;;  %v6403_v19 = vld [vmem:[%s7493_s11 + $0xac4] ss:$8 sps:$4 sm:$0xff]  }
 0x1d8   : > { %4640 = vmatpush1.bf16.msra.mxu1 %v6302_v20  ;;  %v6398_v20 = vld [vmem:[%s7493_s11 + $0x4c0] ss:$8 sps:$4 sm:$0xff]  }
 0x1d9   : > { %4898 = vmatpush1.bf16.msra.mxu0 %v6305_v21  ;;  %4641 = vmatprep.subr.bf16.mxu1 %v6310_v22  ;;  %v6401_v21 = vld [vmem:[%s7493_s11 + $0xac0] ss:$8 sps:$4 sm:$0xff]   ;;  %v6406_v22 = vld [vmem:[%s7493_s11 + $0x4d4] ss:$8 sps:$4 sm:$0xff]  }
 0x1da   : > { %4899 = vmatprep.subr.bf16.mxu0 %v6313_v23  ;;  %v6409_v23 = vld [vmem:[%s7493_s11 + $0xad4] ss:$8 sps:$4 sm:$0xff]  }
 0x1dc   : > { %4642 = vmatpush1.bf16.msra.mxu1 %v6308_v24  ;;  %v6404_v24 = vld [vmem:[%s7493_s11 + $0x4d0] ss:$8 sps:$4 sm:$0xff]  }
 0x1dd   : > { %4900 = vmatpush1.bf16.msra.mxu0 %v6311_v25  ;;  %4643 = vmatprep.subr.bf16.mxu1 %v6316_v26  ;;  %v6407_v25 = vld [vmem:[%s7493_s11 + $0xad0] ss:$8 sps:$4 sm:$0xff]   ;;  %v6412_v26 = vld [vmem:[%s7493_s11 + $0x4e4] ss:$8 sps:$4 sm:$0xff]  }
 0x1de   : > { %4901 = vmatprep.subr.bf16.mxu0 %v6319_v27  ;;  %v6415_v27 = vld [vmem:[%s7493_s11 + $0xae4] ss:$8 sps:$4 sm:$0xff]  }
 0x1e0   : > { %4644 = vmatpush1.bf16.msra.mxu1 %v6314_v28  ;;  %v6410_v28 = vld [vmem:[%s7493_s11 + $0x4e0] ss:$8 sps:$4 sm:$0xff]  }
 0x1e1   : > { %4902 = vmatpush1.bf16.msra.mxu0 %v6317_v29  ;;  %4656 = vmatprep.subr.bf16.mxu1 %v6325_v30  ;;  %v6413_v29 = vld [vmem:[%s7493_s11 + $0xae0] ss:$8 sps:$4 sm:$0xff]   ;;  %v6418_v30 = vld [vmem:[%s7493_s11 + $0x4f4] ss:$8 sps:$4 sm:$0xff]  }
 0x1e2   : > { %4914 = vmatprep.subr.bf16.mxu0 %v6331_v31  ;;  %v6421_v31 = vld [vmem:[%s7493_s11 + $0xaf4] ss:$8 sps:$4 sm:$0xff]  }
 0x1e3   : > { %4646 = vmatmul.mubr.bf16.vlgmr.msra.gmra.mrb[0].mxu1 %v6320_v32  ;;  %v6416_v32 = vld [vmem:[%s7493_s11 + $0x4f0] ss:$8 sps:$4 sm:$0xff]  }
 0x1e4   : > { %4904 = vmatmul.mubr.bf16.vlgmr.msra.gmra.mrb[0].mxu0 %v6326_v34  ;;  %4657 = vmatpush1.bf16.msra.mxu1 %v6323_v33  ;;  %v6419_v33 = vld [vmem:[%s7493_s11 + $0xaf0] ss:$8 sps:$4 sm:$0xff]   ;;  %v6427_v34 = vld [vmem:[%s7493_s11 + $0x504] ss:$8 sps:$4 sm:$0xff]  }
 0x1e5   : > { %4915 = vmatpush1.bf16.msra.mxu0 %v6329_v35  ;;  %4658 = vmatprep.subr.bf16.mxu1 %v6334_v36  ;;  %v6433_v35 = vld [vmem:[%s7493_s11 + $0xb04] ss:$8 sps:$4 sm:$0xff]  }
 0x1e6   : > { %4916 = vmatprep.subr.bf16.mxu0 %v6337_v37  ;;  %4688 = vmatprep.mubr.bf16.mxu1 %v6424_v38  ;;  %v6422_v36 = vld [vmem:[%s7992_s0 + $0x20] ss:$100 sps:$4 sm:$0xff]   ;;  %v6428_v37 = vld [vmem:[%s7992_s0 + $0x50] ss:$100 sps:$4 sm:$0xff]  }
 0x1e7   : > { %4946 = vmatprep.mubr.bf16.mxu0 %v6430_v39  ;;  %v6425_v38 = vld [vmem:[%s7493_s11 + $0x500] ss:$8 sps:$4 sm:$0xff]  }
 0x1e8   : > { %4659 = vmatpush1.bf16.msra.mxu1 %v6332_v40  ;;  %v6431_v39 = vld [vmem:[%s7493_s11 + $0xb00] ss:$8 sps:$4 sm:$0xff]   ;;  %v6436_v40 = vld [vmem:[%s7493_s11 + $0x514] ss:$8 sps:$4 sm:$0xff]  }
 0x1e9   : > { %4917 = vmatpush1.bf16.msra.mxu0 %v6335_v41  ;;  %4660 = vmatprep.subr.bf16.mxu1 %v6340_v42  ;;  %v6439_v41 = vld [vmem:[%s7493_s11 + $0xb14] ss:$8 sps:$4 sm:$0xff]   ;;  %v6526_v42 = vld [vmem:[%s7992_s0 + $0x2c] ss:$100 sps:$4 sm:$0xff]  }
 0x1ea   : > { %4918 = vmatprep.subr.bf16.mxu0 %v6343_v43  ;;  %v6529_v43 = vld [vmem:[%s7992_s0 + $0x5c] ss:$100 sps:$4 sm:$0xff]  }
 0x1ec   : > { %4661 = vmatpush1.bf16.msra.mxu1 %v6338_v44  ;;  %v6434_v44 = vld [vmem:[%s7493_s11 + $0x510] ss:$8 sps:$4 sm:$0xff]  }
 0x1ed   : > { %4919 = vmatpush1.bf16.msra.mxu0 %v6341_v45  ;;  %4662 = vmatprep.subr.bf16.mxu1 %v6346_v46  ;;  %v6437_v45 = vld [vmem:[%s7493_s11 + $0xb10] ss:$8 sps:$4 sm:$0xff]   ;;  %v6442_v46 = vld [vmem:[%s7493_s11 + $0x524] ss:$8 sps:$4 sm:$0xff]  }
 0x1ee   : > { %4920 = vmatprep.subr.bf16.mxu0 %v6349_v47  ;;  %v6445_v47 = vld [vmem:[%s7493_s11 + $0xb24] ss:$8 sps:$4 sm:$0xff]  }
 0x1f0   : > { %4663 = vmatpush1.bf16.msra.mxu1 %v6344_v48  ;;  %v6440_v48 = vld [vmem:[%s7493_s11 + $0x520] ss:$8 sps:$4 sm:$0xff]  }
 0x1f1   : > { %4921 = vmatpush1.bf16.msra.mxu0 %v6347_v49  ;;  %4664 = vmatprep.subr.bf16.mxu1 %v6352_v50  ;;  %v6443_v49 = vld [vmem:[%s7493_s11 + $0xb20] ss:$8 sps:$4 sm:$0xff]   ;;  %v6448_v50 = vld [vmem:[%s7493_s11 + $0x534] ss:$8 sps:$4 sm:$0xff]  }
 0x1f2   : > { %4922 = vmatprep.subr.bf16.mxu0 %v6355_v51  ;;  %v6451_v51 = vld [vmem:[%s7493_s11 + $0xb34] ss:$8 sps:$4 sm:$0xff]  }
 0x1f4   : > { %4665 = vmatpush1.bf16.msra.mxu1 %v6350_v52  ;;  %v6446_v52 = vld [vmem:[%s7493_s11 + $0x530] ss:$8 sps:$4 sm:$0xff]  }
 0x1f5   : > { %4923 = vmatpush1.bf16.msra.mxu0 %v6353_v53  ;;  %4666 = vmatprep.subr.bf16.mxu1 %v6358_v54  ;;  %v6449_v53 = vld [vmem:[%s7493_s11 + $0xb30] ss:$8 sps:$4 sm:$0xff]   ;;  %v6454_v54 = vld [vmem:[%s7493_s11 + $0x544] ss:$8 sps:$4 sm:$0xff]  }
 0x1f6   : > { %4924 = vmatprep.subr.bf16.mxu0 %v6361_v55  ;;  %v6457_v55 = vld [vmem:[%s7493_s11 + $0xb44] ss:$8 sps:$4 sm:$0xff]  }
 0x1f8   : > { %4667 = vmatpush1.bf16.msra.mxu1 %v6356_v56  ;;  %v6452_v56 = vld [vmem:[%s7493_s11 + $0x540] ss:$8 sps:$4 sm:$0xff]  }
 0x1f9   : > { %4925 = vmatpush1.bf16.msra.mxu0 %v6359_v57  ;;  %4668 = vmatprep.subr.bf16.mxu1 %v6364_v58  ;;  %v6455_v57 = vld [vmem:[%s7493_s11 + $0xb40] ss:$8 sps:$4 sm:$0xff]   ;;  %v6460_v58 = vld [vmem:[%s7493_s11 + $0x554] ss:$8 sps:$4 sm:$0xff]  }
 0x1fa   : > { %4926 = vmatprep.subr.bf16.mxu0 %v6367_v59  ;;  %v6463_v59 = vld [vmem:[%s7493_s11 + $0xb54] ss:$8 sps:$4 sm:$0xff]  }
 0x1fc   : > { %4669 = vmatpush1.bf16.msra.mxu1 %v6362_v60  ;;  %v6458_v60 = vld [vmem:[%s7493_s11 + $0x550] ss:$8 sps:$4 sm:$0xff]  }
 0x1fd   : > { %4927 = vmatpush1.bf16.msra.mxu0 %v6365_v61  ;;  %4670 = vmatprep.subr.bf16.mxu1 %v6370_v62  ;;  %v6461_v61 = vld [vmem:[%s7493_s11 + $0xb50] ss:$8 sps:$4 sm:$0xff]   ;;  %v6466_v62 = vld [vmem:[%s7493_s11 + $0x564] ss:$8 sps:$4 sm:$0xff]  }
 0x1fe   : > { %4928 = vmatprep.subr.bf16.mxu0 %v6373_v63  ;;  %v6469_v63 = vld [vmem:[%s7493_s11 + $0xb64] ss:$8 sps:$4 sm:$0xff]  }
 0x200   : > { %4671 = vmatpush1.bf16.msra.mxu1 %v6368_v0  ;;  %v6464_v0 = vld [vmem:[%s7493_s11 + $0x560] ss:$8 sps:$4 sm:$0xff]  }
 0x201   : > { %4929 = vmatpush1.bf16.msra.mxu0 %v6371_v1  ;;  %4672 = vmatprep.subr.bf16.mxu1 %v6376_v2  ;;  %v6467_v1 = vld [vmem:[%s7493_s11 + $0xb60] ss:$8 sps:$4 sm:$0xff]   ;;  %v6472_v2 = vld [vmem:[%s7493_s11 + $0x574] ss:$8 sps:$4 sm:$0xff]  }
 0x202   : > { %4930 = vmatprep.subr.bf16.mxu0 %v6379_v3  ;;  %v6475_v3 = vld [vmem:[%s7493_s11 + $0xb74] ss:$8 sps:$4 sm:$0xff]  }
 0x204   : > { %4673 = vmatpush1.bf16.msra.mxu1 %v6374_v4  ;;  %v6470_v4 = vld [vmem:[%s7493_s11 + $0x570] ss:$8 sps:$4 sm:$0xff]  }
 0x205   : > { %4931 = vmatpush1.bf16.msra.mxu0 %v6377_v5  ;;  %4674 = vmatprep.subr.bf16.mxu1 %v6382_v6  ;;  %v6473_v5 = vld [vmem:[%s7493_s11 + $0xb70] ss:$8 sps:$4 sm:$0xff]   ;;  %v6478_v6 = vld [vmem:[%s7493_s11 + $0x584] ss:$8 sps:$4 sm:$0xff]  }
 0x206   : > { %4932 = vmatprep.subr.bf16.mxu0 %v6385_v7  ;;  %v6481_v7 = vld [vmem:[%s7493_s11 + $0xb84] ss:$8 sps:$4 sm:$0xff]  }
 0x208   : > { %4675 = vmatpush1.bf16.msra.mxu1 %v6380_v8  ;;  %v6476_v8 = vld [vmem:[%s7493_s11 + $0x580] ss:$8 sps:$4 sm:$0xff]  }
 0x209   : > { %4933 = vmatpush1.bf16.msra.mxu0 %v6383_v9  ;;  %4676 = vmatprep.subr.bf16.mxu1 %v6388_v10  ;;  %v6479_v9 = vld [vmem:[%s7493_s11 + $0xb80] ss:$8 sps:$4 sm:$0xff]   ;;  %v6484_v10 = vld [vmem:[%s7493_s11 + $0x594] ss:$8 sps:$4 sm:$0xff]  }
 0x20a   : > { %4934 = vmatprep.subr.bf16.mxu0 %v6391_v11  ;;  %v6487_v11 = vld [vmem:[%s7493_s11 + $0xb94] ss:$8 sps:$4 sm:$0xff]  }
 0x20c   : > { %4677 = vmatpush1.bf16.msra.mxu1 %v6386_v12  ;;  %v6482_v12 = vld [vmem:[%s7493_s11 + $0x590] ss:$8 sps:$4 sm:$0xff]  }
 0x20d   : > { %4935 = vmatpush1.bf16.msra.mxu0 %v6389_v13  ;;  %4678 = vmatprep.subr.bf16.mxu1 %v6394_v14  ;;  %v6485_v13 = vld [vmem:[%s7493_s11 + $0xb90] ss:$8 sps:$4 sm:$0xff]   ;;  %v6490_v14 = vld [vmem:[%s7493_s11 + $0x5a4] ss:$8 sps:$4 sm:$0xff]  }
 0x20e   : > { %4936 = vmatprep.subr.bf16.mxu0 %v6397_v15  ;;  %v6493_v15 = vld [vmem:[%s7493_s11 + $0xba4] ss:$8 sps:$4 sm:$0xff]  }
 0x210   : > { %4679 = vmatpush1.bf16.msra.mxu1 %v6392_v16  ;;  %v6488_v16 = vld [vmem:[%s7493_s11 + $0x5a0] ss:$8 sps:$4 sm:$0xff]  }
 0x211   : > { %4937 = vmatpush1.bf16.msra.mxu0 %v6395_v17  ;;  %4680 = vmatprep.subr.bf16.mxu1 %v6400_v18  ;;  %v6491_v17 = vld [vmem:[%s7493_s11 + $0xba0] ss:$8 sps:$4 sm:$0xff]   ;;  %v6496_v18 = vld [vmem:[%s7493_s11 + $0x5b4] ss:$8 sps:$4 sm:$0xff]  }
 0x212   : > { %4938 = vmatprep.subr.bf16.mxu0 %v6403_v19  ;;  %v6499_v19 = vld [vmem:[%s7493_s11 + $0xbb4] ss:$8 sps:$4 sm:$0xff]  }
 0x214   : > { %4681 = vmatpush1.bf16.msra.mxu1 %v6398_v20  ;;  %v6494_v20 = vld [vmem:[%s7493_s11 + $0x5b0] ss:$8 sps:$4 sm:$0xff]  }
 0x215   : > { %4939 = vmatpush1.bf16.msra.mxu0 %v6401_v21  ;;  %4682 = vmatprep.subr.bf16.mxu1 %v6406_v22  ;;  %v6497_v21 = vld [vmem:[%s7493_s11 + $0xbb0] ss:$8 sps:$4 sm:$0xff]   ;;  %v6502_v22 = vld [vmem:[%s7493_s11 + $0x5c4] ss:$8 sps:$4 sm:$0xff]  }
 0x216   : > { %4940 = vmatprep.subr.bf16.mxu0 %v6409_v23  ;;  %v6505_v23 = vld [vmem:[%s7493_s11 + $0xbc4] ss:$8 sps:$4 sm:$0xff]  }
 0x218   : > { %4683 = vmatpush1.bf16.msra.mxu1 %v6404_v24  ;;  %v6500_v24 = vld [vmem:[%s7493_s11 + $0x5c0] ss:$8 sps:$4 sm:$0xff]  }
 0x219   : > { %4941 = vmatpush1.bf16.msra.mxu0 %v6407_v25  ;;  %4684 = vmatprep.subr.bf16.mxu1 %v6412_v26  ;;  %v6503_v25 = vld [vmem:[%s7493_s11 + $0xbc0] ss:$8 sps:$4 sm:$0xff]   ;;  %v6508_v26 = vld [vmem:[%s7493_s11 + $0x5d4] ss:$8 sps:$4 sm:$0xff]  }
 0x21a   : > { %4942 = vmatprep.subr.bf16.mxu0 %v6415_v27  ;;  %v6511_v27 = vld [vmem:[%s7493_s11 + $0xbd4] ss:$8 sps:$4 sm:$0xff]  }
 0x21c   : > { %4685 = vmatpush1.bf16.msra.mxu1 %v6410_v28  ;;  %v6506_v28 = vld [vmem:[%s7493_s11 + $0x5d0] ss:$8 sps:$4 sm:$0xff]  }
 0x21d   : > { %4943 = vmatpush1.bf16.msra.mxu0 %v6413_v29  ;;  %4686 = vmatprep.subr.bf16.mxu1 %v6418_v30  ;;  %v6509_v29 = vld [vmem:[%s7493_s11 + $0xbd0] ss:$8 sps:$4 sm:$0xff]   ;;  %v6514_v30 = vld [vmem:[%s7493_s11 + $0x5e4] ss:$8 sps:$4 sm:$0xff]  }
 0x21e   : > { %4944 = vmatprep.subr.bf16.mxu0 %v6421_v31  ;;  %v6517_v31 = vld [vmem:[%s7493_s11 + $0xbe4] ss:$8 sps:$4 sm:$0xff]  }
 0x220   : > { %4687 = vmatpush1.bf16.msra.mxu1 %v6416_v32  ;;  %v6512_v32 = vld [vmem:[%s7493_s11 + $0x5e0] ss:$8 sps:$4 sm:$0xff]  }
 0x221   : > { %4945 = vmatpush1.bf16.msra.mxu0 %v6419_v33  ;;  %4699 = vmatprep.subr.bf16.mxu1 %v6427_v34  ;;  %v6515_v33 = vld [vmem:[%s7493_s11 + $0xbe0] ss:$8 sps:$4 sm:$0xff]   ;;  %v6520_v34 = vld [vmem:[%s7493_s11 + $0x5f4] ss:$8 sps:$4 sm:$0xff]  }
 0x222   : > { %4957 = vmatprep.subr.bf16.mxu0 %v6433_v35  ;;  %v6523_v35 = vld [vmem:[%s7493_s11 + $0xbf4] ss:$8 sps:$4 sm:$0xff]  }
 0x223   : > { %4689 = vmatmul.mubr.bf16.vlgmr.msra.gmra.mrb[0].mxu1 %v6422_v36  ;;  %v6518_v36 = vld [vmem:[%s7493_s11 + $0x5f0] ss:$8 sps:$4 sm:$0xff]  }
 0x224   : > { %4947 = vmatmul.mubr.bf16.vlgmr.msra.gmra.mrb[0].mxu0 %v6428_v37  ;;  %4700 = vmatpush1.bf16.msra.mxu1 %v6425_v38  ;;  %v6521_v37 = vld [vmem:[%s7493_s11 + $0xbf0] ss:$8 sps:$4 sm:$0xff]   ;;  %v6532_v38 = vld [vmem:[%s7493_s11 + $0xc04] ss:$8 sps:$4 sm:$0xff]  }
 0x225   : > { %4958 = vmatpush1.bf16.msra.mxu0 %v6431_v39  ;;  %4701 = vmatprep.subr.bf16.mxu1 %v6436_v40  ;;  %v6524_v39 = vld [vmem:[%s7992_s0 + $0x28] ss:$100 sps:$4 sm:$0xff]   ;;  %v6527_v40 = vld [vmem:[%s7992_s0 + $0x58] ss:$100 sps:$4 sm:$0xff]  }
 0x226   : > { %4959 = vmatprep.subr.bf16.mxu0 %v6439_v41  ;;  %4731 = vmatprep.mubr.bf16.mxu1 %v6526_v42  ;;  %v6530_v41 = vld [vmem:[%s7493_s11 + $0xc00] ss:$8 sps:$4 sm:$0xff]   ;;  %v6535_v42 = vld [vmem:[%s7493_s11 + $0xc14] ss:$8 sps:$4 sm:$0xff]  }
 0x227   : > { %4989 = vmatprep.mubr.bf16.mxu0 %v6529_v43  ;;  %v6533_v43 = vld [vmem:[%s7493_s11 + $0xc10] ss:$8 sps:$4 sm:$0xff]  }
 0x228   : > { %4702 = vmatpush1.bf16.msra.mxu1 %v6434_v44  ;;  %v6611_v44 = vmov 0  }
 0x229   : > { %4960 = vmatpush1.bf16.msra.mxu0 %v6437_v45  ;;  %4703 = vmatprep.subr.bf16.mxu1 %v6442_v46  ;;  %v6538_v45 = vld [vmem:[%s7493_s11 + $0xc24] ss:$8 sps:$4 sm:$0xff]   ;;  %v6536_v46 = vld [vmem:[%s7493_s11 + $0xc20] ss:$8 sps:$4 sm:$0xff]  }
 0x22a   : > { %4961 = vmatprep.subr.bf16.mxu0 %v6445_v47  ;;  %v6541_v47 = vld [vmem:[%s7493_s11 + $0xc34] ss:$8 sps:$4 sm:$0xff]  }
 0x22c   : > { %4704 = vmatpush1.bf16.msra.mxu1 %v6440_v48  ;;  %v6539_v48 = vld [vmem:[%s7493_s11 + $0xc30] ss:$8 sps:$4 sm:$0xff]  }
 0x22d   : > { %4962 = vmatpush1.bf16.msra.mxu0 %v6443_v49  ;;  %4705 = vmatprep.subr.bf16.mxu1 %v6448_v50  ;;  %v6544_v49 = vld [vmem:[%s7493_s11 + $0xc44] ss:$8 sps:$4 sm:$0xff]   ;;  %v6542_v50 = vld [vmem:[%s7493_s11 + $0xc40] ss:$8 sps:$4 sm:$0xff]  }
 0x22e   : > { %4963 = vmatprep.subr.bf16.mxu0 %v6451_v51  ;;  %v6547_v51 = vld [vmem:[%s7493_s11 + $0xc54] ss:$8 sps:$4 sm:$0xff]  }
 0x230   : > { %4706 = vmatpush1.bf16.msra.mxu1 %v6446_v52  ;;  %v6545_v52 = vld [vmem:[%s7493_s11 + $0xc50] ss:$8 sps:$4 sm:$0xff]  }
 0x231   : > { %4964 = vmatpush1.bf16.msra.mxu0 %v6449_v53  ;;  %4707 = vmatprep.subr.bf16.mxu1 %v6454_v54  ;;  %v6550_v53 = vld [vmem:[%s7493_s11 + $0xc64] ss:$8 sps:$4 sm:$0xff]   ;;  %v6548_v54 = vld [vmem:[%s7493_s11 + $0xc60] ss:$8 sps:$4 sm:$0xff]  }
 0x232   : > { %4965 = vmatprep.subr.bf16.mxu0 %v6457_v55  ;;  %v6553_v55 = vld [vmem:[%s7493_s11 + $0xc74] ss:$8 sps:$4 sm:$0xff]  }
 0x234   : > { %4708 = vmatpush1.bf16.msra.mxu1 %v6452_v56  ;;  %v6551_v56 = vld [vmem:[%s7493_s11 + $0xc70] ss:$8 sps:$4 sm:$0xff]   ;;  %s5351_s11 = sshll.u32 %s6601_s17, 1  ;;  %s8008_s17 = smov (!%p1910_p11, %s6601_s17), 1 }
 0x235   : > { %4966 = vmatpush1.bf16.msra.mxu0 %v6455_v57  ;;  %4709 = vmatprep.subr.bf16.mxu1 %v6460_v58  ;;  %v6554_v57 = vld [vmem:[%s7992_s0 + $0x60] ss:$100 sps:$4 sm:$0xff]   ;;  %p1899_p10 = scmp.lt.s32.totalorder %s5351_s11, 3  ;;  %s5800_s8 = sshll.u32 %s8008_s17, 4 }
 0x236   : > { %4967 = vmatprep.subr.bf16.mxu0 %v6463_v59  ;;  %v6555_v58 = vld [vmem:[%s1907_s30 + $0x40] sm:$0xff]   ;;  %s1917_s12 = scalar_lea.vmem %s7996_s4, %s5800_s8 }
 0x237   : > { %v6556_v59 = vld [vmem:[%s1907_s30] sm:$0xff]   ;;  %s8006_s11 = smov (!%p1899_p10, %s5351_s11), 3 }
 0x238   : > { %4710 = vmatpush1.bf16.msra.mxu1 %v6458_v60  ;;  %v6557_v60 = vld [vmem:[%s1907_s30 + $0x48] sm:$0xff]   ;;  %s1901_s7 = scalar_lea.vmem %s7994_s2, %s8006_s11 }
 0x239   : > { %4968 = vmatpush1.bf16.msra.mxu0 %v6461_v61  ;;  %4711 = vmatprep.subr.bf16.mxu1 %v6466_v62  ;;  %v6558_v61 = vld [vmem:[%s1907_s30 + $0x8] sm:$0xff]   ;;  %v6559_v62 = vld [vmem:[%s1907_s30 + $0x50] sm:$0xff]  }
 0x23a   : > { %4969 = vmatprep.subr.bf16.mxu0 %v6469_v63  ;;  %v6560_v63 = vld [vmem:[%s1907_s30 + $0x10] sm:$0xff]  }
 0x23c   : > { %4712 = vmatpush1.bf16.msra.mxu1 %v6464_v0  ;;  %v6561_v0 = vld [vmem:[%s1907_s30 + $0x58] sm:$0xff]  }
 0x23d   : > { %4970 = vmatpush1.bf16.msra.mxu0 %v6467_v1  ;;  %4713 = vmatprep.subr.bf16.mxu1 %v6472_v2  ;;  %v6562_v1 = vld [vmem:[%s1907_s30 + $0x18] sm:$0xff]   ;;  %v6563_v2 = vld [vmem:[%s1907_s30 + $0x60] sm:$0xff]  }
 0x23e   : > { %4971 = vmatprep.subr.bf16.mxu0 %v6475_v3  ;;  %v6564_v3 = vld [vmem:[%s1907_s30 + $0x20] sm:$0xff]  }
 0x240   : > { %4714 = vmatpush1.bf16.msra.mxu1 %v6470_v4  ;;  %v6565_v4 = vld [vmem:[%s1907_s30 + $0x68] sm:$0xff]  }
 0x241   : > { %4972 = vmatpush1.bf16.msra.mxu0 %v6473_v5  ;;  %4715 = vmatprep.subr.bf16.mxu1 %v6478_v6  ;;  %v6566_v5 = vld [vmem:[%s1907_s30 + $0x28] sm:$0xff]   ;;  %v6567_v6 = vld [vmem:[%s1907_s30 + $0x70] sm:$0xff]  }
 0x242   : > { %4973 = vmatprep.subr.bf16.mxu0 %v6481_v7  ;;  %v6568_v7 = vld [vmem:[%s1907_s30 + $0x30] sm:$0xff]  }
 0x244   : > { %4716 = vmatpush1.bf16.msra.mxu1 %v6476_v8  ;;  %v6569_v8 = vld [vmem:[%s1907_s30 + $0x78] sm:$0xff]  }
 0x245   : > { %4974 = vmatpush1.bf16.msra.mxu0 %v6479_v9  ;;  %4717 = vmatprep.subr.bf16.mxu1 %v6484_v10  ;;  %v6570_v9 = vld [vmem:[%s1907_s30 + $0x38] sm:$0xff]  }
 0x246   : > { %4975 = vmatprep.subr.bf16.mxu0 %v6487_v11 }
 0x248   : > { %4718 = vmatpush1.bf16.msra.mxu1 %v6482_v12 }
 0x249   : > { %4976 = vmatpush1.bf16.msra.mxu0 %v6485_v13  ;;  %4719 = vmatprep.subr.bf16.mxu1 %v6490_v14  ;;  %v2348_v14 = vlaneseq }
 0x24a   : > { %4977 = vmatprep.subr.bf16.mxu0 %v6493_v15 }
 0x24b   : > { %v2349_v15 = vshrl.u32 %v2348_v14, 7 }
 0x24c   : > { %4720 = vmatpush1.bf16.msra.mxu1 %v6488_v16 }
 0x24d   : > { %4978 = vmatpush1.bf16.msra.mxu0 %v6491_v17  ;;  %4721 = vmatprep.subr.bf16.mxu1 %v6496_v18  ;;  %v2350_v16 = vsub.s32 0, %v2349_v15  ;;  %v2346_v17 = vld [vmem:[%s1901_s7] sm:$0x3]  ;;  %v2354_v18 = vsub.s32 1, %v2349_v15 }
 0x24e   : > { %4979 = vmatprep.subr.bf16.mxu0 %v6499_v19 }
 0x24f   : > { %v2351_v19 = vrot.slane %v2346_v17, %v2350_v16 }
 0x250   : > { %4722 = vmatpush1.bf16.msra.mxu1 %v6494_v20  ;;  %v2355_v20 = vrot.slane %v2346_v17, %v2354_v18 }
 0x251   : > { %4980 = vmatpush1.bf16.msra.mxu0 %v6497_v21  ;;  %4723 = vmatprep.subr.bf16.mxu1 %v6502_v22 }
 0x252   : > { %4981 = vmatprep.subr.bf16.mxu0 %v6505_v23 }
 0x254   : > { %4724 = vmatpush1.bf16.msra.mxu1 %v6500_v24 }
 0x255   : > { %4982 = vmatpush1.bf16.msra.mxu0 %v6503_v25  ;;  %4725 = vmatprep.subr.bf16.mxu1 %v6508_v26 }
 0x256   : > { %4983 = vmatprep.subr.bf16.mxu0 %v6511_v27 }
 0x258   : > { %4726 = vmatpush1.bf16.msra.mxu1 %v6506_v28 }
 0x259   : > { %4984 = vmatpush1.bf16.msra.mxu0 %v6509_v29  ;;  %4727 = vmatprep.subr.bf16.mxu1 %v6514_v30 }
 0x25a   : > { %4985 = vmatprep.subr.bf16.mxu0 %v6517_v31 }
 0x25c   : > { %4728 = vmatpush1.bf16.msra.mxu1 %v6512_v32 }
 0x25d   : > { %4986 = vmatpush1.bf16.msra.mxu0 %v6515_v33  ;;  %4729 = vmatprep.subr.bf16.mxu1 %v6520_v34 }
 0x25e   : > { %4987 = vmatprep.subr.bf16.mxu0 %v6523_v35 }
 0x260   : > { %4730 = vmatpush1.bf16.msra.mxu1 %v6518_v36 }
 0x261   : > { %4988 = vmatpush1.bf16.msra.mxu0 %v6521_v37  ;;  %5801 = vmatprep.subr.bf16.mxu1 %v6555_v58 }
 0x262   : > { %5000 = vmatprep.subr.bf16.mxu0 %v6532_v38 }
 0x263   : > { %4732 = vmatmul.mubr.bf16.vlgmr.msra.gmra.mrb[0].mxu1 %v6524_v39 }
 0x264   : > { %4990 = vmatmul.mubr.bf16.vlgmr.msra.gmra.mrb[0].mxu0 %v6527_v40  ;;  %5802 = vmatpush3.bf16.msra.mxu1 %v6556_v59 }
 0x265   : > { %5001 = vmatpush1.bf16.msra.mxu0 %v6530_v41  ;;  %5032 = vmatprep.mubr.bf16.mxu0 %v6611_v44 }
 0x266   : > { %5002 = vmatprep.subr.bf16.mxu0 %v6535_v42  ;;  %5803 = vmatprep.subr.bf16.mxu1 %v6557_v60 }
 0x268   : > { %5804 = vmatpush3.bf16.msra.mxu1 %v6558_v61 }
 0x269   : > { %5003 = vmatpush1.bf16.msra.mxu0 %v6533_v43  ;;  %5805 = vmatprep.subr.bf16.mxu1 %v6559_v62 }
 0x26a   : > { %5004 = vmatprep.subr.bf16.mxu0 %v6538_v45 }
 0x26c   : > { %5806 = vmatpush3.bf16.msra.mxu1 %v6560_v63 }
 0x26d   : > { %5005 = vmatpush1.bf16.msra.mxu0 %v6536_v46  ;;  %5807 = vmatprep.subr.bf16.mxu1 %v6561_v0 }
 0x26e   : > { %5006 = vmatprep.subr.bf16.mxu0 %v6541_v47 }
 0x270   : > { %5808 = vmatpush3.bf16.msra.mxu1 %v6562_v1 }
 0x271   : > { %5007 = vmatpush1.bf16.msra.mxu0 %v6539_v48  ;;  %5809 = vmatprep.subr.bf16.mxu1 %v6563_v2 }
 0x272   : > { %5008 = vmatprep.subr.bf16.mxu0 %v6544_v49 }
 0x274   : > { %5810 = vmatpush3.bf16.msra.mxu1 %v6564_v3 }
 0x275   : > { %5009 = vmatpush1.bf16.msra.mxu0 %v6542_v50  ;;  %5811 = vmatprep.subr.bf16.mxu1 %v6565_v4 }
 0x276   : > { %5010 = vmatprep.subr.bf16.mxu0 %v6547_v51 }
 0x278   : > { %5812 = vmatpush3.bf16.msra.mxu1 %v6566_v5 }
 0x279   : > { %5011 = vmatpush1.bf16.msra.mxu0 %v6545_v52  ;;  %5813 = vmatprep.subr.bf16.mxu1 %v6567_v6 }
 0x27a   : > { %5012 = vmatprep.subr.bf16.mxu0 %v6550_v53 }
 0x27c   : > { %5814 = vmatpush3.bf16.msra.mxu1 %v6568_v7 }
 0x27d   : > { %5013 = vmatpush1.bf16.msra.mxu0 %v6548_v54  ;;  %5815 = vmatprep.subr.bf16.mxu1 %v6569_v8 }
 0x27e   : > { %5014 = vmatprep.subr.bf16.mxu0 %v6553_v55 }
 0x280   : > { %5816 = vmatpush3.bf16.msra.mxu1 %v6570_v9 }
 0x281   : > { %5015 = vmatpush1.bf16.msra.mxu0 %v6551_v56 }
 0x284   : > { %5033 = vmatmul.mubr.bf16.vlgmr.msra.gmra.mrb[0].mxu0 %v6554_v57 }
 0x336   : > { %v4733_v10 = vpop.f32.mrb[0].mxu1 }
 0x337   : > { %v4735_v11 = vpop.f32.mrb[1].mxu1  ;;  %v5823_v21 = vadd.f32 %v4733_v10, %v2351_v19 }
 0x338   : > { %v4737_v12 = vpop.f32.mrb[2].mxu1  ;;  %v5825_v22 = vadd.f32 %v4735_v11, %v2355_v20 }
 0x339   : > { %v4739_v13 = vpop.f32.mrb[3].mxu1  ;;  %v5827_v24 = vadd.f32 %v4737_v12, %v2351_v19 }
 0x33a   : > { %v5829_v27 = vadd.f32 %v4739_v13, %v2355_v20 }
 0x357   : > { %v5034_v23 = vpop.f32.mrb[0].mxu0 }
 0x358   : > { %v5824_v25 = vadd.f32 %v5823_v21, %v5034_v23  ;;  %v5036_v26 = vpop.f32.mrb[1].mxu0 }
 0x359   : > { %v5826_v28 = vadd.f32 %v5825_v22, %v5036_v26  ;;  %v5038_v29 = vpop.f32.mrb[2].mxu0 }
 0x35a   : > { %v5828_v30 = vadd.f32 %v5827_v24, %v5038_v29  ;;  %v5040_v31 = vpop.f32.mrb[3].mxu0  ;;  %v5043_v33 = vmax.f32 %v5824_v25, 0.0 }
 0x35b   : > { %v5830_v32 = vadd.f32 %v5829_v27, %v5040_v31  ;;  %v5044_v35 = vmax.f32 %v5826_v28, 0.0 }
 0x35c   : > { %v5045_v34 = vmax.f32 %v5828_v30, 0.0 }
 0x35d   : > { %v5046_v36 = vmax.f32 %v5830_v32, 0.0 }
 0x35e   : > { %v5047_v37 = vpack.c.bf16 %v5045_v34, %v5043_v33 }
 0x35f   : > { %v5048_v38 = vpack.c.bf16 %v5046_v36, %v5044_v35 }
 0x361   : > { %5209 = vmatprep.mubr.bf16.mxu1 %v5048_v38 }
 0x362   : > { %5210 = vmatmul.mubr.bf16.vlgmr.msra.gmra.mrb[4].mxu1 %v5047_v37 }
 0x435   : > { %v5817_v39 = vpop.f32.mrb[4].mxu1 }
 0x436   : > { %v5818_v40 = vpop.f32.mrb[5].mxu1 }
 0x437   : > { %v5819_v41 = vadd.f32 %v5818_v40, %v5817_v39  ;;  %v5820_v42 = vpop.f32.mrb[6].mxu1 }
 0x438   : > { %v5821_v43 = vpop.f32.mrb[7].mxu1 }
 0x439   : > { %5218 = vst [vmem:[%s1917_s12] sm:$0xff] %v5819_v41  ;;  %v5822_v44 = vadd.f32 %v5821_v43, %v5820_v42 }
 0x43b   : > { %5219 = vst [vmem:[%s1917_s12 + $0x8] sm:$0xff] %v5822_v44 }
 0x43c PF: > { %s14_s19 = sadd.s32 1, %s6609_s19   ;;  %s7997_s15 = smov %s6597_s16 }
 0x43d   : > { %p11_p12 = scmp.ge.s32.totalorder %s14_s19, 4   ;;  %s7998_s16 = smov %s6672_s23 }
 0x43e   : > { %s7999_s17 = smov %s6605_s18  ;;  %s8000_s18 = smov %s8002_s20 }
 0x43f   :  { %13 = sbr.rel (!%p11_p12) target bundleno = 3 (0x3), region = 118 }

</bundles_post_ra>
